<compile_context>
chip_gen: v5e
topology: v5e:2x2
jax: 0.10.0
libtpu: 0.0.40
codegen_flags: <defaults>
</compile_context>

<pallas_src>
import functools
import math

import jax
import jax.numpy as jnp
from jax.experimental import pallas as pl
from jax.experimental.pallas import tpu as pltpu


# ----------------------------- config ---------------------------------------
class Config:
    # 128x128 is the minimum spatial size for this architecture: five stride-2
    # convs must leave a 4x4 map for conv6 (ks=4, stride=1, pad=0).
    image_size = (128, 128)
    nc = 3
    ndf = 4


def conv_output_size(input_size, kernel_size, stride, padding):
    return math.floor((input_size + 2 * padding - kernel_size) / stride) + 1


# ------------------------- Pallas matmul kernel ------------------------------
def _matmul_lrelu_kernel(w_ref, p_ref, o_ref, *, apply_lrelu, slope):
    # w_ref: (Cout, K)  weights (tiny, same block every grid step)
    # p_ref: (K, tm)    im2col patches, tm lane-dense
    # o_ref: (Cout, tm) output, tm lane-dense
    acc = jnp.dot(w_ref[...], p_ref[...], preferred_element_type=jnp.float32)
    if apply_lrelu:
        acc = jnp.where(acc >= 0, acc, slope * acc)
    o_ref[...] = acc.astype(o_ref.dtype)


def _pallas_conv_matmul(w_t, p_t, apply_lrelu, slope=0.2):
    """O[Cout, M] = LeakyReLU(W_T[Cout, K] @ P_T[K, M]) on the MXU."""
    cout, k = w_t.shape
    k2, m = p_t.shape
    assert k == k2, (w_t.shape, p_t.shape)

    # Two lane-dense M blocks for the big layers (keeps both v7x TensorCores busy);
    # otherwise a single full block (no grid-loop overhead, layer fits in VMEM).
    if m >= 2048 and m % 256 == 0:
        n_blocks = 2
    else:
        n_blocks = 1
    tm = m // n_blocks

    kernel = functools.partial(_matmul_lrelu_kernel,
                               apply_lrelu=apply_lrelu, slope=slope)
    return pl.pallas_call(
        kernel,
        out_shape=jax.ShapeDtypeStruct((cout, m), p_t.dtype),
        grid=(n_blocks,),
        in_specs=[
            pl.BlockSpec((cout, k), lambda i: (0, 0)),   # weights (resident block)
            pl.BlockSpec((k, tm), lambda i: (0, i)),     # patches, lane-dense M
        ],
        out_specs=pl.BlockSpec((cout, tm), lambda i: (0, i)),
        compiler_params=pltpu.CompilerParams(
            dimension_semantics=("parallel",)),
    )(w_t, p_t)


# ----------------------------- conv layer ------------------------------------
def _im2col_T(x_cnhw, ks, stride, pad):
    """[C, N, H, W] -> P_T[K, M] with K = (kh, kw, ci) and M = (n, ho, wo)."""
    C, N, H, W = x_cnhw.shape
    Hout = conv_output_size(H, ks, stride, pad)
    Wout = conv_output_size(W, ks, stride, pad)
    xp = jnp.pad(x_cnhw, ((0, 0), (0, 0), (pad, pad), (pad, pad)))
    cols = []
    for kh in range(ks):
        for kw in range(ks):
            cols.append(xp[:, :, kh:kh + stride * Hout:stride,
                           kw:kw + stride * Wout:stride])
    # [ks*ks, C, N, Hout, Wout] -> [ks*ks*C, N*Hout*Wout], K ordered (kh, kw, ci)
    p = jnp.stack(cols, axis=0)
    return p.reshape(ks * ks * C, N * Hout * Wout), N, Hout, Wout


def conv2d_pallas(x_cnhw, w_t, ks, stride, pad, apply_lrelu):
    p_t, N, Hout, Wout = _im2col_T(x_cnhw, ks, stride, pad)
    cout = w_t.shape[0]
    out = _pallas_conv_matmul(w_t, p_t, apply_lrelu)   # [Cout, N*Hout*Wout]
    return out.reshape(cout, N, Hout, Wout)            # stays in CNHW layout


# --------------------------- Discriminator -----------------------------------
def init_params(config, key):
    ks = 4
    chans = [config.nc,
             config.ndf, config.ndf * 2, config.ndf * 4,
             config.ndf * 8, config.ndf * 16, 1]
    keys = jax.random.split(key, 6)
    params = []
    for li in range(6):
        cin, cout = chans[li], chans[li + 1]
        # N(0, 0.02) init, stored as [Cout, ks*ks*Cin] with K ordered (kh, kw, ci)
        w = 0.02 * jax.random.normal(keys[li], (cout, ks * ks * cin),
                                     dtype=jnp.float32)
        params.append(w)
    return params


@jax.jit
def discriminator_forward(params, x_nchw):
    ks = 4
    x = jnp.transpose(x_nchw, (1, 0, 2, 3))   # NCHW -> CNHW, once
    # conv1..conv5: stride 2, pad 1, fused LeakyReLU(0.2)
    for li in range(5):
        x = conv2d_pallas(x, params[li], ks, stride=2, pad=1, apply_lrelu=True)
    # conv6: stride 1, pad 0, no activation
    x = conv2d_pallas(x, params[5], ks, stride=1, pad=0, apply_lrelu=False)
    # x: [Cout=1, N, h6, w6] -> flatten exactly like nn.Flatten on NCHW
    cout, N, h6, w6 = x.shape
    return jnp.transpose(x, (1, 0, 2, 3)).reshape(N, cout * h6 * w6)


# ------------------------- reference (pure JAX) -------------------------------
def reference_forward(params, x_nchw, config):
    ks = 4
    chans = [config.nc,
             config.ndf, config.ndf * 2, config.ndf * 4,
             config.ndf * 8, config.ndf * 16, 1]
    x = x_nchw
    for li in range(6):
        cin, cout = chans[li], chans[li + 1]
        # [Cout, ks*ks*Cin] with K ordered (kh,kw,ci) -> OIHW
        w = params[li].reshape(cout, ks, ks, cin).transpose(0, 3, 1, 2)
        stride = 2 if li < 5 else 1
        pad = 1 if li < 5 else 0
        x = jax.lax.conv_general_dilated(
            x, w, window_strides=(stride, stride),
            padding=[(pad, pad), (pad, pad)],
            dimension_numbers=("NCHW", "OIHW", "NCHW"))
        if li < 5:
            x = jnp.where(x >= 0, x, 0.2 * x)
    return x.reshape(x.shape[0], -1)


# --------------------------------- main ---------------------------------------
if __name__ == "__main__":
    config = Config()
    key = jax.random.PRNGKey(0)
    kp, kx = jax.random.split(key)

    params = init_params(config, kp)
    x = jax.random.normal(
        kx, (2, config.nc, config.image_size[1], config.image_size[0]),
        dtype=jnp.float32)  # NCHW, like the PyTorch module input

    out = discriminator_forward(params, x)
    out = jax.block_until_ready(out)

    ref = reference_forward(params, x, config)
    assert out.shape == (2, 1), out.shape
    assert jnp.allclose(out, ref, rtol=1e-3, atol=1e-3), (out, ref)

    print("KERNEL_OK")
</pallas_src>

<mosaic_0001>
module attributes {stable_mosaic.version = 11 : i64} {
  func.func @_matmul_lrelu_kernel(%arg0: i32, %arg1: memref<4x48xf32, #tpu.memory_space<vmem>>, %arg2: memref<48x4096xf32, #tpu.memory_space<vmem>>, %arg3: memref<4x4096xf32, #tpu.memory_space<vmem>>) attributes {dimension_semantics = [#tpu.dimension_semantics<parallel>], iteration_bounds = array<i64: 2>, scalar_prefetch = 0 : i64, scratch_operands = 0 : i64, tpu.core_type = #tpu.core_type<tc>, window_params = [{pipeline_mode = #tpu.pipeline_mode<synchronous>, transform_indices = @transform_0, window_bounds = array<i64: 4, 48>}, {transform_indices = @transform_1, window_bounds = array<i64: 48, 4096>}, {transform_indices = @transform_2, window_bounds = array<i64: 4, 4096>}]} {
    %c0 = arith.constant 0 : index
    %c0_0 = arith.constant 0 : index
    %0 = vector.load %arg1[%c0, %c0_0] : memref<4x48xf32, #tpu.memory_space<vmem>>, vector<4x48xf32>
    %c0_1 = arith.constant 0 : index
    %c0_2 = arith.constant 0 : index
    %1 = vector.load %arg2[%c0_1, %c0_2] : memref<48x4096xf32, #tpu.memory_space<vmem>>, vector<48x4096xf32>
    %cst = arith.constant dense<0.000000e+00> : vector<4x4096xf32>
    %2 = tpu.matmul %0, %1, %cst {dimension_numbers = #tpu.dot_dimension_numbers<[1], [0], [0], [1], [0, 0, 1, 1], [], []>} : vector<4x48xf32>, vector<48x4096xf32>, vector<4x4096xf32> -> vector<4x4096xf32>
    %cst_3 = arith.constant 0.000000e+00 : f32
    %3 = vector.broadcast %cst_3 : f32 to vector<4x4096xf32>
    %4 = arith.cmpf oge, %2, %3 : vector<4x4096xf32>
    %cst_4 = arith.constant 2.000000e-01 : f32
    %5 = vector.broadcast %cst_4 : f32 to vector<4x4096xf32>
    %6 = arith.mulf %5, %2 : vector<4x4096xf32>
    %7 = arith.select %4, %2, %6 : vector<4x4096xi1>, vector<4x4096xf32>
    %c0_5 = arith.constant 0 : index
    %c0_6 = arith.constant 0 : index
    %8 = vector.load %arg3[%c0_5, %c0_6] : memref<4x4096xf32, #tpu.memory_space<vmem>>, vector<4x4096xf32>
    tpu.vector_store %arg3[%c0_5, %c0_6], %7 {strides = array<i32>} : memref<4x4096xf32, #tpu.memory_space<vmem>>, vector<4x4096xf32>,
    return
  }
  func.func @transform_0(%arg0: i32) -> (i32, i32) {
    %c0_i32 = arith.constant 0 : i32
    %c0_i32_0 = arith.constant 0 : i32
    %c0_i32_1 = arith.constant 0 : i32
    return %c0_i32, %c0_i32_0 : i32, i32
  }
  func.func @transform_1(%arg0: i32) -> (i32, i32) {
    %c0_i32 = arith.constant 0 : i32
    %c0_i32_0 = arith.constant 0 : i32
    return %c0_i32, %arg0 : i32, i32
  }
  func.func @transform_2(%arg0: i32) -> (i32, i32) {
    %c0_i32 = arith.constant 0 : i32
    %c0_i32_0 = arith.constant 0 : i32
    return %c0_i32, %arg0 : i32, i32
  }
}

module attributes {stable_mosaic.version = 11 : i64} {
  func.func @_matmul_lrelu_kernel(%arg0: i32, %arg1: memref<8x64xf32, #tpu.memory_space<vmem>>, %arg2: memref<64x1024xf32, #tpu.memory_space<vmem>>, %arg3: memref<8x1024xf32, #tpu.memory_space<vmem>>) attributes {dimension_semantics = [#tpu.dimension_semantics<parallel>], iteration_bounds = array<i64: 2>, scalar_prefetch = 0 : i64, scratch_operands = 0 : i64, tpu.core_type = #tpu.core_type<tc>, window_params = [{pipeline_mode = #tpu.pipeline_mode<synchronous>, transform_indices = @transform_0, window_bounds = array<i64: 8, 64>}, {transform_indices = @transform_1, window_bounds = array<i64: 64, 1024>}, {transform_indices = @transform_2, window_bounds = array<i64: 8, 1024>}]} {
    %c0 = arith.constant 0 : index
    %c0_0 = arith.constant 0 : index
    %0 = vector.load %arg1[%c0, %c0_0] : memref<8x64xf32, #tpu.memory_space<vmem>>, vector<8x64xf32>
    %c0_1 = arith.constant 0 : index
    %c0_2 = arith.constant 0 : index
    %1 = vector.load %arg2[%c0_1, %c0_2] : memref<64x1024xf32, #tpu.memory_space<vmem>>, vector<64x1024xf32>
    %cst = arith.constant dense<0.000000e+00> : vector<8x1024xf32>
    %2 = tpu.matmul %0, %1, %cst {dimension_numbers = #tpu.dot_dimension_numbers<[1], [0], [0], [1], [0, 0, 1, 1], [], []>} : vector<8x64xf32>, vector<64x1024xf32>, vector<8x1024xf32> -> vector<8x1024xf32>
    %cst_3 = arith.constant 0.000000e+00 : f32
    %3 = vector.broadcast %cst_3 : f32 to vector<8x1024xf32>
    %4 = arith.cmpf oge, %2, %3 : vector<8x1024xf32>
    %cst_4 = arith.constant 2.000000e-01 : f32
    %5 = vector.broadcast %cst_4 : f32 to vector<8x1024xf32>
    %6 = arith.mulf %5, %2 : vector<8x1024xf32>
    %7 = arith.select %4, %2, %6 : vector<8x1024xi1>, vector<8x1024xf32>
    %c0_5 = arith.constant 0 : index
    %c0_6 = arith.constant 0 : index
    %8 = vector.load %arg3[%c0_5, %c0_6] : memref<8x1024xf32, #tpu.memory_space<vmem>>, vector<8x1024xf32>
    tpu.vector_store %arg3[%c0_5, %c0_6], %7 {strides = array<i32>} : memref<8x1024xf32, #tpu.memory_space<vmem>>, vector<8x1024xf32>,
    return
  }
  func.func @transform_0(%arg0: i32) -> (i32, i32) {
    %c0_i32 = arith.constant 0 : i32
    %c0_i32_0 = arith.constant 0 : i32
    %c0_i32_1 = arith.constant 0 : i32
    return %c0_i32, %c0_i32_0 : i32, i32
  }
  func.func @transform_1(%arg0: i32) -> (i32, i32) {
    %c0_i32 = arith.constant 0 : i32
    %c0_i32_0 = arith.constant 0 : i32
    return %c0_i32, %arg0 : i32, i32
  }
  func.func @transform_2(%arg0: i32) -> (i32, i32) {
    %c0_i32 = arith.constant 0 : i32
    %c0_i32_0 = arith.constant 0 : i32
    return %c0_i32, %arg0 : i32, i32
  }
}

module attributes {stable_mosaic.version = 11 : i64} {
  func.func @_matmul_lrelu_kernel(%arg0: i32, %arg1: memref<16x128xf32, #tpu.memory_space<vmem>>, %arg2: memref<128x512xf32, #tpu.memory_space<vmem>>, %arg3: memref<16x512xf32, #tpu.memory_space<vmem>>) attributes {dimension_semantics = [#tpu.dimension_semantics<parallel>], iteration_bounds = array<i64: 1>, scalar_prefetch = 0 : i64, scratch_operands = 0 : i64, tpu.core_type = #tpu.core_type<tc>, window_params = [{pipeline_mode = #tpu.pipeline_mode<synchronous>, transform_indices = @transform_0, window_bounds = array<i64: 16, 128>}, {transform_indices = @transform_1, window_bounds = array<i64: 128, 512>}, {transform_indices = @transform_2, window_bounds = array<i64: 16, 512>}]} {
    %c0 = arith.constant 0 : index
    %c0_0 = arith.constant 0 : index
    %0 = vector.load %arg1[%c0, %c0_0] : memref<16x128xf32, #tpu.memory_space<vmem>>, vector<16x128xf32>
    %c0_1 = arith.constant 0 : index
    %c0_2 = arith.constant 0 : index
    %1 = vector.load %arg2[%c0_1, %c0_2] : memref<128x512xf32, #tpu.memory_space<vmem>>, vector<128x512xf32>
    %cst = arith.constant dense<0.000000e+00> : vector<16x512xf32>
    %2 = tpu.matmul %0, %1, %cst {dimension_numbers = #tpu.dot_dimension_numbers<[1], [0], [0], [1], [0, 0, 1, 1], [], []>} : vector<16x128xf32>, vector<128x512xf32>, vector<16x512xf32> -> vector<16x512xf32>
    %cst_3 = arith.constant 0.000000e+00 : f32
    %3 = vector.broadcast %cst_3 : f32 to vector<16x512xf32>
    %4 = arith.cmpf oge, %2, %3 : vector<16x512xf32>
    %cst_4 = arith.constant 2.000000e-01 : f32
    %5 = vector.broadcast %cst_4 : f32 to vector<16x512xf32>
    %6 = arith.mulf %5, %2 : vector<16x512xf32>
    %7 = arith.select %4, %2, %6 : vector<16x512xi1>, vector<16x512xf32>
    %c0_5 = arith.constant 0 : index
    %c0_6 = arith.constant 0 : index
    %8 = vector.load %arg3[%c0_5, %c0_6] : memref<16x512xf32, #tpu.memory_space<vmem>>, vector<16x512xf32>
    tpu.vector_store %arg3[%c0_5, %c0_6], %7 {strides = array<i32>} : memref<16x512xf32, #tpu.memory_space<vmem>>, vector<16x512xf32>,
    return
  }
  func.func @transform_0(%arg0: i32) -> (i32, i32) {
    %c0_i32 = arith.constant 0 : i32
    %c0_i32_0 = arith.constant 0 : i32
    %c0_i32_1 = arith.constant 0 : i32
    return %c0_i32, %c0_i32_0 : i32, i32
  }
  func.func @transform_1(%arg0: i32) -> (i32, i32) {
    %c0_i32 = arith.constant 0 : i32
    %c0_i32_0 = arith.constant 0 : i32
    return %c0_i32, %arg0 : i32, i32
  }
  func.func @transform_2(%arg0: i32) -> (i32, i32) {
    %c0_i32 = arith.constant 0 : i32
    %c0_i32_0 = arith.constant 0 : i32
    return %c0_i32, %arg0 : i32, i32
  }
}

module attributes {stable_mosaic.version = 11 : i64} {
  func.func @_matmul_lrelu_kernel(%arg0: i32, %arg1: memref<32x256xf32, #tpu.memory_space<vmem>>, %arg2: memref<256x128xf32, #tpu.memory_space<vmem>>, %arg3: memref<32x128xf32, #tpu.memory_space<vmem>>) attributes {dimension_semantics = [#tpu.dimension_semantics<parallel>], iteration_bounds = array<i64: 1>, scalar_prefetch = 0 : i64, scratch_operands = 0 : i64, tpu.core_type = #tpu.core_type<tc>, window_params = [{pipeline_mode = #tpu.pipeline_mode<synchronous>, transform_indices = @transform_0, window_bounds = array<i64: 32, 256>}, {transform_indices = @transform_1, window_bounds = array<i64: 256, 128>}, {transform_indices = @transform_2, window_bounds = array<i64: 32, 128>}]} {
    %c0 = arith.constant 0 : index
    %c0_0 = arith.constant 0 : index
    %0 = vector.load %arg1[%c0, %c0_0] : memref<32x256xf32, #tpu.memory_space<vmem>>, vector<32x256xf32>
    %c0_1 = arith.constant 0 : index
    %c0_2 = arith.constant 0 : index
    %1 = vector.load %arg2[%c0_1, %c0_2] : memref<256x128xf32, #tpu.memory_space<vmem>>, vector<256x128xf32>
    %cst = arith.constant dense<0.000000e+00> : vector<32x128xf32>
    %2 = tpu.matmul %0, %1, %cst {dimension_numbers = #tpu.dot_dimension_numbers<[1], [0], [0], [1], [0, 0, 1, 1], [], []>} : vector<32x256xf32>, vector<256x128xf32>, vector<32x128xf32> -> vector<32x128xf32>
    %cst_3 = arith.constant 0.000000e+00 : f32
    %3 = vector.broadcast %cst_3 : f32 to vector<32x128xf32>
    %4 = arith.cmpf oge, %2, %3 : vector<32x128xf32>
    %cst_4 = arith.constant 2.000000e-01 : f32
    %5 = vector.broadcast %cst_4 : f32 to vector<32x128xf32>
    %6 = arith.mulf %5, %2 : vector<32x128xf32>
    %7 = arith.select %4, %2, %6 : vector<32x128xi1>, vector<32x128xf32>
    %c0_5 = arith.constant 0 : index
    %c0_6 = arith.constant 0 : index
    %8 = vector.load %arg3[%c0_5, %c0_6] : memref<32x128xf32, #tpu.memory_space<vmem>>, vector<32x128xf32>
    tpu.vector_store %arg3[%c0_5, %c0_6], %7 {strides = array<i32>} : memref<32x128xf32, #tpu.memory_space<vmem>>, vector<32x128xf32>,
    return
  }
  func.func @transform_0(%arg0: i32) -> (i32, i32) {
    %c0_i32 = arith.constant 0 : i32
    %c0_i32_0 = arith.constant 0 : i32
    %c0_i32_1 = arith.constant 0 : i32
    return %c0_i32, %c0_i32_0 : i32, i32
  }
  func.func @transform_1(%arg0: i32) -> (i32, i32) {
    %c0_i32 = arith.constant 0 : i32
    %c0_i32_0 = arith.constant 0 : i32
    return %c0_i32, %arg0 : i32, i32
  }
  func.func @transform_2(%arg0: i32) -> (i32, i32) {
    %c0_i32 = arith.constant 0 : i32
    %c0_i32_0 = arith.constant 0 : i32
    return %c0_i32, %arg0 : i32, i32
  }
}

module attributes {stable_mosaic.version = 11 : i64} {
  func.func @_matmul_lrelu_kernel(%arg0: i32, %arg1: memref<64x512xf32, #tpu.memory_space<vmem>>, %arg2: memref<512x32xf32, #tpu.memory_space<vmem>>, %arg3: memref<64x32xf32, #tpu.memory_space<vmem>>) attributes {dimension_semantics = [#tpu.dimension_semantics<parallel>], iteration_bounds = array<i64: 1>, scalar_prefetch = 0 : i64, scratch_operands = 0 : i64, tpu.core_type = #tpu.core_type<tc>, window_params = [{pipeline_mode = #tpu.pipeline_mode<synchronous>, transform_indices = @transform_0, window_bounds = array<i64: 64, 512>}, {transform_indices = @transform_1, window_bounds = array<i64: 512, 32>}, {transform_indices = @transform_2, window_bounds = array<i64: 64, 32>}]} {
    %c0 = arith.constant 0 : index
    %c0_0 = arith.constant 0 : index
    %0 = vector.load %arg1[%c0, %c0_0] : memref<64x512xf32, #tpu.memory_space<vmem>>, vector<64x512xf32>
    %c0_1 = arith.constant 0 : index
    %c0_2 = arith.constant 0 : index
    %1 = vector.load %arg2[%c0_1, %c0_2] : memref<512x32xf32, #tpu.memory_space<vmem>>, vector<512x32xf32>
    %cst = arith.constant dense<0.000000e+00> : vector<64x32xf32>
    %2 = tpu.matmul %0, %1, %cst {dimension_numbers = #tpu.dot_dimension_numbers<[1], [0], [0], [1], [0, 0, 1, 1], [], []>} : vector<64x512xf32>, vector<512x32xf32>, vector<64x32xf32> -> vector<64x32xf32>
    %cst_3 = arith.constant 0.000000e+00 : f32
    %3 = vector.broadcast %cst_3 : f32 to vector<64x32xf32>
    %4 = arith.cmpf oge, %2, %3 : vector<64x32xf32>
    %cst_4 = arith.constant 2.000000e-01 : f32
    %5 = vector.broadcast %cst_4 : f32 to vector<64x32xf32>
    %6 = arith.mulf %5, %2 : vector<64x32xf32>
    %7 = arith.select %4, %2, %6 : vector<64x32xi1>, vector<64x32xf32>
    %c0_5 = arith.constant 0 : index
    %c0_6 = arith.constant 0 : index
    %8 = vector.load %arg3[%c0_5, %c0_6] : memref<64x32xf32, #tpu.memory_space<vmem>>, vector<64x32xf32>
    tpu.vector_store %arg3[%c0_5, %c0_6], %7 {strides = array<i32>} : memref<64x32xf32, #tpu.memory_space<vmem>>, vector<64x32xf32>,
    return
  }
  func.func @transform_0(%arg0: i32) -> (i32, i32) {
    %c0_i32 = arith.constant 0 : i32
    %c0_i32_0 = arith.constant 0 : i32
    %c0_i32_1 = arith.constant 0 : i32
    return %c0_i32, %c0_i32_0 : i32, i32
  }
  func.func @transform_1(%arg0: i32) -> (i32, i32) {
    %c0_i32 = arith.constant 0 : i32
    %c0_i32_0 = arith.constant 0 : i32
    return %c0_i32, %arg0 : i32, i32
  }
  func.func @transform_2(%arg0: i32) -> (i32, i32) {
    %c0_i32 = arith.constant 0 : i32
    %c0_i32_0 = arith.constant 0 : i32
    return %c0_i32, %arg0 : i32, i32
  }
}

module attributes {stable_mosaic.version = 11 : i64} {
  func.func @_matmul_lrelu_kernel(%arg0: i32, %arg1: memref<1x1024xf32, #tpu.memory_space<vmem>>, %arg2: memref<1024x2xf32, #tpu.memory_space<vmem>>, %arg3: memref<1x2xf32, #tpu.memory_space<vmem>>) attributes {dimension_semantics = [#tpu.dimension_semantics<parallel>], iteration_bounds = array<i64: 1>, scalar_prefetch = 0 : i64, scratch_operands = 0 : i64, tpu.core_type = #tpu.core_type<tc>, window_params = [{pipeline_mode = #tpu.pipeline_mode<synchronous>, transform_indices = @transform_0, window_bounds = array<i64: 1, 1024>}, {transform_indices = @transform_1, window_bounds = array<i64: 1024, 2>}, {transform_indices = @transform_2, window_bounds = array<i64: 1, 2>}]} {
    %c0 = arith.constant 0 : index
    %c0_0 = arith.constant 0 : index
    %0 = vector.load %arg1[%c0, %c0_0] : memref<1x1024xf32, #tpu.memory_space<vmem>>, vector<1x1024xf32>
    %c0_1 = arith.constant 0 : index
    %c0_2 = arith.constant 0 : index
    %1 = vector.load %arg2[%c0_1, %c0_2] : memref<1024x2xf32, #tpu.memory_space<vmem>>, vector<1024x2xf32>
    %cst = arith.constant dense<0.000000e+00> : vector<1x2xf32>
    %2 = tpu.matmul %0, %1, %cst {dimension_numbers = #tpu.dot_dimension_numbers<[1], [0], [0], [1], [0, 0, 1, 1], [], []>} : vector<1x1024xf32>, vector<1024x2xf32>, vector<1x2xf32> -> vector<1x2xf32>
    %c0_3 = arith.constant 0 : index
    %c0_4 = arith.constant 0 : index
    %3 = vector.load %arg3[%c0_3, %c0_4] : memref<1x2xf32, #tpu.memory_space<vmem>>, vector<1x2xf32>
    tpu.vector_store %arg3[%c0_3, %c0_4], %2 {strides = array<i32>} : memref<1x2xf32, #tpu.memory_space<vmem>>, vector<1x2xf32>,
    return
  }
  func.func @transform_0(%arg0: i32) -> (i32, i32) {
    %c0_i32 = arith.constant 0 : i32
    %c0_i32_0 = arith.constant 0 : i32
    %c0_i32_1 = arith.constant 0 : i32
    return %c0_i32, %c0_i32_0 : i32, i32
  }
  func.func @transform_1(%arg0: i32) -> (i32, i32) {
    %c0_i32 = arith.constant 0 : i32
    %c0_i32_0 = arith.constant 0 : i32
    return %c0_i32, %arg0 : i32, i32
  }
  func.func @transform_2(%arg0: i32) -> (i32, i32) {
    %c0_i32 = arith.constant 0 : i32
    %c0_i32_0 = arith.constant 0 : i32
    return %c0_i32, %arg0 : i32, i32
  }
}

</mosaic_0001>

<bundles_post_ra>
// kernel: discriminator_forward.6
= control target key start
LH: loop header
LB: loop body
LE: loop exit
PB: predicated region body
PF: predicated region fallthrough
CT: control target
= control target key end

     0   :  { %s1749_s9 = smov 0   ;;  %s1751_s10 = smov 0   ;;  %s2486_s0 = inlined_call_operand.vmem [shape: f32[4,48], index: 0, kind: input, shape index: {}]   ;;  %s2487_s1 = inlined_call_operand.vmem [shape: f32[48,8192], index: 1, kind: input, shape index: {}]   ;;  %s2488_s2 = inlined_call_operand.vmem [shape: f32[4,8192], index: 2, kind: output, shape index: {}]  }
   0x1   :  { %s1753_s11 = smov 0  }
   0x2 LB: > { %s1640_s12 = sadd.s32 4294967295, %s1732_s11   ;;  %s1766_s13 = sadd.s32 1, %s1732_s11   ;;  %s1732_s11 = sphi %s1753_s11, %s2491_s11   ;;  %s1728_s10 = sphi %s1751_s10, %s2490_s10   ;;  %s1724_s9 = sphi %s1749_s9, %s2489_s9  }
   0x3   : > { %s37_s14 = ssub.s32 %s1732_s11, %s1766_s13  ;;  %s40_s15 = sadd.s32 1, %s1728_s10 }
   0x4   : > { %p38_p0 = scmp.eq.s32.totalorder %s37_s14, 0  ;;  %p47_p1 = scmp.ne.s32.totalorder %s1728_s10, %s1724_s9 }
   0x5   : > { %p48_p2 = scmp.eq.s32.totalorder %s1732_s11, 0  ;;  %p1643_p4 = scmp.ge.s32.totalorder %s1732_s11, 2 }
   0x6   : > { %s1775_s16 = scalar_select %p38_p0, %s1728_s10, %s40_s15  }
   0x7   : > { %p49_p3 = por %p48_p2, %p47_p1  ;;  %102 = sbr.rel (%p1643_p4) target bundleno = 208 (0xd0), region = 20 }
   0xc   : > { %105 = sbr.rel (!%p49_p3) target bundleno = 208 (0xd0), region = 24  ;;  %s107_s17 = sand.u32 (%p49_p3), 1, %s1728_s10  }
   0xd   : > { %s1683_s18 = sshll.u32 (%p49_p3), %s1732_s11, 8  ;;  %s1684_s19 = smul.u32 (%p49_p3), 1536, %s107_s17 }
   0xe   : > { %s1783_s22 = scalar_lea.vmem (%p49_p3), %s2487_s1, %s1683_s18 }
   0xf   : > { %v125_v0 = vld [vmem:[%s1783_s22] sm:$0xff] (%p49_p3)  ;;  %v127_v1 = vld [vmem:[%s1783_s22 + $0x8] sm:$0xff] (%p49_p3)  ;;  %v129_v2 = vld [vmem:[%s1783_s22 + $0x10] sm:$0xff] (%p49_p3)  ;;  %s1788_s23 = scalar_lea.vmem (%p49_p3), [#allocation2], %s1684_s19 }
  0x10   : > { %126 = vst [vmem:[%s1788_s23] sm:$0xff] (%p49_p3), %v125_v0  ;;  %v131_v3 = vld [vmem:[%s1783_s22 + $0x18] sm:$0xff] (%p49_p3)  ;;  %v133_v4 = vld [vmem:[%s1783_s22 + $0x20] sm:$0xff] (%p49_p3)  ;;  %v135_v5 = vld [vmem:[%s1783_s22 + $0x28] sm:$0xff] (%p49_p3) }
  0x11   : > { %128 = vst [vmem:[%s1788_s23 + $0x8] sm:$0xff] %v127_v1  ;;  %v137_v6 = vld [vmem:[%s1783_s22 + $0x30] sm:$0xff]  ;;  %v139_v7 = vld [vmem:[%s1783_s22 + $0x38] sm:$0xff]  ;;  %v141_v8 = vld [vmem:[%s1783_s22 + $0x40] sm:$0xff] }
  0x12   : > { %130 = vst [vmem:[%s1788_s23 + $0x10] sm:$0xff] %v129_v2  ;;  %v143_v9 = vld [vmem:[%s1783_s22 + $0x48] sm:$0xff]  ;;  %v145_v10 = vld [vmem:[%s1783_s22 + $0x50] sm:$0xff]  ;;  %v147_v11 = vld [vmem:[%s1783_s22 + $0x58] sm:$0xff] }
  0x13   : > { %132 = vst [vmem:[%s1788_s23 + $0x18] sm:$0xff] %v131_v3  ;;  %v149_v12 = vld [vmem:[%s1783_s22 + $0x60] sm:$0xff]  ;;  %v151_v13 = vld [vmem:[%s1783_s22 + $0x68] sm:$0xff]  ;;  %v153_v14 = vld [vmem:[%s1783_s22 + $0x70] sm:$0xff] }
  0x14   : > { %134 = vst [vmem:[%s1788_s23 + $0x20] sm:$0xff] %v133_v4  ;;  %v155_v15 = vld [vmem:[%s1783_s22 + $0x78] sm:$0xff]  ;;  %v157_v16 = vld [vmem:[%s1783_s22 + $0x80] sm:$0xff]  ;;  %v159_v17 = vld [vmem:[%s1783_s22 + $0x88] sm:$0xff] }
  0x15   : > { %136 = vst [vmem:[%s1788_s23 + $0x28] sm:$0xff] %v135_v5  ;;  %v161_v18 = vld [vmem:[%s1783_s22 + $0x90] sm:$0xff]  ;;  %v163_v19 = vld [vmem:[%s1783_s22 + $0x98] sm:$0xff]  ;;  %v165_v20 = vld [vmem:[%s1783_s22 + $0xa0] sm:$0xff] }
  0x16   : > { %138 = vst [vmem:[%s1788_s23 + $0x30] sm:$0xff] %v137_v6  ;;  %v167_v21 = vld [vmem:[%s1783_s22 + $0xa8] sm:$0xff]  ;;  %v169_v22 = vld [vmem:[%s1783_s22 + $0xb0] sm:$0xff]  ;;  %v171_v23 = vld [vmem:[%s1783_s22 + $0xb8] sm:$0xff] }
  0x17   : > { %140 = vst [vmem:[%s1788_s23 + $0x38] sm:$0xff] %v139_v7  ;;  %v173_v24 = vld [vmem:[%s1783_s22 + $0xc0] sm:$0xff]  ;;  %v175_v25 = vld [vmem:[%s1783_s22 + $0xc8] sm:$0xff]  ;;  %v177_v26 = vld [vmem:[%s1783_s22 + $0xd0] sm:$0xff] }
  0x18   : > { %142 = vst [vmem:[%s1788_s23 + $0x40] sm:$0xff] %v141_v8  ;;  %v179_v27 = vld [vmem:[%s1783_s22 + $0xd8] sm:$0xff]  ;;  %v181_v28 = vld [vmem:[%s1783_s22 + $0xe0] sm:$0xff]  ;;  %v183_v29 = vld [vmem:[%s1783_s22 + $0xe8] sm:$0xff] }
  0x19   : > { %144 = vst [vmem:[%s1788_s23 + $0x48] sm:$0xff] %v143_v9  ;;  %v185_v30 = vld [vmem:[%s1783_s22 + $0xf0] sm:$0xff]  ;;  %v187_v31 = vld [vmem:[%s1783_s22 + $0xf8] sm:$0xff]  ;;  %v189_v32 = vld [vmem:[%s1783_s22 + $0x200] sm:$0xff] }
  0x1a   : > { %146 = vst [vmem:[%s1788_s23 + $0x50] sm:$0xff] %v145_v10  ;;  %v191_v33 = vld [vmem:[%s1783_s22 + $0x208] sm:$0xff]  ;;  %v193_v34 = vld [vmem:[%s1783_s22 + $0x210] sm:$0xff]  ;;  %v195_v35 = vld [vmem:[%s1783_s22 + $0x218] sm:$0xff] }
  0x1b   : > { %148 = vst [vmem:[%s1788_s23 + $0x58] sm:$0xff] %v147_v11  ;;  %v197_v36 = vld [vmem:[%s1783_s22 + $0x220] sm:$0xff]  ;;  %v199_v37 = vld [vmem:[%s1783_s22 + $0x228] sm:$0xff]  ;;  %v201_v38 = vld [vmem:[%s1783_s22 + $0x230] sm:$0xff] }
  0x1c   : > { %150 = vst [vmem:[%s1788_s23 + $0x60] sm:$0xff] %v149_v12  ;;  %v203_v39 = vld [vmem:[%s1783_s22 + $0x238] sm:$0xff]  ;;  %v205_v40 = vld [vmem:[%s1783_s22 + $0x240] sm:$0xff]  ;;  %v207_v41 = vld [vmem:[%s1783_s22 + $0x248] sm:$0xff] }
  0x1d   : > { %152 = vst [vmem:[%s1788_s23 + $0x68] sm:$0xff] %v151_v13  ;;  %v209_v42 = vld [vmem:[%s1783_s22 + $0x250] sm:$0xff]  ;;  %v211_v43 = vld [vmem:[%s1783_s22 + $0x258] sm:$0xff]  ;;  %v213_v44 = vld [vmem:[%s1783_s22 + $0x260] sm:$0xff] }
  0x1e   : > { %154 = vst [vmem:[%s1788_s23 + $0x70] sm:$0xff] %v153_v14  ;;  %v215_v45 = vld [vmem:[%s1783_s22 + $0x268] sm:$0xff]  ;;  %v217_v46 = vld [vmem:[%s1783_s22 + $0x270] sm:$0xff]  ;;  %v219_v47 = vld [vmem:[%s1783_s22 + $0x278] sm:$0xff] }
  0x1f   : > { %156 = vst [vmem:[%s1788_s23 + $0x78] sm:$0xff] %v155_v15  ;;  %v221_v48 = vld [vmem:[%s1783_s22 + $0x280] sm:$0xff]  ;;  %v223_v49 = vld [vmem:[%s1783_s22 + $0x288] sm:$0xff]  ;;  %v225_v50 = vld [vmem:[%s1783_s22 + $0x290] sm:$0xff] }
  0x20   : > { %158 = vst [vmem:[%s1788_s23 + $0x80] sm:$0xff] %v157_v16  ;;  %v227_v51 = vld [vmem:[%s1783_s22 + $0x298] sm:$0xff]  ;;  %v229_v52 = vld [vmem:[%s1783_s22 + $0x2a0] sm:$0xff]  ;;  %v231_v53 = vld [vmem:[%s1783_s22 + $0x2a8] sm:$0xff] }
  0x21   : > { %160 = vst [vmem:[%s1788_s23 + $0x88] sm:$0xff] %v159_v17  ;;  %v233_v54 = vld [vmem:[%s1783_s22 + $0x2b0] sm:$0xff]  ;;  %v235_v55 = vld [vmem:[%s1783_s22 + $0x2b8] sm:$0xff]  ;;  %v237_v56 = vld [vmem:[%s1783_s22 + $0x2c0] sm:$0xff] }
  0x22   : > { %162 = vst [vmem:[%s1788_s23 + $0x90] sm:$0xff] %v161_v18  ;;  %v239_v57 = vld [vmem:[%s1783_s22 + $0x2c8] sm:$0xff]  ;;  %v241_v58 = vld [vmem:[%s1783_s22 + $0x2d0] sm:$0xff]  ;;  %v243_v59 = vld [vmem:[%s1783_s22 + $0x2d8] sm:$0xff] }
  0x23   : > { %164 = vst [vmem:[%s1788_s23 + $0x98] sm:$0xff] %v163_v19  ;;  %v245_v60 = vld [vmem:[%s1783_s22 + $0x2e0] sm:$0xff]  ;;  %v247_v61 = vld [vmem:[%s1783_s22 + $0x2e8] sm:$0xff]  ;;  %v249_v62 = vld [vmem:[%s1783_s22 + $0x2f0] sm:$0xff] }
  0x24   : > { %166 = vst [vmem:[%s1788_s23 + $0xa0] sm:$0xff] %v165_v20  ;;  %v251_v63 = vld [vmem:[%s1783_s22 + $0x2f8] sm:$0xff]  ;;  %v253_v0 = vld [vmem:[%s1783_s22 + $0x400] sm:$0xff]  ;;  %v255_v1 = vld [vmem:[%s1783_s22 + $0x408] sm:$0xff] }
  0x25   : > { %168 = vst [vmem:[%s1788_s23 + $0xa8] sm:$0xff] %v167_v21  ;;  %v257_v2 = vld [vmem:[%s1783_s22 + $0x410] sm:$0xff]  ;;  %v259_v3 = vld [vmem:[%s1783_s22 + $0x418] sm:$0xff]  ;;  %v261_v4 = vld [vmem:[%s1783_s22 + $0x420] sm:$0xff] }
  0x26   : > { %170 = vst [vmem:[%s1788_s23 + $0xb0] sm:$0xff] %v169_v22  ;;  %v263_v5 = vld [vmem:[%s1783_s22 + $0x428] sm:$0xff]  ;;  %v265_v6 = vld [vmem:[%s1783_s22 + $0x430] sm:$0xff]  ;;  %v267_v7 = vld [vmem:[%s1783_s22 + $0x438] sm:$0xff] }
  0x27   : > { %172 = vst [vmem:[%s1788_s23 + $0xb8] sm:$0xff] %v171_v23  ;;  %v269_v8 = vld [vmem:[%s1783_s22 + $0x440] sm:$0xff]  ;;  %v271_v9 = vld [vmem:[%s1783_s22 + $0x448] sm:$0xff]  ;;  %v273_v10 = vld [vmem:[%s1783_s22 + $0x450] sm:$0xff] }
  0x28   : > { %174 = vst [vmem:[%s1788_s23 + $0xc0] sm:$0xff] %v173_v24  ;;  %v275_v11 = vld [vmem:[%s1783_s22 + $0x458] sm:$0xff]  ;;  %v277_v12 = vld [vmem:[%s1783_s22 + $0x460] sm:$0xff]  ;;  %v279_v13 = vld [vmem:[%s1783_s22 + $0x468] sm:$0xff] }
  0x29   : > { %176 = vst [vmem:[%s1788_s23 + $0xc8] sm:$0xff] %v175_v25  ;;  %v281_v14 = vld [vmem:[%s1783_s22 + $0x470] sm:$0xff]  ;;  %v283_v15 = vld [vmem:[%s1783_s22 + $0x478] sm:$0xff]  ;;  %v285_v16 = vld [vmem:[%s1783_s22 + $0x480] sm:$0xff] }
  0x2a   : > { %178 = vst [vmem:[%s1788_s23 + $0xd0] sm:$0xff] %v177_v26  ;;  %v287_v17 = vld [vmem:[%s1783_s22 + $0x488] sm:$0xff]  ;;  %v289_v18 = vld [vmem:[%s1783_s22 + $0x490] sm:$0xff]  ;;  %v291_v19 = vld [vmem:[%s1783_s22 + $0x498] sm:$0xff] }
  0x2b   : > { %180 = vst [vmem:[%s1788_s23 + $0xd8] sm:$0xff] %v179_v27  ;;  %v293_v20 = vld [vmem:[%s1783_s22 + $0x4a0] sm:$0xff]  ;;  %v295_v21 = vld [vmem:[%s1783_s22 + $0x4a8] sm:$0xff]  ;;  %v297_v22 = vld [vmem:[%s1783_s22 + $0x4b0] sm:$0xff] }
  0x2c   : > { %182 = vst [vmem:[%s1788_s23 + $0xe0] sm:$0xff] %v181_v28  ;;  %v299_v23 = vld [vmem:[%s1783_s22 + $0x4b8] sm:$0xff]  ;;  %v301_v24 = vld [vmem:[%s1783_s22 + $0x4c0] sm:$0xff]  ;;  %v303_v25 = vld [vmem:[%s1783_s22 + $0x4c8] sm:$0xff] }
  0x2d   : > { %184 = vst [vmem:[%s1788_s23 + $0xe8] sm:$0xff] %v183_v29  ;;  %v305_v26 = vld [vmem:[%s1783_s22 + $0x4d0] sm:$0xff]  ;;  %v307_v27 = vld [vmem:[%s1783_s22 + $0x4d8] sm:$0xff]  ;;  %v309_v28 = vld [vmem:[%s1783_s22 + $0x4e0] sm:$0xff] }
  0x2e   : > { %186 = vst [vmem:[%s1788_s23 + $0xf0] sm:$0xff] %v185_v30  ;;  %v311_v29 = vld [vmem:[%s1783_s22 + $0x4e8] sm:$0xff]  ;;  %v313_v30 = vld [vmem:[%s1783_s22 + $0x4f0] sm:$0xff] }
  0x2f   : > { %188 = vst [vmem:[%s1788_s23 + $0xf8] sm:$0xff] %v187_v31  ;;  %v315_v31 = vld [vmem:[%s1783_s22 + $0x4f8] sm:$0xff] }
  0x30   : > { %190 = vst [vmem:[%s1788_s23 + $0x100] sm:$0xff] %v189_v32  ;;  %v317_v32 = vld [vmem:[%s1783_s22 + $0x600] sm:$0xff] }
  0x31   : > { %192 = vst [vmem:[%s1788_s23 + $0x108] sm:$0xff] %v191_v33  ;;  %v319_v33 = vld [vmem:[%s1783_s22 + $0x608] sm:$0xff] }
  0x32   : > { %194 = vst [vmem:[%s1788_s23 + $0x110] sm:$0xff] %v193_v34  ;;  %v321_v34 = vld [vmem:[%s1783_s22 + $0x610] sm:$0xff] }
  0x33   : > { %196 = vst [vmem:[%s1788_s23 + $0x118] sm:$0xff] %v195_v35  ;;  %v323_v35 = vld [vmem:[%s1783_s22 + $0x618] sm:$0xff] }
  0x34   : > { %198 = vst [vmem:[%s1788_s23 + $0x120] sm:$0xff] %v197_v36  ;;  %v325_v36 = vld [vmem:[%s1783_s22 + $0x620] sm:$0xff] }
  0x35   : > { %200 = vst [vmem:[%s1788_s23 + $0x128] sm:$0xff] %v199_v37  ;;  %v327_v37 = vld [vmem:[%s1783_s22 + $0x628] sm:$0xff] }
  0x36   : > { %202 = vst [vmem:[%s1788_s23 + $0x130] sm:$0xff] %v201_v38  ;;  %v329_v38 = vld [vmem:[%s1783_s22 + $0x630] sm:$0xff] }
  0x37   : > { %204 = vst [vmem:[%s1788_s23 + $0x138] sm:$0xff] %v203_v39  ;;  %v331_v39 = vld [vmem:[%s1783_s22 + $0x638] sm:$0xff] }
  0x38   : > { %206 = vst [vmem:[%s1788_s23 + $0x140] sm:$0xff] %v205_v40  ;;  %v333_v40 = vld [vmem:[%s1783_s22 + $0x640] sm:$0xff] }
  0x39   : > { %208 = vst [vmem:[%s1788_s23 + $0x148] sm:$0xff] %v207_v41  ;;  %v335_v41 = vld [vmem:[%s1783_s22 + $0x648] sm:$0xff] }
  0x3a   : > { %210 = vst [vmem:[%s1788_s23 + $0x150] sm:$0xff] %v209_v42  ;;  %v337_v42 = vld [vmem:[%s1783_s22 + $0x650] sm:$0xff] }
  0x3b   : > { %212 = vst [vmem:[%s1788_s23 + $0x158] sm:$0xff] %v211_v43  ;;  %v339_v43 = vld [vmem:[%s1783_s22 + $0x658] sm:$0xff] }
  0x3c   : > { %214 = vst [vmem:[%s1788_s23 + $0x160] sm:$0xff] %v213_v44  ;;  %v341_v44 = vld [vmem:[%s1783_s22 + $0x660] sm:$0xff] }
  0x3d   : > { %216 = vst [vmem:[%s1788_s23 + $0x168] sm:$0xff] %v215_v45  ;;  %v343_v45 = vld [vmem:[%s1783_s22 + $0x668] sm:$0xff] }
  0x3e   : > { %218 = vst [vmem:[%s1788_s23 + $0x170] sm:$0xff] %v217_v46  ;;  %v345_v46 = vld [vmem:[%s1783_s22 + $0x670] sm:$0xff] }
  0x3f   : > { %220 = vst [vmem:[%s1788_s23 + $0x178] sm:$0xff] %v219_v47  ;;  %v347_v47 = vld [vmem:[%s1783_s22 + $0x678] sm:$0xff] }
  0x40   : > { %222 = vst [vmem:[%s1788_s23 + $0x180] sm:$0xff] %v221_v48  ;;  %v349_v48 = vld [vmem:[%s1783_s22 + $0x680] sm:$0xff] }
  0x41   : > { %224 = vst [vmem:[%s1788_s23 + $0x188] sm:$0xff] %v223_v49  ;;  %v351_v49 = vld [vmem:[%s1783_s22 + $0x688] sm:$0xff] }
  0x42   : > { %226 = vst [vmem:[%s1788_s23 + $0x190] sm:$0xff] %v225_v50  ;;  %v353_v50 = vld [vmem:[%s1783_s22 + $0x690] sm:$0xff] }
  0x43   : > { %228 = vst [vmem:[%s1788_s23 + $0x198] sm:$0xff] %v227_v51  ;;  %v355_v51 = vld [vmem:[%s1783_s22 + $0x698] sm:$0xff] }
  0x44   : > { %230 = vst [vmem:[%s1788_s23 + $0x1a0] sm:$0xff] %v229_v52  ;;  %v357_v52 = vld [vmem:[%s1783_s22 + $0x6a0] sm:$0xff] }
  0x45   : > { %232 = vst [vmem:[%s1788_s23 + $0x1a8] sm:$0xff] %v231_v53  ;;  %v359_v53 = vld [vmem:[%s1783_s22 + $0x6a8] sm:$0xff] }
  0x46   : > { %234 = vst [vmem:[%s1788_s23 + $0x1b0] sm:$0xff] %v233_v54  ;;  %v361_v54 = vld [vmem:[%s1783_s22 + $0x6b0] sm:$0xff] }
  0x47   : > { %236 = vst [vmem:[%s1788_s23 + $0x1b8] sm:$0xff] %v235_v55  ;;  %v363_v55 = vld [vmem:[%s1783_s22 + $0x6b8] sm:$0xff] }
  0x48   : > { %238 = vst [vmem:[%s1788_s23 + $0x1c0] sm:$0xff] %v237_v56  ;;  %v365_v56 = vld [vmem:[%s1783_s22 + $0x6c0] sm:$0xff] }
  0x49   : > { %240 = vst [vmem:[%s1788_s23 + $0x1c8] sm:$0xff] %v239_v57  ;;  %v367_v57 = vld [vmem:[%s1783_s22 + $0x6c8] sm:$0xff] }
  0x4a   : > { %242 = vst [vmem:[%s1788_s23 + $0x1d0] sm:$0xff] %v241_v58  ;;  %v369_v58 = vld [vmem:[%s1783_s22 + $0x6d0] sm:$0xff] }
  0x4b   : > { %244 = vst [vmem:[%s1788_s23 + $0x1d8] sm:$0xff] %v243_v59  ;;  %v371_v59 = vld [vmem:[%s1783_s22 + $0x6d8] sm:$0xff] }
  0x4c   : > { %246 = vst [vmem:[%s1788_s23 + $0x1e0] sm:$0xff] %v245_v60  ;;  %v373_v60 = vld [vmem:[%s1783_s22 + $0x6e0] sm:$0xff] }
  0x4d   : > { %248 = vst [vmem:[%s1788_s23 + $0x1e8] sm:$0xff] %v247_v61  ;;  %v375_v61 = vld [vmem:[%s1783_s22 + $0x6e8] sm:$0xff] }
  0x4e   : > { %250 = vst [vmem:[%s1788_s23 + $0x1f0] sm:$0xff] %v249_v62  ;;  %v377_v62 = vld [vmem:[%s1783_s22 + $0x6f0] sm:$0xff] }
  0x4f   : > { %252 = vst [vmem:[%s1788_s23 + $0x1f8] sm:$0xff] %v251_v63  ;;  %v379_v63 = vld [vmem:[%s1783_s22 + $0x6f8] sm:$0xff] }
  0x50   : > { %254 = vst [vmem:[%s1788_s23 + $0x200] sm:$0xff] %v253_v0  ;;  %v381_v0 = vld [vmem:[%s1783_s22 + $0x800] sm:$0xff] }
  0x51   : > { %256 = vst [vmem:[%s1788_s23 + $0x208] sm:$0xff] %v255_v1  ;;  %v383_v1 = vld [vmem:[%s1783_s22 + $0x808] sm:$0xff] }
  0x52   : > { %258 = vst [vmem:[%s1788_s23 + $0x210] sm:$0xff] %v257_v2  ;;  %v385_v2 = vld [vmem:[%s1783_s22 + $0x810] sm:$0xff] }
  0x53   : > { %260 = vst [vmem:[%s1788_s23 + $0x218] sm:$0xff] %v259_v3  ;;  %v387_v3 = vld [vmem:[%s1783_s22 + $0x818] sm:$0xff] }
  0x54   : > { %262 = vst [vmem:[%s1788_s23 + $0x220] sm:$0xff] %v261_v4  ;;  %v389_v4 = vld [vmem:[%s1783_s22 + $0x820] sm:$0xff] }
  0x55   : > { %264 = vst [vmem:[%s1788_s23 + $0x228] sm:$0xff] %v263_v5  ;;  %v391_v5 = vld [vmem:[%s1783_s22 + $0x828] sm:$0xff] }
  0x56   : > { %266 = vst [vmem:[%s1788_s23 + $0x230] sm:$0xff] %v265_v6  ;;  %v393_v6 = vld [vmem:[%s1783_s22 + $0x830] sm:$0xff] }
  0x57   : > { %268 = vst [vmem:[%s1788_s23 + $0x238] sm:$0xff] %v267_v7  ;;  %v395_v7 = vld [vmem:[%s1783_s22 + $0x838] sm:$0xff] }
  0x58   : > { %270 = vst [vmem:[%s1788_s23 + $0x240] sm:$0xff] %v269_v8  ;;  %v397_v8 = vld [vmem:[%s1783_s22 + $0x840] sm:$0xff] }
  0x59   : > { %272 = vst [vmem:[%s1788_s23 + $0x248] sm:$0xff] %v271_v9  ;;  %v399_v9 = vld [vmem:[%s1783_s22 + $0x848] sm:$0xff] }
  0x5a   : > { %274 = vst [vmem:[%s1788_s23 + $0x250] sm:$0xff] %v273_v10  ;;  %v401_v10 = vld [vmem:[%s1783_s22 + $0x850] sm:$0xff] }
  0x5b   : > { %276 = vst [vmem:[%s1788_s23 + $0x258] sm:$0xff] %v275_v11  ;;  %v403_v11 = vld [vmem:[%s1783_s22 + $0x858] sm:$0xff] }
  0x5c   : > { %278 = vst [vmem:[%s1788_s23 + $0x260] sm:$0xff] %v277_v12  ;;  %v405_v12 = vld [vmem:[%s1783_s22 + $0x860] sm:$0xff] }
  0x5d   : > { %280 = vst [vmem:[%s1788_s23 + $0x268] sm:$0xff] %v279_v13  ;;  %v407_v13 = vld [vmem:[%s1783_s22 + $0x868] sm:$0xff] }
  0x5e   : > { %282 = vst [vmem:[%s1788_s23 + $0x270] sm:$0xff] %v281_v14  ;;  %v409_v14 = vld [vmem:[%s1783_s22 + $0x870] sm:$0xff] }
  0x5f   : > { %284 = vst [vmem:[%s1788_s23 + $0x278] sm:$0xff] %v283_v15  ;;  %v411_v15 = vld [vmem:[%s1783_s22 + $0x878] sm:$0xff] }
  0x60   : > { %286 = vst [vmem:[%s1788_s23 + $0x280] sm:$0xff] %v285_v16  ;;  %v413_v16 = vld [vmem:[%s1783_s22 + $0x880] sm:$0xff] }
  0x61   : > { %288 = vst [vmem:[%s1788_s23 + $0x288] sm:$0xff] %v287_v17  ;;  %v415_v17 = vld [vmem:[%s1783_s22 + $0x888] sm:$0xff] }
  0x62   : > { %290 = vst [vmem:[%s1788_s23 + $0x290] sm:$0xff] %v289_v18  ;;  %v417_v18 = vld [vmem:[%s1783_s22 + $0x890] sm:$0xff] }
  0x63   : > { %292 = vst [vmem:[%s1788_s23 + $0x298] sm:$0xff] %v291_v19  ;;  %v419_v19 = vld [vmem:[%s1783_s22 + $0x898] sm:$0xff] }
  0x64   : > { %294 = vst [vmem:[%s1788_s23 + $0x2a0] sm:$0xff] %v293_v20  ;;  %v421_v20 = vld [vmem:[%s1783_s22 + $0x8a0] sm:$0xff] }
  0x65   : > { %296 = vst [vmem:[%s1788_s23 + $0x2a8] sm:$0xff] %v295_v21  ;;  %v423_v21 = vld [vmem:[%s1783_s22 + $0x8a8] sm:$0xff] }
  0x66   : > { %298 = vst [vmem:[%s1788_s23 + $0x2b0] sm:$0xff] %v297_v22  ;;  %v425_v22 = vld [vmem:[%s1783_s22 + $0x8b0] sm:$0xff] }
  0x67   : > { %300 = vst [vmem:[%s1788_s23 + $0x2b8] sm:$0xff] %v299_v23  ;;  %v427_v23 = vld [vmem:[%s1783_s22 + $0x8b8] sm:$0xff] }
  0x68   : > { %302 = vst [vmem:[%s1788_s23 + $0x2c0] sm:$0xff] %v301_v24  ;;  %v429_v24 = vld [vmem:[%s1783_s22 + $0x8c0] sm:$0xff] }
  0x69   : > { %304 = vst [vmem:[%s1788_s23 + $0x2c8] sm:$0xff] %v303_v25  ;;  %v431_v25 = vld [vmem:[%s1783_s22 + $0x8c8] sm:$0xff] }
  0x6a   : > { %306 = vst [vmem:[%s1788_s23 + $0x2d0] sm:$0xff] %v305_v26  ;;  %v433_v26 = vld [vmem:[%s1783_s22 + $0x8d0] sm:$0xff] }
  0x6b   : > { %308 = vst [vmem:[%s1788_s23 + $0x2d8] sm:$0xff] %v307_v27  ;;  %v435_v27 = vld [vmem:[%s1783_s22 + $0x8d8] sm:$0xff] }
  0x6c   : > { %310 = vst [vmem:[%s1788_s23 + $0x2e0] sm:$0xff] %v309_v28  ;;  %v437_v28 = vld [vmem:[%s1783_s22 + $0x8e0] sm:$0xff] }
  0x6d   : > { %312 = vst [vmem:[%s1788_s23 + $0x2e8] sm:$0xff] %v311_v29  ;;  %v439_v29 = vld [vmem:[%s1783_s22 + $0x8e8] sm:$0xff] }
  0x6e   : > { %314 = vst [vmem:[%s1788_s23 + $0x2f0] sm:$0xff] %v313_v30  ;;  %v441_v30 = vld [vmem:[%s1783_s22 + $0x8f0] sm:$0xff] }
  0x6f   : > { %316 = vst [vmem:[%s1788_s23 + $0x2f8] sm:$0xff] %v315_v31  ;;  %v443_v31 = vld [vmem:[%s1783_s22 + $0x8f8] sm:$0xff] }
  0x70   : > { %318 = vst [vmem:[%s1788_s23 + $0x300] sm:$0xff] %v317_v32  ;;  %v445_v32 = vld [vmem:[%s1783_s22 + $0xa00] sm:$0xff] }
  0x71   : > { %320 = vst [vmem:[%s1788_s23 + $0x308] sm:$0xff] %v319_v33  ;;  %v447_v33 = vld [vmem:[%s1783_s22 + $0xa08] sm:$0xff] }
  0x72   : > { %322 = vst [vmem:[%s1788_s23 + $0x310] sm:$0xff] %v321_v34  ;;  %v449_v34 = vld [vmem:[%s1783_s22 + $0xa10] sm:$0xff] }
  0x73   : > { %324 = vst [vmem:[%s1788_s23 + $0x318] sm:$0xff] %v323_v35  ;;  %v451_v35 = vld [vmem:[%s1783_s22 + $0xa18] sm:$0xff] }
  0x74   : > { %326 = vst [vmem:[%s1788_s23 + $0x320] sm:$0xff] %v325_v36  ;;  %v453_v36 = vld [vmem:[%s1783_s22 + $0xa20] sm:$0xff] }
  0x75   : > { %328 = vst [vmem:[%s1788_s23 + $0x328] sm:$0xff] %v327_v37  ;;  %v455_v37 = vld [vmem:[%s1783_s22 + $0xa28] sm:$0xff] }
  0x76   : > { %330 = vst [vmem:[%s1788_s23 + $0x330] sm:$0xff] %v329_v38  ;;  %v457_v38 = vld [vmem:[%s1783_s22 + $0xa30] sm:$0xff] }
  0x77   : > { %332 = vst [vmem:[%s1788_s23 + $0x338] sm:$0xff] %v331_v39  ;;  %v459_v39 = vld [vmem:[%s1783_s22 + $0xa38] sm:$0xff] }
  0x78   : > { %334 = vst [vmem:[%s1788_s23 + $0x340] sm:$0xff] %v333_v40  ;;  %v461_v40 = vld [vmem:[%s1783_s22 + $0xa40] sm:$0xff] }
  0x79   : > { %336 = vst [vmem:[%s1788_s23 + $0x348] sm:$0xff] %v335_v41  ;;  %v463_v41 = vld [vmem:[%s1783_s22 + $0xa48] sm:$0xff] }
  0x7a   : > { %338 = vst [vmem:[%s1788_s23 + $0x350] sm:$0xff] %v337_v42  ;;  %v465_v42 = vld [vmem:[%s1783_s22 + $0xa50] sm:$0xff] }
  0x7b   : > { %340 = vst [vmem:[%s1788_s23 + $0x358] sm:$0xff] %v339_v43  ;;  %v467_v43 = vld [vmem:[%s1783_s22 + $0xa58] sm:$0xff] }
  0x7c   : > { %342 = vst [vmem:[%s1788_s23 + $0x360] sm:$0xff] %v341_v44  ;;  %v469_v44 = vld [vmem:[%s1783_s22 + $0xa60] sm:$0xff] }
  0x7d   : > { %344 = vst [vmem:[%s1788_s23 + $0x368] sm:$0xff] %v343_v45  ;;  %v471_v45 = vld [vmem:[%s1783_s22 + $0xa68] sm:$0xff] }
  0x7e   : > { %346 = vst [vmem:[%s1788_s23 + $0x370] sm:$0xff] %v345_v46  ;;  %v473_v46 = vld [vmem:[%s1783_s22 + $0xa70] sm:$0xff] }
  0x7f   : > { %348 = vst [vmem:[%s1788_s23 + $0x378] sm:$0xff] %v347_v47  ;;  %v475_v47 = vld [vmem:[%s1783_s22 + $0xa78] sm:$0xff] }
  0x80   : > { %350 = vst [vmem:[%s1788_s23 + $0x380] sm:$0xff] %v349_v48  ;;  %v477_v48 = vld [vmem:[%s1783_s22 + $0xa80] sm:$0xff] }
  0x81   : > { %352 = vst [vmem:[%s1788_s23 + $0x388] sm:$0xff] %v351_v49  ;;  %v479_v49 = vld [vmem:[%s1783_s22 + $0xa88] sm:$0xff] }
  0x82   : > { %354 = vst [vmem:[%s1788_s23 + $0x390] sm:$0xff] %v353_v50  ;;  %v481_v50 = vld [vmem:[%s1783_s22 + $0xa90] sm:$0xff] }
  0x83   : > { %356 = vst [vmem:[%s1788_s23 + $0x398] sm:$0xff] %v355_v51  ;;  %v483_v51 = vld [vmem:[%s1783_s22 + $0xa98] sm:$0xff] }
  0x84   : > { %358 = vst [vmem:[%s1788_s23 + $0x3a0] sm:$0xff] %v357_v52  ;;  %v485_v52 = vld [vmem:[%s1783_s22 + $0xaa0] sm:$0xff] }
  0x85   : > { %360 = vst [vmem:[%s1788_s23 + $0x3a8] sm:$0xff] %v359_v53  ;;  %v487_v53 = vld [vmem:[%s1783_s22 + $0xaa8] sm:$0xff] }
  0x86   : > { %362 = vst [vmem:[%s1788_s23 + $0x3b0] sm:$0xff] %v361_v54  ;;  %v489_v54 = vld [vmem:[%s1783_s22 + $0xab0] sm:$0xff] }
  0x87   : > { %364 = vst [vmem:[%s1788_s23 + $0x3b8] sm:$0xff] %v363_v55  ;;  %v491_v55 = vld [vmem:[%s1783_s22 + $0xab8] sm:$0xff] }
  0x88   : > { %366 = vst [vmem:[%s1788_s23 + $0x3c0] sm:$0xff] %v365_v56  ;;  %v493_v56 = vld [vmem:[%s1783_s22 + $0xac0] sm:$0xff] }
  0x89   : > { %368 = vst [vmem:[%s1788_s23 + $0x3c8] sm:$0xff] %v367_v57  ;;  %v495_v57 = vld [vmem:[%s1783_s22 + $0xac8] sm:$0xff] }
  0x8a   : > { %370 = vst [vmem:[%s1788_s23 + $0x3d0] sm:$0xff] %v369_v58  ;;  %v497_v58 = vld [vmem:[%s1783_s22 + $0xad0] sm:$0xff] }
  0x8b   : > { %372 = vst [vmem:[%s1788_s23 + $0x3d8] sm:$0xff] %v371_v59  ;;  %v499_v59 = vld [vmem:[%s1783_s22 + $0xad8] sm:$0xff] }
  0x8c   : > { %374 = vst [vmem:[%s1788_s23 + $0x3e0] sm:$0xff] %v373_v60  ;;  %v501_v60 = vld [vmem:[%s1783_s22 + $0xae0] sm:$0xff] }
  0x8d   : > { %376 = vst [vmem:[%s1788_s23 + $0x3e8] sm:$0xff] %v375_v61  ;;  %v503_v61 = vld [vmem:[%s1783_s22 + $0xae8] sm:$0xff] }
  0x8e   : > { %378 = vst [vmem:[%s1788_s23 + $0x3f0] sm:$0xff] %v377_v62  ;;  %v505_v62 = vld [vmem:[%s1783_s22 + $0xaf0] sm:$0xff] }
  0x8f   : > { %380 = vst [vmem:[%s1788_s23 + $0x3f8] sm:$0xff] %v379_v63  ;;  %v507_v63 = vld [vmem:[%s1783_s22 + $0xaf8] sm:$0xff] }
  0x90   : > { %382 = vst [vmem:[%s1788_s23 + $0x400] sm:$0xff] %v381_v0 }
  0x91   : > { %384 = vst [vmem:[%s1788_s23 + $0x408] sm:$0xff] %v383_v1 }
  0x92   : > { %386 = vst [vmem:[%s1788_s23 + $0x410] sm:$0xff] %v385_v2 }
  0x93   : > { %388 = vst [vmem:[%s1788_s23 + $0x418] sm:$0xff] %v387_v3 }
  0x94   : > { %390 = vst [vmem:[%s1788_s23 + $0x420] sm:$0xff] %v389_v4 }
  0x95   : > { %392 = vst [vmem:[%s1788_s23 + $0x428] sm:$0xff] %v391_v5 }
  0x96   : > { %394 = vst [vmem:[%s1788_s23 + $0x430] sm:$0xff] %v393_v6 }
  0x97   : > { %396 = vst [vmem:[%s1788_s23 + $0x438] sm:$0xff] %v395_v7 }
  0x98   : > { %398 = vst [vmem:[%s1788_s23 + $0x440] sm:$0xff] %v397_v8 }
  0x99   : > { %400 = vst [vmem:[%s1788_s23 + $0x448] sm:$0xff] %v399_v9 }
  0x9a   : > { %402 = vst [vmem:[%s1788_s23 + $0x450] sm:$0xff] %v401_v10 }
  0x9b   : > { %404 = vst [vmem:[%s1788_s23 + $0x458] sm:$0xff] %v403_v11 }
  0x9c   : > { %406 = vst [vmem:[%s1788_s23 + $0x460] sm:$0xff] %v405_v12 }
  0x9d   : > { %408 = vst [vmem:[%s1788_s23 + $0x468] sm:$0xff] %v407_v13 }
  0x9e   : > { %410 = vst [vmem:[%s1788_s23 + $0x470] sm:$0xff] %v409_v14 }
  0x9f   : > { %412 = vst [vmem:[%s1788_s23 + $0x478] sm:$0xff] %v411_v15 }
  0xa0   : > { %414 = vst [vmem:[%s1788_s23 + $0x480] sm:$0xff] %v413_v16 }
  0xa1   : > { %416 = vst [vmem:[%s1788_s23 + $0x488] sm:$0xff] %v415_v17 }
  0xa2   : > { %418 = vst [vmem:[%s1788_s23 + $0x490] sm:$0xff] %v417_v18 }
  0xa3   : > { %420 = vst [vmem:[%s1788_s23 + $0x498] sm:$0xff] %v419_v19 }
  0xa4   : > { %422 = vst [vmem:[%s1788_s23 + $0x4a0] sm:$0xff] %v421_v20 }
  0xa5   : > { %424 = vst [vmem:[%s1788_s23 + $0x4a8] sm:$0xff] %v423_v21 }
  0xa6   : > { %426 = vst [vmem:[%s1788_s23 + $0x4b0] sm:$0xff] %v425_v22 }
  0xa7   : > { %428 = vst [vmem:[%s1788_s23 + $0x4b8] sm:$0xff] %v427_v23 }
  0xa8   : > { %430 = vst [vmem:[%s1788_s23 + $0x4c0] sm:$0xff] %v429_v24 }
  0xa9   : > { %432 = vst [vmem:[%s1788_s23 + $0x4c8] sm:$0xff] %v431_v25 }
  0xaa   : > { %434 = vst [vmem:[%s1788_s23 + $0x4d0] sm:$0xff] %v433_v26 }
  0xab   : > { %436 = vst [vmem:[%s1788_s23 + $0x4d8] sm:$0xff] %v435_v27 }
  0xac   : > { %438 = vst [vmem:[%s1788_s23 + $0x4e0] sm:$0xff] %v437_v28 }
  0xad   : > { %440 = vst [vmem:[%s1788_s23 + $0x4e8] sm:$0xff] %v439_v29 }
  0xae   : > { %442 = vst [vmem:[%s1788_s23 + $0x4f0] sm:$0xff] %v441_v30 }
  0xaf   : > { %444 = vst [vmem:[%s1788_s23 + $0x4f8] sm:$0xff] %v443_v31 }
  0xb0   : > { %446 = vst [vmem:[%s1788_s23 + $0x500] sm:$0xff] %v445_v32 }
  0xb1   : > { %448 = vst [vmem:[%s1788_s23 + $0x508] sm:$0xff] %v447_v33 }
  0xb2   : > { %450 = vst [vmem:[%s1788_s23 + $0x510] sm:$0xff] %v449_v34 }
  0xb3   : > { %452 = vst [vmem:[%s1788_s23 + $0x518] sm:$0xff] %v451_v35 }
  0xb4   : > { %454 = vst [vmem:[%s1788_s23 + $0x520] sm:$0xff] %v453_v36 }
  0xb5   : > { %456 = vst [vmem:[%s1788_s23 + $0x528] sm:$0xff] %v455_v37 }
  0xb6   : > { %458 = vst [vmem:[%s1788_s23 + $0x530] sm:$0xff] %v457_v38 }
  0xb7   : > { %460 = vst [vmem:[%s1788_s23 + $0x538] sm:$0xff] %v459_v39 }
  0xb8   : > { %462 = vst [vmem:[%s1788_s23 + $0x540] sm:$0xff] %v461_v40 }
  0xb9   : > { %464 = vst [vmem:[%s1788_s23 + $0x548] sm:$0xff] %v463_v41 }
  0xba   : > { %466 = vst [vmem:[%s1788_s23 + $0x550] sm:$0xff] %v465_v42 }
  0xbb   : > { %468 = vst [vmem:[%s1788_s23 + $0x558] sm:$0xff] %v467_v43 }
  0xbc   : > { %470 = vst [vmem:[%s1788_s23 + $0x560] sm:$0xff] %v469_v44 }
  0xbd   : > { %472 = vst [vmem:[%s1788_s23 + $0x568] sm:$0xff] %v471_v45 }
  0xbe   : > { %474 = vst [vmem:[%s1788_s23 + $0x570] sm:$0xff] %v473_v46 }
  0xbf   : > { %476 = vst [vmem:[%s1788_s23 + $0x578] sm:$0xff] %v475_v47 }
  0xc0   : > { %478 = vst [vmem:[%s1788_s23 + $0x580] sm:$0xff] %v477_v48 }
  0xc1   : > { %480 = vst [vmem:[%s1788_s23 + $0x588] sm:$0xff] %v479_v49 }
  0xc2   : > { %482 = vst [vmem:[%s1788_s23 + $0x590] sm:$0xff] %v481_v50 }
  0xc3   : > { %484 = vst [vmem:[%s1788_s23 + $0x598] sm:$0xff] %v483_v51 }
  0xc4   : > { %486 = vst [vmem:[%s1788_s23 + $0x5a0] sm:$0xff] %v485_v52 }
  0xc5   : > { %488 = vst [vmem:[%s1788_s23 + $0x5a8] sm:$0xff] %v487_v53 }
  0xc6   : > { %490 = vst [vmem:[%s1788_s23 + $0x5b0] sm:$0xff] %v489_v54 }
  0xc7   : > { %492 = vst [vmem:[%s1788_s23 + $0x5b8] sm:$0xff] %v491_v55 }
  0xc8   : > { %494 = vst [vmem:[%s1788_s23 + $0x5c0] sm:$0xff] %v493_v56 }
  0xc9   : > { %496 = vst [vmem:[%s1788_s23 + $0x5c8] sm:$0xff] %v495_v57 }
  0xca   : > { %498 = vst [vmem:[%s1788_s23 + $0x5d0] sm:$0xff] %v497_v58 }
  0xcb   : > { %500 = vst [vmem:[%s1788_s23 + $0x5d8] sm:$0xff] %v499_v59 }
  0xcc   : > { %502 = vst [vmem:[%s1788_s23 + $0x5e0] sm:$0xff] %v501_v60 }
  0xcd   : > { %504 = vst [vmem:[%s1788_s23 + $0x5e8] sm:$0xff] %v503_v61 }
  0xce   : > { %506 = vst [vmem:[%s1788_s23 + $0x5f0] sm:$0xff] %v505_v62 }
  0xcf   : > { %508 = vst [vmem:[%s1788_s23 + $0x5f8] sm:$0xff] %v507_v63 }
  0xd0 PF: > { %p1646_p5 = scmp.ge.s32.totalorder %s1732_s11, 1  ;;  %p513_p6 = scmp.lt.s32.totalorder %s1732_s11, 3 }
  0xd2   : > { %p514_p7 = pnand %p1646_p5, %p513_p6 }
  0xd3   : > { %s520_s24 = sand.u32 (!%p514_p7), 1, %s1724_s9   ;;  %s1647_s29 = sshll.u32 (!%p514_p7), %s1640_s12, 5 }
  0xd4   : > { %517 = sbr.rel (%p514_p7) target bundleno = 465 (0x1d1), region = 47  ;;  %p543_p8 = scmp.lt.s32.totalorder (!%p514_p7), %s1647_s29, 63 }
  0xd5   : > { %s1685_s25 = smul.u32 (!%p514_p7), 1536, %s520_s24 }
  0xd7   : > { %s2174_s26 = scalar_lea.vmem (!%p514_p7), [#allocation2], %s1685_s25 }
  0xd9   : > { %v711_v0 = vld [vmem:[%s2174_s26 + $0x510] sm:$0xff]  ;;  %v712_v1 = vld [vmem:[%s2174_s26 + $0x518] sm:$0xff]  ;;  %v710_v4 = vld [vmem:[%s2174_s26 + $0x508] sm:$0xff]  ;;  %vm741_vm0 = vcmask 392192   ;;  %s2493_s29 = smov (!%p543_p8, %s1647_s29), 63  ;;  %vm1529_vm3 = vcmask 1043456  }
  0xda   : > { %v679_v2 = vld [vmem:[%s2174_s26 + $0x410] sm:$0xff]  ;;  %795 = vmatpush.msra.mxu2 %v711_v0  ;;  %815 = vmatpush.msra.mxu3 %v712_v1  ;;  %v680_v3 = vld [vmem:[%s2174_s26 + $0x418] sm:$0xff]  ;;  %v709_v7 = vld [vmem:[%s2174_s26 + $0x500] sm:$0xff]  ;;  %s1648_s30 = sshll.u32 %s2493_s29, 2 }
  0xdb   : > { %v647_v5 = vld [vmem:[%s2174_s26 + $0x310] sm:$0xff]  ;;  %775 = vmatpush.msra.mxu1 %v710_v4  ;;  %v648_v6 = vld [vmem:[%s2174_s26 + $0x318] sm:$0xff]  ;;  %v678_v8 = vld [vmem:[%s2174_s26 + $0x408] sm:$0xff]  ;;  %755 = vmatpush.msra.mxu0 %v709_v7  ;;  %s2442_s5 = scalar_lea.vmem %s2488_s2, %s1648_s30 }
  0xdc   : > { %796 = vmatpush.msra.mxu2 %v679_v2  ;;  %816 = vmatpush.msra.mxu3 %v680_v3  ;;  %v677_v9 = vld [vmem:[%s2174_s26 + $0x400] sm:$0xff]  ;;  %v615_v10 = vld [vmem:[%s2174_s26 + $0x210] sm:$0xff]  ;;  %v616_v11 = vld [vmem:[%s2174_s26 + $0x218] sm:$0xff] }
  0xdd   : > { %776 = vmatpush.msra.mxu1 %v678_v8  ;;  %v646_v12 = vld [vmem:[%s2174_s26 + $0x308] sm:$0xff]  ;;  %v645_v13 = vld [vmem:[%s2174_s26 + $0x300] sm:$0xff]  ;;  %756 = vmatpush.msra.mxu0 %v677_v9  ;;  %v583_v15 = vld [vmem:[%s2174_s26 + $0x110] sm:$0xff] }
  0xde   : > { %797 = vmatpush.msra.mxu2 %v647_v5  ;;  %817 = vmatpush.msra.mxu3 %v648_v6  ;;  %v614_v14 = vld [vmem:[%s2174_s26 + $0x208] sm:$0xff]  ;;  %v584_v16 = vld [vmem:[%s2174_s26 + $0x118] sm:$0xff]  ;;  %v613_v17 = vld [vmem:[%s2174_s26 + $0x200] sm:$0xff] }
  0xdf   : > { %777 = vmatpush.msra.mxu1 %v646_v12  ;;  %v582_v18 = vld [vmem:[%s2174_s26 + $0x108] sm:$0xff]  ;;  %757 = vmatpush.msra.mxu0 %v645_v13  ;;  %v551_v19 = vld [vmem:[%s2174_s26 + $0x10] sm:$0xff]  ;;  %v552_v20 = vld [vmem:[%s2174_s26 + $0x18] sm:$0xff] }
  0xe0   : > { %798 = vmatpush.msra.mxu2 %v615_v10  ;;  %818 = vmatpush.msra.mxu3 %v616_v11  ;;  %v715_v21 = vld [vmem:[%s2174_s26 + $0x530] sm:$0xff]  ;;  %v716_v22 = vld [vmem:[%s2174_s26 + $0x538] sm:$0xff]  ;;  %v581_v23 = vld [vmem:[%s2174_s26 + $0x100] sm:$0xff] }
  0xe1   : > { %778 = vmatpush.msra.mxu1 %v614_v14  ;;  %758 = vmatpush.msra.mxu0 %v613_v17  ;;  %v550_v24 = vld [vmem:[%s2174_s26 + $0x8] sm:$0xff]  ;;  %v683_v25 = vld [vmem:[%s2174_s26 + $0x430] sm:$0xff]  ;;  %v684_v26 = vld [vmem:[%s2174_s26 + $0x438] sm:$0xff] }
  0xe2   : > { %799 = vmatpush.msra.mxu2 %v583_v15  ;;  %819 = vmatpush.msra.mxu3 %v584_v16  ;;  %v714_v27 = vld [vmem:[%s2174_s26 + $0x528] sm:$0xff]  ;;  %v549_v28 = vld [vmem:[%s2174_s26] sm:$0xff]  ;;  %v651_v29 = vld [vmem:[%s2174_s26 + $0x330] sm:$0xff] }
  0xe3   : > { %779 = vmatpush.msra.mxu1 %v582_v18  ;;  %759 = vmatpush.msra.mxu0 %v581_v23  ;;  %v652_v30 = vld [vmem:[%s2174_s26 + $0x338] sm:$0xff]  ;;  %v713_v31 = vld [vmem:[%s2174_s26 + $0x520] sm:$0xff]  ;;  %v682_v32 = vld [vmem:[%s2174_s26 + $0x428] sm:$0xff] }
  0xe4   : > { %800 = vmatpush.msra.mxu2 %v551_v19  ;;  %820 = vmatpush.msra.mxu3 %v552_v20  ;;  %v619_v33 = vld [vmem:[%s2174_s26 + $0x230] sm:$0xff]  ;;  %v620_v34 = vld [vmem:[%s2174_s26 + $0x238] sm:$0xff]  ;;  %v681_v35 = vld [vmem:[%s2174_s26 + $0x420] sm:$0xff] }
  0xe5   : > { %780 = vmatpush.msra.mxu1 %v550_v24  ;;  %760 = vmatpush.msra.mxu0 %v549_v28  ;;  %v650_v36 = vld [vmem:[%s2174_s26 + $0x328] sm:$0xff]  ;;  %v587_v37 = vld [vmem:[%s2174_s26 + $0x130] sm:$0xff]  ;;  %v588_v38 = vld [vmem:[%s2174_s26 + $0x138] sm:$0xff] }
  0xe6   : > { %875 = vmatpush.msrb.mxu2 %v715_v21  ;;  %895 = vmatpush.msrb.mxu3 %v716_v22  ;;  %v2218_v39 = vld [vmem:[%s2486_s0] sm:$0xf]  ;;  %v618_v41 = vld [vmem:[%s2174_s26 + $0x228] sm:$0xff]  ;;  %v555_v42 = vld [vmem:[%s2174_s26 + $0x30] sm:$0xff] }
  0xe7   : > { %855 = vmatpush.msrb.mxu1 %v714_v27  ;;  %835 = vmatpush.msrb.mxu0 %v713_v31  ;;  %v649_v40 = vld [vmem:[%s2174_s26 + $0x320] sm:$0xff]  ;;  %v556_v43 = vld [vmem:[%s2174_s26 + $0x38] sm:$0xff]  ;;  %v719_v44 = vld [vmem:[%s2174_s26 + $0x550] sm:$0xff] }
  0xe8   : > { %876 = vmatpush.msrb.mxu2 %v683_v25  ;;  %896 = vmatpush.msrb.mxu3 %v684_v26  ;;  %v720_v45 = vld [vmem:[%s2174_s26 + $0x558] sm:$0xff]  ;;  %v617_v46 = vld [vmem:[%s2174_s26 + $0x220] sm:$0xff]  ;;  %v586_v47 = vld [vmem:[%s2174_s26 + $0x128] sm:$0xff] }
  0xe9   : > { %856 = vmatpush.msrb.mxu1 %v682_v32  ;;  %836 = vmatpush.msrb.mxu0 %v681_v35  ;;  %v687_v48 = vld [vmem:[%s2174_s26 + $0x450] sm:$0xff]  ;;  %v688_v49 = vld [vmem:[%s2174_s26 + $0x458] sm:$0xff]  ;;  %v585_v50 = vld [vmem:[%s2174_s26 + $0x120] sm:$0xff] }
  0xea   : > { %877 = vmatpush.msrb.mxu2 %v651_v29  ;;  %897 = vmatpush.msrb.mxu3 %v652_v30  ;;  %v554_v51 = vld [vmem:[%s2174_s26 + $0x28] sm:$0xff]  ;;  %v655_v52 = vld [vmem:[%s2174_s26 + $0x350] sm:$0xff]  ;;  %v656_v54 = vld [vmem:[%s2174_s26 + $0x358] sm:$0xff] }
  0xeb   : > { %857 = vmatpush.msrb.mxu1 %v650_v36  ;;  %1652 = vmatmul.msk.f32.vlgmr.msra.gmra.mxu3 %vm741_vm0, %v2218_v39  ;;  %v718_v53 = vld [vmem:[%s2174_s26 + $0x548] sm:$0xff]  ;;  %v553_v55 = vld [vmem:[%s2174_s26 + $0x20] sm:$0xff]  ;;  %v623_v56 = vld [vmem:[%s2174_s26 + $0x250] sm:$0xff] }
  0xec   : > { %878 = vmatpush.msrb.mxu2 %v619_v33  ;;  %898 = vmatpush.msrb.mxu3 %v620_v34  ;;  %v686_v57 = vld [vmem:[%s2174_s26 + $0x448] sm:$0xff]  ;;  %v717_v58 = vld [vmem:[%s2174_s26 + $0x540] sm:$0xff]  ;;  %v624_v59 = vld [vmem:[%s2174_s26 + $0x258] sm:$0xff] }
  0xed   : > { %837 = vmatpush.msrb.mxu0 %v649_v40  ;;  %858 = vmatpush.msrb.mxu1 %v618_v41  ;;  %v654_v60 = vld [vmem:[%s2174_s26 + $0x348] sm:$0xff]  ;;  %v591_v61 = vld [vmem:[%s2174_s26 + $0x150] sm:$0xff]  ;;  %v685_v62 = vld [vmem:[%s2174_s26 + $0x440] sm:$0xff] }
  0xee   : > { %879 = vmatpush.msrb.mxu2 %v587_v37  ;;  %899 = vmatpush.msrb.mxu3 %v588_v38  ;;  %v592_v63 = vld [vmem:[%s2174_s26 + $0x158] sm:$0xff]  ;;  %v622_v0 = vld [vmem:[%s2174_s26 + $0x248] sm:$0xff]  ;;  %v653_v1 = vld [vmem:[%s2174_s26 + $0x340] sm:$0xff] }
  0xef   : > { %1651 = vmatmul.msk.f32.vlgmr.msra.gmra.mxu2 %vm741_vm0, %v2218_v39  ;;  %838 = vmatpush.msrb.mxu0 %v617_v46  ;;  %v559_v2 = vld [vmem:[%s2174_s26 + $0x50] sm:$0xff]  ;;  %v560_v3 = vld [vmem:[%s2174_s26 + $0x58] sm:$0xff]  ;;  %v621_v6 = vld [vmem:[%s2174_s26 + $0x240] sm:$0xff] }
  0xf0   : > { %880 = vmatpush.msrb.mxu2 %v555_v42  ;;  %900 = vmatpush.msrb.mxu3 %v556_v43  ;;  %v723_v4 = vld [vmem:[%s2174_s26 + $0x570] sm:$0xff]  ;;  %v724_v5 = vld [vmem:[%s2174_s26 + $0x578] sm:$0xff]  ;;  %v590_v7 = vld [vmem:[%s2174_s26 + $0x148] sm:$0xff] }
  0xf1   : > { %859 = vmatpush.msrb.mxu1 %v586_v47  ;;  %839 = vmatpush.msrb.mxu0 %v585_v50  ;;  %v691_v8 = vld [vmem:[%s2174_s26 + $0x470] sm:$0xff]  ;;  %v692_v9 = vld [vmem:[%s2174_s26 + $0x478] sm:$0xff]  ;;  %v589_v10 = vld [vmem:[%s2174_s26 + $0x140] sm:$0xff] }
  0xf2   : > { %955 = vmatpush.msra.mxu2 %v719_v44  ;;  %975 = vmatpush.msra.mxu3 %v720_v45  ;;  %v558_v11 = vld [vmem:[%s2174_s26 + $0x48] sm:$0xff]  ;;  %v659_v12 = vld [vmem:[%s2174_s26 + $0x370] sm:$0xff]  ;;  %v660_v14 = vld [vmem:[%s2174_s26 + $0x378] sm:$0xff] }
  0xf3   : > { %860 = vmatpush.msrb.mxu1 %v554_v51  ;;  %840 = vmatpush.msrb.mxu0 %v553_v55  ;;  %v722_v13 = vld [vmem:[%s2174_s26 + $0x568] sm:$0xff]  ;;  %v557_v15 = vld [vmem:[%s2174_s26 + $0x40] sm:$0xff]  ;;  %v627_v16 = vld [vmem:[%s2174_s26 + $0x270] sm:$0xff] }
  0xf4   : > { %956 = vmatpush.msra.mxu2 %v687_v48  ;;  %976 = vmatpush.msra.mxu3 %v688_v49  ;;  %v690_v17 = vld [vmem:[%s2174_s26 + $0x468] sm:$0xff]  ;;  %v721_v18 = vld [vmem:[%s2174_s26 + $0x560] sm:$0xff]  ;;  %v628_v19 = vld [vmem:[%s2174_s26 + $0x278] sm:$0xff] }
  0xf5   : > { %1650 = vmatmul.msk.f32.vlgmr.msra.gmra.mxu1 %vm741_vm0, %v2218_v39  ;;  %1649 = vmatmul.msk.f32.vlgmr.msra.gmra.mxu0 %vm741_vm0, %v2218_v39  ;;  %v658_v20 = vld [vmem:[%s2174_s26 + $0x368] sm:$0xff]  ;;  %v595_v21 = vld [vmem:[%s2174_s26 + $0x170] sm:$0xff]  ;;  %v689_v22 = vld [vmem:[%s2174_s26 + $0x460] sm:$0xff] }
  0xf6   : > { %957 = vmatpush.msra.mxu2 %v655_v52  ;;  %935 = vmatpush.msra.mxu1 %v718_v53  ;;  %v596_v23 = vld [vmem:[%s2174_s26 + $0x178] sm:$0xff]  ;;  %v626_v24 = vld [vmem:[%s2174_s26 + $0x268] sm:$0xff]  ;;  %v657_v25 = vld [vmem:[%s2174_s26 + $0x360] sm:$0xff] }
  0xf7   : > { %977 = vmatpush.msra.mxu3 %v656_v54  ;;  %915 = vmatpush.msra.mxu0 %v717_v58  ;;  %v563_v26 = vld [vmem:[%s2174_s26 + $0x70] sm:$0xff]  ;;  %v564_v27 = vld [vmem:[%s2174_s26 + $0x78] sm:$0xff]  ;;  %v625_v30 = vld [vmem:[%s2174_s26 + $0x260] sm:$0xff] }
  0xf8   : > { %958 = vmatpush.msra.mxu2 %v623_v56  ;;  %936 = vmatpush.msra.mxu1 %v686_v57  ;;  %v727_v28 = vld [vmem:[%s2174_s26 + $0x590] sm:$0xff]  ;;  %v728_v29 = vld [vmem:[%s2174_s26 + $0x598] sm:$0xff]  ;;  %v594_v31 = vld [vmem:[%s2174_s26 + $0x168] sm:$0xff] }
  0xf9   : > { %978 = vmatpush.msra.mxu3 %v624_v59  ;;  %916 = vmatpush.msra.mxu0 %v685_v62  ;;  %v695_v32 = vld [vmem:[%s2174_s26 + $0x490] sm:$0xff]  ;;  %v696_v33 = vld [vmem:[%s2174_s26 + $0x498] sm:$0xff]  ;;  %v593_v34 = vld [vmem:[%s2174_s26 + $0x160] sm:$0xff] }
  0xfa   : > { %937 = vmatpush.msra.mxu1 %v654_v60  ;;  %959 = vmatpush.msra.mxu2 %v591_v61  ;;  %v562_v35 = vld [vmem:[%s2174_s26 + $0x68] sm:$0xff]  ;;  %v663_v36 = vld [vmem:[%s2174_s26 + $0x390] sm:$0xff]  ;;  %v664_v38 = vld [vmem:[%s2174_s26 + $0x398] sm:$0xff] }
  0xfb   : > { %979 = vmatpush.msra.mxu3 %v592_v63  ;;  %917 = vmatpush.msra.mxu0 %v653_v1  ;;  %v726_v37 = vld [vmem:[%s2174_s26 + $0x588] sm:$0xff]  ;;  %v561_v40 = vld [vmem:[%s2174_s26 + $0x60] sm:$0xff]  ;;  %v631_v41 = vld [vmem:[%s2174_s26 + $0x290] sm:$0xff] }
  0xfc   : > { %1656 = vmatmul.msk.f32.vlgmr.msrb.gmra.mxu3 %vm741_vm0, %v2218_v39  ;;  %938 = vmatpush.msra.mxu1 %v622_v0  ;;  %v694_v42 = vld [vmem:[%s2174_s26 + $0x488] sm:$0xff]  ;;  %v725_v43 = vld [vmem:[%s2174_s26 + $0x580] sm:$0xff]  ;;  %v632_v44 = vld [vmem:[%s2174_s26 + $0x298] sm:$0xff] }
  0xfd   : > { %960 = vmatpush.msra.mxu2 %v559_v2  ;;  %980 = vmatpush.msra.mxu3 %v560_v3  ;;  %v662_v45 = vld [vmem:[%s2174_s26 + $0x388] sm:$0xff]  ;;  %v599_v46 = vld [vmem:[%s2174_s26 + $0x190] sm:$0xff]  ;;  %v693_v47 = vld [vmem:[%s2174_s26 + $0x480] sm:$0xff] }
  0xfe   : > { %1655 = vmatmul.msk.f32.vlgmr.msrb.gmra.mxu2 %vm741_vm0, %v2218_v39  ;;  %918 = vmatpush.msra.mxu0 %v621_v6  ;;  %v600_v48 = vld [vmem:[%s2174_s26 + $0x198] sm:$0xff]  ;;  %v630_v49 = vld [vmem:[%s2174_s26 + $0x288] sm:$0xff]  ;;  %v661_v50 = vld [vmem:[%s2174_s26 + $0x380] sm:$0xff] }
  0xff   : > { %1035 = vmatpush.msrb.mxu2 %v723_v4  ;;  %1055 = vmatpush.msrb.mxu3 %v724_v5  ;;  %v567_v51 = vld [vmem:[%s2174_s26 + $0x90] sm:$0xff]  ;;  %v568_v52 = vld [vmem:[%s2174_s26 + $0x98] sm:$0xff]  ;;  %v629_v55 = vld [vmem:[%s2174_s26 + $0x280] sm:$0xff] }
 0x100   : > { %939 = vmatpush.msra.mxu1 %v590_v7  ;;  %919 = vmatpush.msra.mxu0 %v589_v10  ;;  %v731_v53 = vld [vmem:[%s2174_s26 + $0x5b0] sm:$0xff]  ;;  %v732_v54 = vld [vmem:[%s2174_s26 + $0x5b8] sm:$0xff]  ;;  %v598_v56 = vld [vmem:[%s2174_s26 + $0x188] sm:$0xff] }
 0x101   : > { %1036 = vmatpush.msrb.mxu2 %v691_v8  ;;  %1056 = vmatpush.msrb.mxu3 %v692_v9  ;;  %v699_v57 = vld [vmem:[%s2174_s26 + $0x4b0] sm:$0xff]  ;;  %v700_v58 = vld [vmem:[%s2174_s26 + $0x4b8] sm:$0xff]  ;;  %v597_v59 = vld [vmem:[%s2174_s26 + $0x180] sm:$0xff] }
 0x102   : > { %940 = vmatpush.msra.mxu1 %v558_v11  ;;  %920 = vmatpush.msra.mxu0 %v557_v15  ;;  %v566_v60 = vld [vmem:[%s2174_s26 + $0x88] sm:$0xff]  ;;  %v667_v61 = vld [vmem:[%s2174_s26 + $0x3b0] sm:$0xff]  ;;  %v668_v63 = vld [vmem:[%s2174_s26 + $0x3b8] sm:$0xff] }
 0x103   : > { %1654 = vmatmul.msk.f32.vlgmr.msrb.gmra.mxu1 %vm741_vm0, %v2218_v39  ;;  %1037 = vmatpush.msrb.mxu2 %v659_v12  ;;  %v730_v62 = vld [vmem:[%s2174_s26 + $0x5a8] sm:$0xff]  ;;  %v565_v0 = vld [vmem:[%s2174_s26 + $0x80] sm:$0xff]  ;;  %v635_v1 = vld [vmem:[%s2174_s26 + $0x2b0] sm:$0xff] }
 0x104   : > { %1015 = vmatpush.msrb.mxu1 %v722_v13  ;;  %1057 = vmatpush.msrb.mxu3 %v660_v14  ;;  %v698_v2 = vld [vmem:[%s2174_s26 + $0x4a8] sm:$0xff]  ;;  %v729_v3 = vld [vmem:[%s2174_s26 + $0x5a0] sm:$0xff]  ;;  %v636_v4 = vld [vmem:[%s2174_s26 + $0x2b8] sm:$0xff] }
 0x105   : > { %1038 = vmatpush.msrb.mxu2 %v627_v16  ;;  %1653 = vmatmul.msk.f32.vlgmr.msrb.gmra.mxu0 %vm741_vm0, %v2218_v39  ;;  %v666_v5 = vld [vmem:[%s2174_s26 + $0x3a8] sm:$0xff]  ;;  %v697_v6 = vld [vmem:[%s2174_s26 + $0x4a0] sm:$0xff]  ;;  %v603_v7 = vld [vmem:[%s2174_s26 + $0x1b0] sm:$0xff] }
 0x106   : > { %1016 = vmatpush.msrb.mxu1 %v690_v17  ;;  %995 = vmatpush.msrb.mxu0 %v721_v18  ;;  %v604_v8 = vld [vmem:[%s2174_s26 + $0x1b8] sm:$0xff]  ;;  %v665_v9 = vld [vmem:[%s2174_s26 + $0x3a0] sm:$0xff]  ;;  %v634_v10 = vld [vmem:[%s2174_s26 + $0x2a8] sm:$0xff] }
 0x107   : > { %1058 = vmatpush.msrb.mxu3 %v628_v19  ;;  %1039 = vmatpush.msrb.mxu2 %v595_v21  ;;  %v571_v11 = vld [vmem:[%s2174_s26 + $0xb0] sm:$0xff]  ;;  %v572_v12 = vld [vmem:[%s2174_s26 + $0xb8] sm:$0xff]  ;;  %v633_v15 = vld [vmem:[%s2174_s26 + $0x2a0] sm:$0xff] }
 0x108   : > { %1017 = vmatpush.msrb.mxu1 %v658_v20  ;;  %996 = vmatpush.msrb.mxu0 %v689_v22  ;;  %v735_v13 = vld [vmem:[%s2174_s26 + $0x5d0] sm:$0xff]  ;;  %v736_v14 = vld [vmem:[%s2174_s26 + $0x5d8] sm:$0xff]  ;;  %v602_v16 = vld [vmem:[%s2174_s26 + $0x1a8] sm:$0xff] }
 0x109   : > { %1059 = vmatpush.msrb.mxu3 %v596_v23  ;;  %1040 = vmatpush.msrb.mxu2 %v563_v26  ;;  %v703_v17 = vld [vmem:[%s2174_s26 + $0x4d0] sm:$0xff]  ;;  %v704_v18 = vld [vmem:[%s2174_s26 + $0x4d8] sm:$0xff]  ;;  %v601_v19 = vld [vmem:[%s2174_s26 + $0x1a0] sm:$0xff] }
 0x10a   : > { %1660 = vmatmul.msk.f32.vlgmr.msra.gmra.mxu3 %vm741_vm0, %v2218_v39  ;;  %1018 = vmatpush.msrb.mxu1 %v626_v24  ;;  %v570_v20 = vld [vmem:[%s2174_s26 + $0xa8] sm:$0xff]  ;;  %v671_v22 = vld [vmem:[%s2174_s26 + $0x3d0] sm:$0xff]  ;;  %v672_v23 = vld [vmem:[%s2174_s26 + $0x3d8] sm:$0xff] }
 0x10b   : > { %997 = vmatpush.msrb.mxu0 %v657_v25  ;;  %1060 = vmatpush.msrb.mxu3 %v564_v27  ;;  %v734_v21 = vld [vmem:[%s2174_s26 + $0x5c8] sm:$0xff]  ;;  %v569_v24 = vld [vmem:[%s2174_s26 + $0xa0] sm:$0xff]  ;;  %v639_v27 = vld [vmem:[%s2174_s26 + $0x2d0] sm:$0xff] }
 0x10c   : > { %1659 = vmatmul.msk.f32.vlgmr.msra.gmra.mxu2 %vm741_vm0, %v2218_v39  ;;  %1019 = vmatpush.msrb.mxu1 %v594_v31  ;;  %v733_v25 = vld [vmem:[%s2174_s26 + $0x5c0] sm:$0xff]  ;;  %v702_v26 = vld [vmem:[%s2174_s26 + $0x4c8] sm:$0xff]  ;;  %v607_v31 = vld [vmem:[%s2174_s26 + $0x1d0] sm:$0xff] }
 0x10d   : > { %1115 = vmatpush.msra.mxu2 %v727_v28  ;;  %1135 = vmatpush.msra.mxu3 %v728_v29  ;;  %v640_v28 = vld [vmem:[%s2174_s26 + $0x2d8] sm:$0xff]  ;;  %v701_v29 = vld [vmem:[%s2174_s26 + $0x4c0] sm:$0xff] }
 0x10e   : > { %998 = vmatpush.msrb.mxu0 %v625_v30  ;;  %1020 = vmatpush.msrb.mxu1 %v562_v35  ;;  %v670_v30 = vld [vmem:[%s2174_s26 + $0x3c8] sm:$0xff]  ;;  %v575_v35 = vld [vmem:[%s2174_s26 + $0xd0] sm:$0xff] }
 0x10f   : > { %1116 = vmatpush.msra.mxu2 %v695_v32  ;;  %1136 = vmatpush.msra.mxu3 %v696_v33  ;;  %v608_v32 = vld [vmem:[%s2174_s26 + $0x1d8] sm:$0xff]  ;;  %v669_v33 = vld [vmem:[%s2174_s26 + $0x3c0] sm:$0xff] }
 0x110   : > { %999 = vmatpush.msrb.mxu0 %v593_v34  ;;  %1658 = vmatmul.msk.f32.vlgmr.msra.gmra.mxu1 %vm741_vm0, %v2218_v39  ;;  %v638_v34 = vld [vmem:[%s2174_s26 + $0x2c8] sm:$0xff] }
 0x111   : > { %1117 = vmatpush.msra.mxu2 %v663_v36  ;;  %1095 = vmatpush.msra.mxu1 %v726_v37  ;;  %v576_v36 = vld [vmem:[%s2174_s26 + $0xd8] sm:$0xff]  ;;  %v739_v37 = vld [vmem:[%s2174_s26 + $0x5f0] sm:$0xff] }
 0x112   : > { %1137 = vmatpush.msra.mxu3 %v664_v38  ;;  %1000 = vmatpush.msrb.mxu0 %v561_v40  ;;  %v740_v38 = vld [vmem:[%s2174_s26 + $0x5f8] sm:$0xff]  ;;  %v637_v40 = vld [vmem:[%s2174_s26 + $0x2c0] sm:$0xff] }
 0x113   : > { %1118 = vmatpush.msra.mxu2 %v631_v41  ;;  %1657 = vmatmul.msk.f32.vlgmr.msra.gmra.mxu0 %vm741_vm0, %v2218_v39  ;;  %v606_v41 = vld [vmem:[%s2174_s26 + $0x1c8] sm:$0xff] }
 0x114   : > { %1096 = vmatpush.msra.mxu1 %v694_v42  ;;  %1075 = vmatpush.msra.mxu0 %v725_v43  ;;  %v707_v42 = vld [vmem:[%s2174_s26 + $0x4f0] sm:$0xff]  ;;  %v708_v43 = vld [vmem:[%s2174_s26 + $0x4f8] sm:$0xff] }
 0x115   : > { %1138 = vmatpush.msra.mxu3 %v632_v44  ;;  %1119 = vmatpush.msra.mxu2 %v599_v46  ;;  %v605_v44 = vld [vmem:[%s2174_s26 + $0x1c0] sm:$0xff]  ;;  %v738_v46 = vld [vmem:[%s2174_s26 + $0x5e8] sm:$0xff] }
 0x116   : > { %1097 = vmatpush.msra.mxu1 %v662_v45  ;;  %1076 = vmatpush.msra.mxu0 %v693_v47  ;;  %v574_v45 = vld [vmem:[%s2174_s26 + $0xc8] sm:$0xff]  ;;  %v675_v47 = vld [vmem:[%s2174_s26 + $0x3f0] sm:$0xff] }
 0x117   : > { %1139 = vmatpush.msra.mxu3 %v600_v48  ;;  %1120 = vmatpush.msra.mxu2 %v567_v51  ;;  %v676_v48 = vld [vmem:[%s2174_s26 + $0x3f8] sm:$0xff]  ;;  %v706_v51 = vld [vmem:[%s2174_s26 + $0x4e8] sm:$0xff] }
 0x118   : > { %1664 = vmatmul.msk.f32.vlgmr.msrb.gmra.mxu3 %vm741_vm0, %v2218_v39  ;;  %1098 = vmatpush.msra.mxu1 %v630_v49  ;;  %v573_v49 = vld [vmem:[%s2174_s26 + $0xc0] sm:$0xff] }
 0x119   : > { %1077 = vmatpush.msra.mxu0 %v661_v50  ;;  %1140 = vmatpush.msra.mxu3 %v568_v52  ;;  %v737_v50 = vld [vmem:[%s2174_s26 + $0x5e0] sm:$0xff]  ;;  %v643_v52 = vld [vmem:[%s2174_s26 + $0x2f0] sm:$0xff] }
 0x11a   : > { %1663 = vmatmul.msk.f32.vlgmr.msrb.gmra.mxu2 %vm741_vm0, %v2218_v39  ;;  %1099 = vmatpush.msra.mxu1 %v598_v56  ;;  %v611_v56 = vld [vmem:[%s2174_s26 + $0x1f0] sm:$0xff] }
 0x11b   : > { %1195 = vmatpush.msrb.mxu2 %v731_v53  ;;  %1215 = vmatpush.msrb.mxu3 %v732_v54  ;;  %v644_v53 = vld [vmem:[%s2174_s26 + $0x2f8] sm:$0xff]  ;;  %v705_v54 = vld [vmem:[%s2174_s26 + $0x4e0] sm:$0xff] }
 0x11c   : > { %1078 = vmatpush.msra.mxu0 %v629_v55  ;;  %1100 = vmatpush.msra.mxu1 %v566_v60  ;;  %v674_v55 = vld [vmem:[%s2174_s26 + $0x3e8] sm:$0xff]  ;;  %v579_v60 = vld [vmem:[%s2174_s26 + $0xf0] sm:$0xff] }
 0x11d   : > { %1196 = vmatpush.msrb.mxu2 %v699_v57  ;;  %1216 = vmatpush.msrb.mxu3 %v700_v58  ;;  %v612_v57 = vld [vmem:[%s2174_s26 + $0x1f8] sm:$0xff]  ;;  %v673_v58 = vld [vmem:[%s2174_s26 + $0x3e0] sm:$0xff] }
 0x11e   : > { %1079 = vmatpush.msra.mxu0 %v597_v59  ;;  %1662 = vmatmul.msk.f32.vlgmr.msrb.gmra.mxu1 %vm741_vm0, %v2218_v39  ;;  %v642_v59 = vld [vmem:[%s2174_s26 + $0x2e8] sm:$0xff] }
 0x11f   : > { %1197 = vmatpush.msrb.mxu2 %v667_v61  ;;  %1175 = vmatpush.msrb.mxu1 %v730_v62  ;;  %v580_v61 = vld [vmem:[%s2174_s26 + $0xf8] sm:$0xff]  ;;  %v641_v62 = vld [vmem:[%s2174_s26 + $0x2e0] sm:$0xff] }
 0x120   : > { %1217 = vmatpush.msrb.mxu3 %v668_v63  ;;  %1080 = vmatpush.msra.mxu0 %v565_v0  ;;  %v610_v63 = vld [vmem:[%s2174_s26 + $0x1e8] sm:$0xff]  ;;  %v609_v0 = vld [vmem:[%s2174_s26 + $0x1e0] sm:$0xff] }
 0x121   : > { %1198 = vmatpush.msrb.mxu2 %v635_v1  ;;  %1661 = vmatmul.msk.f32.vlgmr.msrb.gmra.mxu0 %vm741_vm0, %v2218_v39  ;;  %v578_v1 = vld [vmem:[%s2174_s26 + $0xe8] sm:$0xff] }
 0x122   : > { %1176 = vmatpush.msrb.mxu1 %v698_v2  ;;  %1155 = vmatpush.msrb.mxu0 %v729_v3  ;;  %v577_v2 = vld [vmem:[%s2174_s26 + $0xe0] sm:$0xff] }
 0x123   : > { %1218 = vmatpush.msrb.mxu3 %v636_v4  ;;  %1199 = vmatpush.msrb.mxu2 %v603_v7 }
 0x124   : > { %1668 = vmatmul.msk.f32.vlgmr.msra.gmra.mxu3 %vm741_vm0, %v2218_v39  ;;  %1177 = vmatpush.msrb.mxu1 %v666_v5 }
 0x125   : > { %1156 = vmatpush.msrb.mxu0 %v697_v6  ;;  %1219 = vmatpush.msrb.mxu3 %v604_v8 }
 0x126   : > { %1667 = vmatmul.msk.f32.vlgmr.msra.gmra.mxu2 %vm741_vm0, %v2218_v39  ;;  %1178 = vmatpush.msrb.mxu1 %v634_v10 }
 0x127   : > { %1157 = vmatpush.msrb.mxu0 %v665_v9  ;;  %1200 = vmatpush.msrb.mxu2 %v571_v11 }
 0x128   : > { %1220 = vmatpush.msrb.mxu3 %v572_v12  ;;  %1179 = vmatpush.msrb.mxu1 %v602_v16 }
 0x129   : > { %1275 = vmatpush.msra.mxu2 %v735_v13  ;;  %1158 = vmatpush.msrb.mxu0 %v633_v15 }
 0x12a   : > { %1295 = vmatpush.msra.mxu3 %v736_v14  ;;  %1666 = vmatmul.msk.f32.vlgmr.msra.gmra.mxu1 %vm741_vm0, %v2218_v39 }
 0x12b   : > { %1276 = vmatpush.msra.mxu2 %v703_v17  ;;  %1159 = vmatpush.msrb.mxu0 %v601_v19 }
 0x12c   : > { %1296 = vmatpush.msra.mxu3 %v704_v18  ;;  %1180 = vmatpush.msrb.mxu1 %v570_v20 }
 0x12d   : > { %1665 = vmatmul.msk.f32.vlgmr.msra.gmra.mxu0 %vm741_vm0, %v2218_v39  ;;  %1672 = vmatmul.msk.f32.vlgmr.msrb.gmra.mxu3 %vm741_vm0, %v2218_v39 }
 0x12e   : > { %1255 = vmatpush.msra.mxu1 %v734_v21  ;;  %1277 = vmatpush.msra.mxu2 %v671_v22 }
 0x12f   : > { %1297 = vmatpush.msra.mxu3 %v672_v23  ;;  %1160 = vmatpush.msrb.mxu0 %v569_v24 }
 0x130   : > { %1671 = vmatmul.msk.f32.vlgmr.msrb.gmra.mxu2 %vm741_vm0, %v2218_v39  ;;  %1256 = vmatpush.msra.mxu1 %v702_v26 }
 0x131   : > { %1235 = vmatpush.msra.mxu0 %v733_v25  ;;  %1278 = vmatpush.msra.mxu2 %v639_v27 }
 0x132   : > { %1298 = vmatpush.msra.mxu3 %v640_v28  ;;  %1257 = vmatpush.msra.mxu1 %v670_v30 }
 0x133   : > { %1236 = vmatpush.msra.mxu0 %v701_v29  ;;  %1279 = vmatpush.msra.mxu2 %v607_v31 }
 0x134   : > { %1299 = vmatpush.msra.mxu3 %v608_v32  ;;  %1670 = vmatmul.msk.f32.vlgmr.msrb.gmra.mxu1 %vm741_vm0, %v2218_v39 }
 0x135   : > { %1237 = vmatpush.msra.mxu0 %v669_v33  ;;  %1258 = vmatpush.msra.mxu1 %v638_v34 }
 0x136   : > { %1280 = vmatpush.msra.mxu2 %v575_v35  ;;  %1300 = vmatpush.msra.mxu3 %v576_v36 }
 0x137   : > { %1669 = vmatmul.msk.f32.vlgmr.msrb.gmra.mxu0 %vm741_vm0, %v2218_v39  ;;  %1259 = vmatpush.msra.mxu1 %v606_v41 }
 0x138   : > { %1355 = vmatpush.msrb.mxu2 %v739_v37  ;;  %1375 = vmatpush.msrb.mxu3 %v740_v38 }
 0x139   : > { %1238 = vmatpush.msra.mxu0 %v637_v40  ;;  %1676 = vmatmul.msk.f32.vlgmr.msra.gmra.mxu3 %vm741_vm0, %v2218_v39 }
 0x13a   : > { %1356 = vmatpush.msrb.mxu2 %v707_v42  ;;  %1376 = vmatpush.msrb.mxu3 %v708_v43 }
 0x13b   : > { %1239 = vmatpush.msra.mxu0 %v605_v44  ;;  %1260 = vmatpush.msra.mxu1 %v574_v45 }
 0x13c   : > { %1675 = vmatmul.msk.f32.vlgmr.msra.gmra.mxu2 %vm741_vm0, %v2218_v39  ;;  %1377 = vmatpush.msrb.mxu3 %v676_v48 }
 0x13d   : > { %1335 = vmatpush.msrb.mxu1 %v738_v46  ;;  %1357 = vmatpush.msrb.mxu2 %v675_v47 }
 0x13e   : > { %1240 = vmatpush.msra.mxu0 %v573_v49  ;;  %1378 = vmatpush.msrb.mxu3 %v644_v53 }
 0x13f   : > { %1336 = vmatpush.msrb.mxu1 %v706_v51  ;;  %1358 = vmatpush.msrb.mxu2 %v643_v52 }
 0x140   : > { %1315 = vmatpush.msrb.mxu0 %v737_v50  ;;  %1674 = vmatmul.msk.f32.vlgmr.msra.gmra.mxu1 %vm741_vm0, %v2218_v39 }
 0x141   : > { %1337 = vmatpush.msrb.mxu1 %v674_v55  ;;  %1359 = vmatpush.msrb.mxu2 %v611_v56 }
 0x142   : > { %1316 = vmatpush.msrb.mxu0 %v705_v54  ;;  %1379 = vmatpush.msrb.mxu3 %v612_v57 }
 0x143   : > { %1673 = vmatmul.msk.f32.vlgmr.msra.gmra.mxu0 %vm741_vm0, %v2218_v39  ;;  %1338 = vmatpush.msrb.mxu1 %v642_v59 }
 0x144   : > { %1317 = vmatpush.msrb.mxu0 %v673_v58  ;;  %1360 = vmatpush.msrb.mxu2 %v579_v60 }
 0x145   : > { %1380 = vmatpush.msrb.mxu3 %v580_v61  ;;  %1679 = vmatmul.msk.f32.vlgmr.msrb.gmra.mxu2 %vm741_vm0, %v2218_v39 }
 0x146   : > { %1680 = vmatmul.msk.f32.vlgmr.msrb.gmra.mxu3 %vm741_vm0, %v2218_v39  ;;  %1318 = vmatpush.msrb.mxu0 %v641_v62 }
 0x147   : > { %1339 = vmatpush.msrb.mxu1 %v610_v63 }
 0x148   : > { %1319 = vmatpush.msrb.mxu0 %v609_v0 }
 0x149   : > { %1340 = vmatpush.msrb.mxu1 %v578_v1 }
 0x14a   : > { %1678 = vmatmul.msk.f32.vlgmr.msrb.gmra.mxu1 %vm741_vm0, %v2218_v39  ;;  %1320 = vmatpush.msrb.mxu0 %v577_v2 }
 0x14b   : > { %1677 = vmatmul.msk.f32.vlgmr.msrb.gmra.mxu0 %vm741_vm0, %v2218_v39 }
 0x16e   : > { %v822_v3 = vpop.f32.mrf.mxu3 }
 0x16f   : > { %vm1388_vm1 = vcmp.ge.f32.partialorder %v822_v3, 0.0  ;;  %v1420_v5 = vmul.f32 0.2, %v822_v3 }
 0x171   : > { %v1452_v8 = vsel %vm1388_vm1, %v822_v3, %v1420_v5 }
 0x172   : > { %v782_v4 = vpop.f32.mrf.mxu1  ;;  %v802_v7 = vpop.f32.mrf.mxu2  ;;  %v1514_v11 = vrot.slane %v1452_v8, 4 }
 0x173   : > { %vm1386_vm2 = vcmp.ge.f32.partialorder %v782_v4, 0.0  ;;  %v1418_v6 = vmul.f32 0.2, %v782_v4  ;;  %vm1387_vm4 = vcmp.ge.f32.partialorder %v802_v7, 0.0  ;;  %v1419_v9 = vmul.f32 0.2, %v802_v7  ;;  %v762_v39 = vpop.f32.mrf.mxu0 }
 0x174   : > { %vm1385_vm5 = vcmp.ge.f32.partialorder %v762_v39, 0.0  ;;  %v1417_v13 = vmul.f32 0.2, %v762_v39 }
 0x175   : > { %v1450_v10 = vsel %vm1386_vm2, %v782_v4, %v1418_v6  ;;  %v1451_v14 = vsel %vm1387_vm4, %v802_v7, %v1419_v9 }
 0x176   : > { %v1513_v12 = vrot.slane %v1450_v10, 4  ;;  %v1531_v15 = vsel %vm1529_vm3, %v1451_v14, %v1514_v11  ;;  %v1449_v16 = vsel %vm1385_vm5, %v762_v39, %v1417_v13 }
 0x177   : > { %1563 = vst [vmem:[%s2442_s5 + $0x8] sm:$0xff] %v1531_v15 }
 0x178   : > { %v1530_v17 = vsel %vm1529_vm3, %v1449_v16, %v1513_v12 }
 0x179   : > { %1562 = vst [vmem:[%s2442_s5] sm:$0xff] %v1530_v17 }
 0x17f   : > { %v902_v18 = vpop.f32.mrf.mxu3 }
 0x180   : > { %v862_v19 = vpop.f32.mrf.mxu1  ;;  %vm1392_vm6 = vcmp.ge.f32.partialorder %v902_v18, 0.0  ;;  %v1424_v20 = vmul.f32 0.2, %v902_v18 }
 0x181   : > { %vm1390_vm7 = vcmp.ge.f32.partialorder %v862_v19, 0.0  ;;  %v1422_v21 = vmul.f32 0.2, %v862_v19  ;;  %v882_v22 = vpop.f32.mrf.mxu2 }
 0x182   : > { %v1456_v23 = vsel %vm1392_vm6, %v902_v18, %v1424_v20  ;;  %vm1391_vm8 = vcmp.ge.f32.partialorder %v882_v22, 0.0  ;;  %v1423_v24 = vmul.f32 0.2, %v882_v22  ;;  %v842_v27 = vpop.f32.mrf.mxu0 }
 0x183   : > { %v1454_v25 = vsel %vm1390_vm7, %v862_v19, %v1422_v21  ;;  %v1516_v26 = vrot.slane %v1456_v23, 4  ;;  %vm1389_vm9 = vcmp.ge.f32.partialorder %v842_v27, 0.0  ;;  %v1421_v29 = vmul.f32 0.2, %v842_v27 }
 0x184   : > { %v1515_v28 = vrot.slane %v1454_v25, 4  ;;  %v1455_v30 = vsel %vm1391_vm8, %v882_v22, %v1423_v24 }
 0x185   : > { %v1533_v31 = vsel %vm1529_vm3, %v1455_v30, %v1516_v26  ;;  %v1453_v32 = vsel %vm1389_vm9, %v842_v27, %v1421_v29 }
 0x186   : > { %1565 = vst [vmem:[%s2442_s5 + $0x18] sm:$0xff] %v1533_v31  ;;  %v1532_v33 = vsel %vm1529_vm3, %v1453_v32, %v1515_v28 }
 0x187   : > { %1564 = vst [vmem:[%s2442_s5 + $0x10] sm:$0xff] %v1532_v33 }
 0x18d   : > { %v982_v34 = vpop.f32.mrf.mxu3  ;;  %v942_v35 = vpop.f32.mrf.mxu1 }
 0x18e   : > { %vm1396_vm10 = vcmp.ge.f32.partialorder %v982_v34, 0.0  ;;  %v1428_v36 = vmul.f32 0.2, %v982_v34  ;;  %vm1394_vm11 = vcmp.ge.f32.partialorder %v942_v35, 0.0  ;;  %v1426_v37 = vmul.f32 0.2, %v942_v35 }
 0x18f   : > { %v962_v38 = vpop.f32.mrf.mxu2 }
 0x190   : > { %v1460_v40 = vsel %vm1396_vm10, %v982_v34, %v1428_v36  ;;  %vm1395_vm12 = vcmp.ge.f32.partialorder %v962_v38, 0.0  ;;  %v1427_v41 = vmul.f32 0.2, %v962_v38  ;;  %v1458_v42 = vsel %vm1394_vm11, %v942_v35, %v1426_v37  ;;  %v922_v44 = vpop.f32.mrf.mxu0 }
 0x191   : > { %v1518_v43 = vrot.slane %v1460_v40, 4  ;;  %v1517_v45 = vrot.slane %v1458_v42, 4  ;;  %vm1393_vm13 = vcmp.ge.f32.partialorder %v922_v44, 0.0  ;;  %v1425_v46 = vmul.f32 0.2, %v922_v44 }
 0x192   : > { %v1459_v47 = vsel %vm1395_vm12, %v962_v38, %v1427_v41 }
 0x193   : > { %v1535_v48 = vsel %vm1529_vm3, %v1459_v47, %v1518_v43  ;;  %v1457_v49 = vsel %vm1393_vm13, %v922_v44, %v1425_v46 }
 0x194   : > { %1567 = vst [vmem:[%s2442_s5 + $0x28] sm:$0xff] %v1535_v48  ;;  %v1534_v50 = vsel %vm1529_vm3, %v1457_v49, %v1517_v45 }
 0x195   : > { %1566 = vst [vmem:[%s2442_s5 + $0x20] sm:$0xff] %v1534_v50 }
 0x19b   : > { %v1062_v51 = vpop.f32.mrf.mxu3  ;;  %v1022_v52 = vpop.f32.mrf.mxu1 }
 0x19c   : > { %vm1400_vm14 = vcmp.ge.f32.partialorder %v1062_v51, 0.0  ;;  %v1432_v53 = vmul.f32 0.2, %v1062_v51  ;;  %vm1398_vm15 = vcmp.ge.f32.partialorder %v1022_v52, 0.0  ;;  %v1430_v54 = vmul.f32 0.2, %v1022_v52 }
 0x19d   : > { %v1042_v55 = vpop.f32.mrf.mxu2 }
 0x19e   : > { %v1464_v56 = vsel %vm1400_vm14, %v1062_v51, %v1432_v53  ;;  %vm1399_vm0 = vcmp.ge.f32.partialorder %v1042_v55, 0.0  ;;  %v1431_v57 = vmul.f32 0.2, %v1042_v55  ;;  %v1462_v58 = vsel %vm1398_vm15, %v1022_v52, %v1430_v54  ;;  %v1002_v60 = vpop.f32.mrf.mxu0 }
 0x19f   : > { %v1520_v59 = vrot.slane %v1464_v56, 4  ;;  %v1519_v61 = vrot.slane %v1462_v58, 4  ;;  %vm1397_vm1 = vcmp.ge.f32.partialorder %v1002_v60, 0.0  ;;  %v1429_v62 = vmul.f32 0.2, %v1002_v60 }
 0x1a0   : > { %v1463_v63 = vsel %vm1399_vm0, %v1042_v55, %v1431_v57 }
 0x1a1   : > { %v1537_v0 = vsel %vm1529_vm3, %v1463_v63, %v1520_v59  ;;  %v1461_v1 = vsel %vm1397_vm1, %v1002_v60, %v1429_v62 }
 0x1a2   : > { %1569 = vst [vmem:[%s2442_s5 + $0x38] sm:$0xff] %v1537_v0  ;;  %v1536_v2 = vsel %vm1529_vm3, %v1461_v1, %v1519_v61 }
 0x1a3   : > { %1568 = vst [vmem:[%s2442_s5 + $0x30] sm:$0xff] %v1536_v2 }
 0x1a7   : > { %v1142_v3 = vpop.f32.mrf.mxu3  ;;  %v1102_v4 = vpop.f32.mrf.mxu1 }
 0x1a8   : > { %vm1404_vm2 = vcmp.ge.f32.partialorder %v1142_v3, 0.0  ;;  %v1436_v5 = vmul.f32 0.2, %v1142_v3  ;;  %vm1402_vm4 = vcmp.ge.f32.partialorder %v1102_v4, 0.0  ;;  %v1434_v6 = vmul.f32 0.2, %v1102_v4 }
 0x1a9   : > { %v1122_v7 = vpop.f32.mrf.mxu2 }
 0x1aa   : > { %v1468_v8 = vsel %vm1404_vm2, %v1142_v3, %v1436_v5  ;;  %v1082_v9 = vpop.f32.mrf.mxu0  ;;  %vm1403_vm5 = vcmp.ge.f32.partialorder %v1122_v7, 0.0  ;;  %v1435_v10 = vmul.f32 0.2, %v1122_v7  ;;  %v1466_v11 = vsel %vm1402_vm4, %v1102_v4, %v1434_v6 }
 0x1ab   : > { %v1522_v39 = vrot.slane %v1468_v8, 4  ;;  %vm1401_vm6 = vcmp.ge.f32.partialorder %v1082_v9, 0.0  ;;  %v1433_v12 = vmul.f32 0.2, %v1082_v9  ;;  %v1521_v13 = vrot.slane %v1466_v11, 4 }
 0x1ac   : > { %v1467_v14 = vsel %vm1403_vm5, %v1122_v7, %v1435_v10 }
 0x1ad   : > { %v1465_v15 = vsel %vm1401_vm6, %v1082_v9, %v1433_v12  ;;  %v1539_v16 = vsel %vm1529_vm3, %v1467_v14, %v1522_v39 }
 0x1ae   : > { %v1538_v17 = vsel %vm1529_vm3, %v1465_v15, %v1521_v13  ;;  %1571 = vst [vmem:[%s2442_s5 + $0x48] sm:$0xff] %v1539_v16 }
 0x1af   : > { %1570 = vst [vmem:[%s2442_s5 + $0x40] sm:$0xff] %v1538_v17 }
 0x1b0   : > { %v1222_v18 = vpop.f32.mrf.mxu3 }
 0x1b1   : > { %v1182_v19 = vpop.f32.mrf.mxu1  ;;  %vm1408_vm7 = vcmp.ge.f32.partialorder %v1222_v18, 0.0  ;;  %v1440_v20 = vmul.f32 0.2, %v1222_v18 }
 0x1b2   : > { %vm1406_vm8 = vcmp.ge.f32.partialorder %v1182_v19, 0.0  ;;  %v1438_v21 = vmul.f32 0.2, %v1182_v19 }
 0x1b3   : > { %v1202_v22 = vpop.f32.mrf.mxu2  ;;  %v1472_v23 = vsel %vm1408_vm7, %v1222_v18, %v1440_v20 }
 0x1b4   : > { %vm1407_vm9 = vcmp.ge.f32.partialorder %v1202_v22, 0.0  ;;  %v1439_v24 = vmul.f32 0.2, %v1202_v22  ;;  %v1470_v25 = vsel %vm1406_vm8, %v1182_v19, %v1438_v21  ;;  %v1524_v26 = vrot.slane %v1472_v23, 4  ;;  %v1162_v27 = vpop.f32.mrf.mxu0 }
 0x1b5   : > { %v1523_v28 = vrot.slane %v1470_v25, 4  ;;  %vm1405_vm10 = vcmp.ge.f32.partialorder %v1162_v27, 0.0  ;;  %v1437_v29 = vmul.f32 0.2, %v1162_v27 }
 0x1b6   : > { %v1471_v30 = vsel %vm1407_vm9, %v1202_v22, %v1439_v24 }
 0x1b7   : > { %v1541_v31 = vsel %vm1529_vm3, %v1471_v30, %v1524_v26  ;;  %v1469_v32 = vsel %vm1405_vm10, %v1162_v27, %v1437_v29 }
 0x1b8   : > { %1573 = vst [vmem:[%s2442_s5 + $0x58] sm:$0xff] %v1541_v31  ;;  %v1540_v33 = vsel %vm1529_vm3, %v1469_v32, %v1523_v28 }
 0x1b9   : > { %1572 = vst [vmem:[%s2442_s5 + $0x50] sm:$0xff] %v1540_v33 }
 0x1bc   : > { %v1302_v34 = vpop.f32.mrf.mxu3 }
 0x1bd   : > { %v1262_v35 = vpop.f32.mrf.mxu1  ;;  %vm1412_vm11 = vcmp.ge.f32.partialorder %v1302_v34, 0.0  ;;  %v1444_v36 = vmul.f32 0.2, %v1302_v34 }
 0x1be   : > { %vm1410_vm12 = vcmp.ge.f32.partialorder %v1262_v35, 0.0  ;;  %v1442_v37 = vmul.f32 0.2, %v1262_v35 }
 0x1bf   : > { %v1282_v38 = vpop.f32.mrf.mxu2  ;;  %v1476_v40 = vsel %vm1412_vm11, %v1302_v34, %v1444_v36 }
 0x1c0   : > { %v1242_v41 = vpop.f32.mrf.mxu0  ;;  %vm1411_vm13 = vcmp.ge.f32.partialorder %v1282_v38, 0.0  ;;  %v1443_v42 = vmul.f32 0.2, %v1282_v38  ;;  %v1474_v43 = vsel %vm1410_vm12, %v1262_v35, %v1442_v37  ;;  %v1526_v44 = vrot.slane %v1476_v40, 4 }
 0x1c1   : > { %vm1409_vm14 = vcmp.ge.f32.partialorder %v1242_v41, 0.0  ;;  %v1441_v45 = vmul.f32 0.2, %v1242_v41  ;;  %v1525_v46 = vrot.slane %v1474_v43, 4 }
 0x1c2   : > { %v1475_v47 = vsel %vm1411_vm13, %v1282_v38, %v1443_v42 }
 0x1c3   : > { %v1473_v48 = vsel %vm1409_vm14, %v1242_v41, %v1441_v45  ;;  %v1543_v49 = vsel %vm1529_vm3, %v1475_v47, %v1526_v44 }
 0x1c4   : > { %v1542_v50 = vsel %vm1529_vm3, %v1473_v48, %v1525_v46  ;;  %1575 = vst [vmem:[%s2442_s5 + $0x68] sm:$0xff] %v1543_v49 }
 0x1c5   : > { %1574 = vst [vmem:[%s2442_s5 + $0x60] sm:$0xff] %v1542_v50 }
 0x1c7   : > { %v1342_v51 = vpop.f32.mrf.mxu1 }
 0x1c8   : > { %vm1414_vm15 = vcmp.ge.f32.partialorder %v1342_v51, 0.0  ;;  %v1446_v52 = vmul.f32 0.2, %v1342_v51  ;;  %v1322_v53 = vpop.f32.mrf.mxu0  ;;  %v1362_v54 = vpop.f32.mrf.mxu2 }
 0x1c9   : > { %vm1413_vm0 = vcmp.ge.f32.partialorder %v1322_v53, 0.0  ;;  %v1445_v56 = vmul.f32 0.2, %v1322_v53  ;;  %v1382_v57 = vpop.f32.mrf.mxu3  ;;  %v1447_v59 = vmul.f32 0.2, %v1362_v54  ;;  %vm1415_vm2 = vcmp.ge.f32.partialorder %v1362_v54, 0.0 }
 0x1ca   : > { %v1478_v55 = vsel %vm1414_vm15, %v1342_v51, %v1446_v52  ;;  %vm1416_vm1 = vcmp.ge.f32.partialorder %v1382_v57, 0.0  ;;  %v1448_v60 = vmul.f32 0.2, %v1382_v57 }
 0x1cb   : > { %v1527_v58 = vrot.slane %v1478_v55, 4  ;;  %v1477_v61 = vsel %vm1413_vm0, %v1322_v53, %v1445_v56  ;;  %v1479_v1 = vsel %vm1415_vm2, %v1362_v54, %v1447_v59 }
 0x1cc   : > { %v1480_v63 = vsel %vm1416_vm1, %v1382_v57, %v1448_v60 }
 0x1cd   : > { %v1544_v62 = vsel %vm1529_vm3, %v1477_v61, %v1527_v58  ;;  %v1528_v0 = vrot.slane %v1480_v63, 4 }
 0x1ce   : > { %1576 = vst [vmem:[%s2442_s5 + $0x70] sm:$0xff] %v1544_v62 }
 0x1cf   : > { %v1545_v2 = vsel %vm1529_vm3, %v1479_v1, %v1528_v0 }
 0x1d0   : > { %1577 = vst [vmem:[%s2442_s5 + $0x78] sm:$0xff] %v1545_v2 }
 0x1d1 PF: > { %p9_p9 = scmp.ge.s32.totalorder %s1766_s13, 4   ;;  %s2489_s9 = smov %s1728_s10 }
 0x1d2   : > { %s2490_s10 = smov %s1775_s16  ;;  %s2491_s11 = smov %s1766_s13 }
 0x1d3   :  { %11 = sbr.rel (!%p9_p9) target bundleno = 2 (0x2), region = 86 }

// kernel: discriminator_forward.7
= control target key start
LH: loop header
LB: loop body
LE: loop exit
PB: predicated region body
PF: predicated region fallthrough
CT: control target
= control target key end

     0   :  { %s700_s9 = smov 0   ;;  %s702_s10 = smov 0   ;;  %s971_s0 = inlined_call_operand.vmem [shape: f32[8,64], index: 0, kind: input, shape index: {}]   ;;  %s972_s1 = inlined_call_operand.vmem [shape: f32[64,2048], index: 1, kind: input, shape index: {}]   ;;  %s973_s2 = inlined_call_operand.vmem [shape: f32[8,2048], index: 2, kind: output, shape index: {}]  }
   0x1   :  { %s704_s11 = smov 0  }
   0x2 LB: > { %s615_s12 = sadd.s32 4294967295, %s683_s11   ;;  %s717_s13 = sadd.s32 1, %s683_s11   ;;  %s683_s11 = sphi %s704_s11, %s976_s11   ;;  %s679_s10 = sphi %s702_s10, %s975_s10   ;;  %s675_s9 = sphi %s700_s9, %s974_s9  }
   0x3   : > { %s37_s14 = ssub.s32 %s683_s11, %s717_s13  ;;  %s40_s15 = sadd.s32 1, %s679_s10 }
   0x4   : > { %p38_p0 = scmp.eq.s32.totalorder %s37_s14, 0  ;;  %p47_p1 = scmp.ne.s32.totalorder %s679_s10, %s675_s9 }
   0x5   : > { %p48_p2 = scmp.eq.s32.totalorder %s683_s11, 0  ;;  %p618_p4 = scmp.ge.s32.totalorder %s683_s11, 2 }
   0x6   : > { %s726_s16 = scalar_select %p38_p0, %s679_s10, %s40_s15  }
   0x7   : > { %p49_p3 = por %p48_p2, %p47_p1  ;;  %102 = sbr.rel (%p618_p4) target bundleno = 80 (0x50), region = 20 }
   0xc   : > { %105 = sbr.rel (!%p49_p3) target bundleno = 80 (0x50), region = 24  ;;  %s107_s17 = sand.u32 (%p49_p3), 1, %s679_s10  }
   0xd   : > { %s636_s18 = sshll.u32 (%p49_p3), %s683_s11, 6  ;;  %s619_s19 = sshll.u32 (%p49_p3), %s107_s17, 9 }
   0xe   : > { %s734_s22 = scalar_lea.vmem (%p49_p3), %s972_s1, %s636_s18  ;;  %s739_s23 = scalar_lea.vmem (%p49_p3), [#allocation2], %s619_s19 }
   0xf   : > { %v125_v0 = vld [vmem:[%s734_s22] sm:$0xff] (%p49_p3)  ;;  %v127_v1 = vld [vmem:[%s734_s22 + $0x8] sm:$0xff] (%p49_p3)  ;;  %v129_v2 = vld [vmem:[%s734_s22 + $0x10] sm:$0xff] (%p49_p3) }
  0x10   : > { %126 = vst [vmem:[%s739_s23] sm:$0xff] (%p49_p3), %v125_v0  ;;  %v131_v3 = vld [vmem:[%s734_s22 + $0x18] sm:$0xff] (%p49_p3)  ;;  %v133_v4 = vld [vmem:[%s734_s22 + $0x20] sm:$0xff] (%p49_p3)  ;;  %v135_v5 = vld [vmem:[%s734_s22 + $0x28] sm:$0xff] (%p49_p3) }
  0x11   : > { %128 = vst [vmem:[%s739_s23 + $0x8] sm:$0xff] %v127_v1  ;;  %v137_v6 = vld [vmem:[%s734_s22 + $0x30] sm:$0xff]  ;;  %v139_v7 = vld [vmem:[%s734_s22 + $0x38] sm:$0xff]  ;;  %v141_v8 = vld [vmem:[%s734_s22 + $0x80] sm:$0xff] }
  0x12   : > { %130 = vst [vmem:[%s739_s23 + $0x10] sm:$0xff] %v129_v2  ;;  %v143_v9 = vld [vmem:[%s734_s22 + $0x88] sm:$0xff]  ;;  %v145_v10 = vld [vmem:[%s734_s22 + $0x90] sm:$0xff]  ;;  %v147_v11 = vld [vmem:[%s734_s22 + $0x98] sm:$0xff] }
  0x13   : > { %132 = vst [vmem:[%s739_s23 + $0x18] sm:$0xff] %v131_v3  ;;  %v149_v12 = vld [vmem:[%s734_s22 + $0xa0] sm:$0xff]  ;;  %v151_v13 = vld [vmem:[%s734_s22 + $0xa8] sm:$0xff]  ;;  %v153_v14 = vld [vmem:[%s734_s22 + $0xb0] sm:$0xff] }
  0x14   : > { %134 = vst [vmem:[%s739_s23 + $0x20] sm:$0xff] %v133_v4  ;;  %v155_v15 = vld [vmem:[%s734_s22 + $0xb8] sm:$0xff]  ;;  %v157_v16 = vld [vmem:[%s734_s22 + $0x100] sm:$0xff]  ;;  %v159_v17 = vld [vmem:[%s734_s22 + $0x108] sm:$0xff] }
  0x15   : > { %136 = vst [vmem:[%s739_s23 + $0x28] sm:$0xff] %v135_v5  ;;  %v161_v18 = vld [vmem:[%s734_s22 + $0x110] sm:$0xff]  ;;  %v163_v19 = vld [vmem:[%s734_s22 + $0x118] sm:$0xff]  ;;  %v165_v20 = vld [vmem:[%s734_s22 + $0x120] sm:$0xff] }
  0x16   : > { %138 = vst [vmem:[%s739_s23 + $0x30] sm:$0xff] %v137_v6  ;;  %v167_v21 = vld [vmem:[%s734_s22 + $0x128] sm:$0xff]  ;;  %v169_v22 = vld [vmem:[%s734_s22 + $0x130] sm:$0xff]  ;;  %v171_v23 = vld [vmem:[%s734_s22 + $0x138] sm:$0xff] }
  0x17   : > { %140 = vst [vmem:[%s739_s23 + $0x38] sm:$0xff] %v139_v7  ;;  %v173_v24 = vld [vmem:[%s734_s22 + $0x180] sm:$0xff]  ;;  %v175_v25 = vld [vmem:[%s734_s22 + $0x188] sm:$0xff]  ;;  %v177_v26 = vld [vmem:[%s734_s22 + $0x190] sm:$0xff] }
  0x18   : > { %142 = vst [vmem:[%s739_s23 + $0x40] sm:$0xff] %v141_v8  ;;  %v179_v27 = vld [vmem:[%s734_s22 + $0x198] sm:$0xff]  ;;  %v181_v28 = vld [vmem:[%s734_s22 + $0x1a0] sm:$0xff]  ;;  %v183_v29 = vld [vmem:[%s734_s22 + $0x1a8] sm:$0xff] }
  0x19   : > { %144 = vst [vmem:[%s739_s23 + $0x48] sm:$0xff] %v143_v9  ;;  %v185_v30 = vld [vmem:[%s734_s22 + $0x1b0] sm:$0xff]  ;;  %v187_v31 = vld [vmem:[%s734_s22 + $0x1b8] sm:$0xff]  ;;  %v189_v32 = vld [vmem:[%s734_s22 + $0x200] sm:$0xff] }
  0x1a   : > { %146 = vst [vmem:[%s739_s23 + $0x50] sm:$0xff] %v145_v10  ;;  %v191_v33 = vld [vmem:[%s734_s22 + $0x208] sm:$0xff]  ;;  %v193_v34 = vld [vmem:[%s734_s22 + $0x210] sm:$0xff]  ;;  %v195_v35 = vld [vmem:[%s734_s22 + $0x218] sm:$0xff] }
  0x1b   : > { %148 = vst [vmem:[%s739_s23 + $0x58] sm:$0xff] %v147_v11  ;;  %v197_v36 = vld [vmem:[%s734_s22 + $0x220] sm:$0xff]  ;;  %v199_v37 = vld [vmem:[%s734_s22 + $0x228] sm:$0xff]  ;;  %v201_v38 = vld [vmem:[%s734_s22 + $0x230] sm:$0xff] }
  0x1c   : > { %150 = vst [vmem:[%s739_s23 + $0x60] sm:$0xff] %v149_v12  ;;  %v203_v39 = vld [vmem:[%s734_s22 + $0x238] sm:$0xff]  ;;  %v205_v40 = vld [vmem:[%s734_s22 + $0x280] sm:$0xff]  ;;  %v207_v41 = vld [vmem:[%s734_s22 + $0x288] sm:$0xff] }
  0x1d   : > { %152 = vst [vmem:[%s739_s23 + $0x68] sm:$0xff] %v151_v13  ;;  %v209_v42 = vld [vmem:[%s734_s22 + $0x290] sm:$0xff]  ;;  %v211_v43 = vld [vmem:[%s734_s22 + $0x298] sm:$0xff]  ;;  %v213_v44 = vld [vmem:[%s734_s22 + $0x2a0] sm:$0xff] }
  0x1e   : > { %154 = vst [vmem:[%s739_s23 + $0x70] sm:$0xff] %v153_v14  ;;  %v215_v45 = vld [vmem:[%s734_s22 + $0x2a8] sm:$0xff]  ;;  %v217_v46 = vld [vmem:[%s734_s22 + $0x2b0] sm:$0xff]  ;;  %v219_v47 = vld [vmem:[%s734_s22 + $0x2b8] sm:$0xff] }
  0x1f   : > { %156 = vst [vmem:[%s739_s23 + $0x78] sm:$0xff] %v155_v15  ;;  %v221_v48 = vld [vmem:[%s734_s22 + $0x300] sm:$0xff]  ;;  %v223_v49 = vld [vmem:[%s734_s22 + $0x308] sm:$0xff]  ;;  %v225_v50 = vld [vmem:[%s734_s22 + $0x310] sm:$0xff] }
  0x20   : > { %158 = vst [vmem:[%s739_s23 + $0x80] sm:$0xff] %v157_v16  ;;  %v227_v51 = vld [vmem:[%s734_s22 + $0x318] sm:$0xff]  ;;  %v229_v52 = vld [vmem:[%s734_s22 + $0x320] sm:$0xff]  ;;  %v231_v53 = vld [vmem:[%s734_s22 + $0x328] sm:$0xff] }
  0x21   : > { %160 = vst [vmem:[%s739_s23 + $0x88] sm:$0xff] %v159_v17  ;;  %v233_v54 = vld [vmem:[%s734_s22 + $0x330] sm:$0xff]  ;;  %v235_v55 = vld [vmem:[%s734_s22 + $0x338] sm:$0xff]  ;;  %v237_v56 = vld [vmem:[%s734_s22 + $0x380] sm:$0xff] }
  0x22   : > { %162 = vst [vmem:[%s739_s23 + $0x90] sm:$0xff] %v161_v18  ;;  %v239_v57 = vld [vmem:[%s734_s22 + $0x388] sm:$0xff]  ;;  %v241_v58 = vld [vmem:[%s734_s22 + $0x390] sm:$0xff]  ;;  %v243_v59 = vld [vmem:[%s734_s22 + $0x398] sm:$0xff] }
  0x23   : > { %164 = vst [vmem:[%s739_s23 + $0x98] sm:$0xff] %v163_v19  ;;  %v245_v60 = vld [vmem:[%s734_s22 + $0x3a0] sm:$0xff]  ;;  %v247_v61 = vld [vmem:[%s734_s22 + $0x3a8] sm:$0xff]  ;;  %v249_v62 = vld [vmem:[%s734_s22 + $0x3b0] sm:$0xff] }
  0x24   : > { %166 = vst [vmem:[%s739_s23 + $0xa0] sm:$0xff] %v165_v20  ;;  %v251_v63 = vld [vmem:[%s734_s22 + $0x3b8] sm:$0xff] }
  0x25   : > { %168 = vst [vmem:[%s739_s23 + $0xa8] sm:$0xff] %v167_v21 }
  0x26   : > { %170 = vst [vmem:[%s739_s23 + $0xb0] sm:$0xff] %v169_v22 }
  0x27   : > { %172 = vst [vmem:[%s739_s23 + $0xb8] sm:$0xff] %v171_v23 }
  0x28   : > { %174 = vst [vmem:[%s739_s23 + $0xc0] sm:$0xff] %v173_v24 }
  0x29   : > { %176 = vst [vmem:[%s739_s23 + $0xc8] sm:$0xff] %v175_v25 }
  0x2a   : > { %178 = vst [vmem:[%s739_s23 + $0xd0] sm:$0xff] %v177_v26 }
  0x2b   : > { %180 = vst [vmem:[%s739_s23 + $0xd8] sm:$0xff] %v179_v27 }
  0x2c   : > { %182 = vst [vmem:[%s739_s23 + $0xe0] sm:$0xff] %v181_v28 }
  0x2d   : > { %184 = vst [vmem:[%s739_s23 + $0xe8] sm:$0xff] %v183_v29 }
  0x2e   : > { %186 = vst [vmem:[%s739_s23 + $0xf0] sm:$0xff] %v185_v30 }
  0x2f   : > { %188 = vst [vmem:[%s739_s23 + $0xf8] sm:$0xff] %v187_v31 }
  0x30   : > { %190 = vst [vmem:[%s739_s23 + $0x100] sm:$0xff] %v189_v32 }
  0x31   : > { %192 = vst [vmem:[%s739_s23 + $0x108] sm:$0xff] %v191_v33 }
  0x32   : > { %194 = vst [vmem:[%s739_s23 + $0x110] sm:$0xff] %v193_v34 }
  0x33   : > { %196 = vst [vmem:[%s739_s23 + $0x118] sm:$0xff] %v195_v35 }
  0x34   : > { %198 = vst [vmem:[%s739_s23 + $0x120] sm:$0xff] %v197_v36 }
  0x35   : > { %200 = vst [vmem:[%s739_s23 + $0x128] sm:$0xff] %v199_v37 }
  0x36   : > { %202 = vst [vmem:[%s739_s23 + $0x130] sm:$0xff] %v201_v38 }
  0x37   : > { %204 = vst [vmem:[%s739_s23 + $0x138] sm:$0xff] %v203_v39 }
  0x38   : > { %206 = vst [vmem:[%s739_s23 + $0x140] sm:$0xff] %v205_v40 }
  0x39   : > { %208 = vst [vmem:[%s739_s23 + $0x148] sm:$0xff] %v207_v41 }
  0x3a   : > { %210 = vst [vmem:[%s739_s23 + $0x150] sm:$0xff] %v209_v42 }
  0x3b   : > { %212 = vst [vmem:[%s739_s23 + $0x158] sm:$0xff] %v211_v43 }
  0x3c   : > { %214 = vst [vmem:[%s739_s23 + $0x160] sm:$0xff] %v213_v44 }
  0x3d   : > { %216 = vst [vmem:[%s739_s23 + $0x168] sm:$0xff] %v215_v45 }
  0x3e   : > { %218 = vst [vmem:[%s739_s23 + $0x170] sm:$0xff] %v217_v46 }
  0x3f   : > { %220 = vst [vmem:[%s739_s23 + $0x178] sm:$0xff] %v219_v47 }
  0x40   : > { %222 = vst [vmem:[%s739_s23 + $0x180] sm:$0xff] %v221_v48 }
  0x41   : > { %224 = vst [vmem:[%s739_s23 + $0x188] sm:$0xff] %v223_v49 }
  0x42   : > { %226 = vst [vmem:[%s739_s23 + $0x190] sm:$0xff] %v225_v50 }
  0x43   : > { %228 = vst [vmem:[%s739_s23 + $0x198] sm:$0xff] %v227_v51 }
  0x44   : > { %230 = vst [vmem:[%s739_s23 + $0x1a0] sm:$0xff] %v229_v52 }
  0x45   : > { %232 = vst [vmem:[%s739_s23 + $0x1a8] sm:$0xff] %v231_v53 }
  0x46   : > { %234 = vst [vmem:[%s739_s23 + $0x1b0] sm:$0xff] %v233_v54 }
  0x47   : > { %236 = vst [vmem:[%s739_s23 + $0x1b8] sm:$0xff] %v235_v55 }
  0x48   : > { %238 = vst [vmem:[%s739_s23 + $0x1c0] sm:$0xff] %v237_v56 }
  0x49   : > { %240 = vst [vmem:[%s739_s23 + $0x1c8] sm:$0xff] %v239_v57 }
  0x4a   : > { %242 = vst [vmem:[%s739_s23 + $0x1d0] sm:$0xff] %v241_v58 }
  0x4b   : > { %244 = vst [vmem:[%s739_s23 + $0x1d8] sm:$0xff] %v243_v59 }
  0x4c   : > { %246 = vst [vmem:[%s739_s23 + $0x1e0] sm:$0xff] %v245_v60 }
  0x4d   : > { %248 = vst [vmem:[%s739_s23 + $0x1e8] sm:$0xff] %v247_v61 }
  0x4e   : > { %250 = vst [vmem:[%s739_s23 + $0x1f0] sm:$0xff] %v249_v62 }
  0x4f   : > { %252 = vst [vmem:[%s739_s23 + $0x1f8] sm:$0xff] %v251_v63 }
  0x50 PF: > { %p622_p5 = scmp.ge.s32.totalorder %s683_s11, 1  ;;  %p257_p6 = scmp.lt.s32.totalorder %s683_s11, 3 }
  0x52   : > { %p258_p7 = pnand %p622_p5, %p257_p6 }
  0x53   : > { %s264_s24 = sand.u32 (!%p258_p7), 1, %s675_s9   ;;  %s624_s29 = sshll.u32 (!%p258_p7), %s615_s12, 3 }
  0x54   : > { %261 = sbr.rel (%p258_p7) target bundleno = 259 (0x103), region = 47  ;;  %s623_s25 = sshll.u32 (!%p258_p7), %s264_s24, 9 }
  0x55   : > { %s869_s26 = scalar_lea.vmem (!%p258_p7), [#allocation2], %s623_s25  ;;  %p287_p8 = scmp.lt.s32.totalorder (!%p258_p7), %s624_s29, 15 }
  0x59   : > { %v351_v0 = vld [vmem:[%s869_s26 + $0x1d0] sm:$0xff]  ;;  %v352_v1 = vld [vmem:[%s869_s26 + $0x1d8] sm:$0xff]  ;;  %v349_v4 = vld [vmem:[%s869_s26 + $0x1c0] sm:$0xff]  ;;  %vm357_vm0 = vcmask 523264   ;;  %s978_s29 = smov (!%p287_p8, %s624_s29), 15 }
  0x5a   : > { %v343_v2 = vld [vmem:[%s869_s26 + $0x190] sm:$0xff]  ;;  %409 = vmatpush.msra.mxu2 %v351_v0  ;;  %429 = vmatpush.msra.mxu3 %v352_v1  ;;  %v344_v3 = vld [vmem:[%s869_s26 + $0x198] sm:$0xff]  ;;  %v350_v5 = vld [vmem:[%s869_s26 + $0x1c8] sm:$0xff]  ;;  %s625_s30 = sshll.u32 %s978_s29, 3 }
  0x5b   : > { %369 = vmatpush.msra.mxu0 %v349_v4  ;;  %389 = vmatpush.msra.mxu1 %v350_v5  ;;  %v335_v6 = vld [vmem:[%s869_s26 + $0x150] sm:$0xff]  ;;  %v336_v7 = vld [vmem:[%s869_s26 + $0x158] sm:$0xff]  ;;  %v341_v8 = vld [vmem:[%s869_s26 + $0x180] sm:$0xff]  ;;  %s951_s5 = scalar_lea.vmem %s973_s2, %s625_s30 }
  0x5c   : > { %410 = vmatpush.msra.mxu2 %v343_v2  ;;  %430 = vmatpush.msra.mxu3 %v344_v3  ;;  %v342_v9 = vld [vmem:[%s869_s26 + $0x188] sm:$0xff]  ;;  %v327_v10 = vld [vmem:[%s869_s26 + $0x110] sm:$0xff]  ;;  %v328_v11 = vld [vmem:[%s869_s26 + $0x118] sm:$0xff] }
  0x5d   : > { %370 = vmatpush.msra.mxu0 %v341_v8  ;;  %390 = vmatpush.msra.mxu1 %v342_v9  ;;  %v333_v12 = vld [vmem:[%s869_s26 + $0x140] sm:$0xff]  ;;  %v334_v13 = vld [vmem:[%s869_s26 + $0x148] sm:$0xff]  ;;  %v319_v16 = vld [vmem:[%s869_s26 + $0xd0] sm:$0xff] }
  0x5e   : > { %411 = vmatpush.msra.mxu2 %v335_v6  ;;  %431 = vmatpush.msra.mxu3 %v336_v7  ;;  %v325_v14 = vld [vmem:[%s869_s26 + $0x100] sm:$0xff]  ;;  %v326_v15 = vld [vmem:[%s869_s26 + $0x108] sm:$0xff]  ;;  %v320_v17 = vld [vmem:[%s869_s26 + $0xd8] sm:$0xff] }
  0x5f   : > { %371 = vmatpush.msra.mxu0 %v333_v12  ;;  %391 = vmatpush.msra.mxu1 %v334_v13  ;;  %v317_v18 = vld [vmem:[%s869_s26 + $0xc0] sm:$0xff]  ;;  %v318_v19 = vld [vmem:[%s869_s26 + $0xc8] sm:$0xff]  ;;  %v311_v20 = vld [vmem:[%s869_s26 + $0x90] sm:$0xff] }
  0x60   : > { %412 = vmatpush.msra.mxu2 %v327_v10  ;;  %432 = vmatpush.msra.mxu3 %v328_v11  ;;  %v312_v21 = vld [vmem:[%s869_s26 + $0x98] sm:$0xff]  ;;  %v309_v22 = vld [vmem:[%s869_s26 + $0x80] sm:$0xff]  ;;  %v310_v23 = vld [vmem:[%s869_s26 + $0x88] sm:$0xff] }
  0x61   : > { %372 = vmatpush.msra.mxu0 %v325_v14  ;;  %392 = vmatpush.msra.mxu1 %v326_v15  ;;  %v303_v24 = vld [vmem:[%s869_s26 + $0x50] sm:$0xff]  ;;  %v304_v25 = vld [vmem:[%s869_s26 + $0x58] sm:$0xff]  ;;  %v301_v26 = vld [vmem:[%s869_s26 + $0x40] sm:$0xff] }
  0x62   : > { %413 = vmatpush.msra.mxu2 %v319_v16  ;;  %433 = vmatpush.msra.mxu3 %v320_v17  ;;  %v302_v27 = vld [vmem:[%s869_s26 + $0x48] sm:$0xff]  ;;  %v295_v28 = vld [vmem:[%s869_s26 + $0x10] sm:$0xff]  ;;  %v296_v29 = vld [vmem:[%s869_s26 + $0x18] sm:$0xff] }
  0x63   : > { %373 = vmatpush.msra.mxu0 %v317_v18  ;;  %393 = vmatpush.msra.mxu1 %v318_v19  ;;  %v355_v30 = vld [vmem:[%s869_s26 + $0x1f0] sm:$0xff]  ;;  %v356_v31 = vld [vmem:[%s869_s26 + $0x1f8] sm:$0xff]  ;;  %v293_v32 = vld [vmem:[%s869_s26] sm:$0xff] }
  0x64   : > { %414 = vmatpush.msra.mxu2 %v311_v20  ;;  %434 = vmatpush.msra.mxu3 %v312_v21  ;;  %v294_v33 = vld [vmem:[%s869_s26 + $0x8] sm:$0xff]  ;;  %v347_v34 = vld [vmem:[%s869_s26 + $0x1b0] sm:$0xff]  ;;  %v348_v35 = vld [vmem:[%s869_s26 + $0x1b8] sm:$0xff] }
  0x65   : > { %374 = vmatpush.msra.mxu0 %v309_v22  ;;  %394 = vmatpush.msra.mxu1 %v310_v23  ;;  %v353_v36 = vld [vmem:[%s869_s26 + $0x1e0] sm:$0xff]  ;;  %v354_v37 = vld [vmem:[%s869_s26 + $0x1e8] sm:$0xff]  ;;  %v339_v38 = vld [vmem:[%s869_s26 + $0x170] sm:$0xff] }
  0x66   : > { %415 = vmatpush.msra.mxu2 %v303_v24  ;;  %435 = vmatpush.msra.mxu3 %v304_v25  ;;  %v340_v39 = vld [vmem:[%s869_s26 + $0x178] sm:$0xff]  ;;  %v292_v40 = vld [vmem:[%s971_s0] sm:$0xff]  ;;  %v346_v42 = vld [vmem:[%s869_s26 + $0x1a8] sm:$0xff] }
  0x67   : > { %375 = vmatpush.msra.mxu0 %v301_v26  ;;  %395 = vmatpush.msra.mxu1 %v302_v27  ;;  %v345_v41 = vld [vmem:[%s869_s26 + $0x1a0] sm:$0xff]  ;;  %v331_v43 = vld [vmem:[%s869_s26 + $0x130] sm:$0xff]  ;;  %v332_v44 = vld [vmem:[%s869_s26 + $0x138] sm:$0xff] }
  0x68   : > { %416 = vmatpush.msra.mxu2 %v295_v28  ;;  %436 = vmatpush.msra.mxu3 %v296_v29  ;;  %v337_v45 = vld [vmem:[%s869_s26 + $0x160] sm:$0xff]  ;;  %v338_v46 = vld [vmem:[%s869_s26 + $0x168] sm:$0xff]  ;;  %v323_v47 = vld [vmem:[%s869_s26 + $0xf0] sm:$0xff] }
  0x69   : > { %376 = vmatpush.msra.mxu0 %v293_v32  ;;  %396 = vmatpush.msra.mxu1 %v294_v33  ;;  %v324_v48 = vld [vmem:[%s869_s26 + $0xf8] sm:$0xff]  ;;  %v329_v49 = vld [vmem:[%s869_s26 + $0x120] sm:$0xff]  ;;  %v330_v50 = vld [vmem:[%s869_s26 + $0x128] sm:$0xff] }
  0x6a   : > { %489 = vmatpush.msrb.mxu2 %v355_v30  ;;  %509 = vmatpush.msrb.mxu3 %v356_v31  ;;  %v315_v51 = vld [vmem:[%s869_s26 + $0xb0] sm:$0xff]  ;;  %v316_v52 = vld [vmem:[%s869_s26 + $0xb8] sm:$0xff]  ;;  %v321_v53 = vld [vmem:[%s869_s26 + $0xe0] sm:$0xff] }
  0x6b   : > { %449 = vmatpush.msrb.mxu0 %v353_v36  ;;  %469 = vmatpush.msrb.mxu1 %v354_v37  ;;  %v322_v54 = vld [vmem:[%s869_s26 + $0xe8] sm:$0xff]  ;;  %v307_v55 = vld [vmem:[%s869_s26 + $0x70] sm:$0xff]  ;;  %v308_v56 = vld [vmem:[%s869_s26 + $0x78] sm:$0xff] }
  0x6c   : > { %490 = vmatpush.msrb.mxu2 %v347_v34  ;;  %510 = vmatpush.msrb.mxu3 %v348_v35  ;;  %v313_v57 = vld [vmem:[%s869_s26 + $0xa0] sm:$0xff]  ;;  %v314_v58 = vld [vmem:[%s869_s26 + $0xa8] sm:$0xff]  ;;  %v299_v59 = vld [vmem:[%s869_s26 + $0x30] sm:$0xff] }
  0x6d   : > { %628 = vmatmul.msk.f32.vlgmr.msra.gmra.mxu2 %vm357_vm0, %v292_v40  ;;  %629 = vmatmul.msk.f32.vlgmr.msra.gmra.mxu3 %vm357_vm0, %v292_v40  ;;  %v300_v60 = vld [vmem:[%s869_s26 + $0x38] sm:$0xff]  ;;  %v305_v61 = vld [vmem:[%s869_s26 + $0x60] sm:$0xff]  ;;  %v306_v62 = vld [vmem:[%s869_s26 + $0x68] sm:$0xff] }
  0x6e   : > { %491 = vmatpush.msrb.mxu2 %v339_v38  ;;  %511 = vmatpush.msrb.mxu3 %v340_v39  ;;  %v297_v63 = vld [vmem:[%s869_s26 + $0x20] sm:$0xff]  ;;  %v298_v0 = vld [vmem:[%s869_s26 + $0x28] sm:$0xff] }
  0x6f   : > { %450 = vmatpush.msrb.mxu0 %v345_v41  ;;  %470 = vmatpush.msrb.mxu1 %v346_v42 }
  0x70   : > { %492 = vmatpush.msrb.mxu2 %v331_v43  ;;  %512 = vmatpush.msrb.mxu3 %v332_v44 }
  0x71   : > { %451 = vmatpush.msrb.mxu0 %v337_v45  ;;  %471 = vmatpush.msrb.mxu1 %v338_v46 }
  0x72   : > { %493 = vmatpush.msrb.mxu2 %v323_v47  ;;  %513 = vmatpush.msrb.mxu3 %v324_v48 }
  0x73   : > { %452 = vmatpush.msrb.mxu0 %v329_v49  ;;  %472 = vmatpush.msrb.mxu1 %v330_v50 }
  0x74   : > { %494 = vmatpush.msrb.mxu2 %v315_v51  ;;  %514 = vmatpush.msrb.mxu3 %v316_v52 }
  0x75   : > { %626 = vmatmul.msk.f32.vlgmr.msra.gmra.mxu0 %vm357_vm0, %v292_v40  ;;  %627 = vmatmul.msk.f32.vlgmr.msra.gmra.mxu1 %vm357_vm0, %v292_v40 }
  0x76   : > { %453 = vmatpush.msrb.mxu0 %v321_v53  ;;  %473 = vmatpush.msrb.mxu1 %v322_v54 }
  0x77   : > { %495 = vmatpush.msrb.mxu2 %v307_v55  ;;  %515 = vmatpush.msrb.mxu3 %v308_v56 }
  0x78   : > { %454 = vmatpush.msrb.mxu0 %v313_v57  ;;  %474 = vmatpush.msrb.mxu1 %v314_v58 }
  0x79   : > { %496 = vmatpush.msrb.mxu2 %v299_v59  ;;  %516 = vmatpush.msrb.mxu3 %v300_v60 }
  0x7a   : > { %632 = vmatmul.msk.f32.vlgmr.msrb.gmra.mxu2 %vm357_vm0, %v292_v40  ;;  %633 = vmatmul.msk.f32.vlgmr.msrb.gmra.mxu3 %vm357_vm0, %v292_v40 }
  0x7b   : > { %455 = vmatpush.msrb.mxu0 %v305_v61  ;;  %475 = vmatpush.msrb.mxu1 %v306_v62 }
  0x7d   : > { %456 = vmatpush.msrb.mxu0 %v297_v63  ;;  %476 = vmatpush.msrb.mxu1 %v298_v0 }
  0x7e   : > { %630 = vmatmul.msk.f32.vlgmr.msrb.gmra.mxu0 %vm357_vm0, %v292_v40  ;;  %631 = vmatmul.msk.f32.vlgmr.msrb.gmra.mxu1 %vm357_vm0, %v292_v40 }
  0xf0   : > { %v418_v1 = vpop.f32.mrf.mxu2  ;;  %v438_v2 = vpop.f32.mrf.mxu3 }
  0xf1   : > { %vm523_vm1 = vcmp.ge.f32.partialorder %v418_v1, 0.0  ;;  %v531_v5 = vmul.f32 0.2, %v418_v1  ;;  %vm524_vm2 = vcmp.ge.f32.partialorder %v438_v2, 0.0  ;;  %v532_v6 = vmul.f32 0.2, %v438_v2 }
  0xf2   : > { %v378_v3 = vpop.f32.mrf.mxu0  ;;  %v398_v4 = vpop.f32.mrf.mxu1 }
  0xf3   : > { %vm521_vm3 = vcmp.ge.f32.partialorder %v378_v3, 0.0  ;;  %v529_v7 = vmul.f32 0.2, %v378_v3  ;;  %vm522_vm4 = vcmp.ge.f32.partialorder %v398_v4, 0.0  ;;  %v530_v8 = vmul.f32 0.2, %v398_v4 }
  0xf4   : > { %v539_v9 = vsel %vm523_vm1, %v418_v1, %v531_v5  ;;  %v540_v12 = vsel %vm524_vm2, %v438_v2, %v532_v6 }
  0xf5   : > { %v537_v10 = vsel %vm521_vm3, %v378_v3, %v529_v7  ;;  %v538_v11 = vsel %vm522_vm4, %v398_v4, %v530_v8  ;;  %547 = vst [vmem:[%s951_s5 + $0x10] sm:$0xff] %v539_v9 }
  0xf6   : > { %545 = vst [vmem:[%s951_s5] sm:$0xff] %v537_v10 }
  0xf7   : > { %546 = vst [vmem:[%s951_s5 + $0x8] sm:$0xff] %v538_v11 }
  0xf8   : > { %548 = vst [vmem:[%s951_s5 + $0x18] sm:$0xff] %v540_v12 }
  0xfb   : > { %v458_v13 = vpop.f32.mrf.mxu0  ;;  %v478_v14 = vpop.f32.mrf.mxu1 }
  0xfc   : > { %vm525_vm5 = vcmp.ge.f32.partialorder %v458_v13, 0.0  ;;  %v533_v15 = vmul.f32 0.2, %v458_v13  ;;  %vm526_vm6 = vcmp.ge.f32.partialorder %v478_v14, 0.0  ;;  %v534_v16 = vmul.f32 0.2, %v478_v14 }
  0xfd   : > { %v498_v17 = vpop.f32.mrf.mxu2  ;;  %v518_v18 = vpop.f32.mrf.mxu3 }
  0xfe   : > { %v541_v19 = vsel %vm525_vm5, %v458_v13, %v533_v15  ;;  %v542_v20 = vsel %vm526_vm6, %v478_v14, %v534_v16  ;;  %vm527_vm7 = vcmp.ge.f32.partialorder %v498_v17, 0.0  ;;  %v535_v21 = vmul.f32 0.2, %v498_v17 }
  0xff   : > { %549 = vst [vmem:[%s951_s5 + $0x20] sm:$0xff] %v541_v19  ;;  %vm528_vm8 = vcmp.ge.f32.partialorder %v518_v18, 0.0  ;;  %v536_v22 = vmul.f32 0.2, %v518_v18 }
 0x100   : > { %550 = vst [vmem:[%s951_s5 + $0x28] sm:$0xff] %v542_v20  ;;  %v543_v23 = vsel %vm527_vm7, %v498_v17, %v535_v21 }
 0x101   : > { %551 = vst [vmem:[%s951_s5 + $0x30] sm:$0xff] %v543_v23  ;;  %v544_v24 = vsel %vm528_vm8, %v518_v18, %v536_v22 }
 0x102   : > { %552 = vst [vmem:[%s951_s5 + $0x38] sm:$0xff] %v544_v24 }
 0x103 PF: > { %p9_p9 = scmp.ge.s32.totalorder %s717_s13, 4   ;;  %s974_s9 = smov %s679_s10 }
 0x104   : > { %s975_s10 = smov %s726_s16  ;;  %s976_s11 = smov %s717_s13 }
 0x105   :  { %11 = sbr.rel (!%p9_p9) target bundleno = 2 (0x2), region = 86 }

// kernel: discriminator_forward.8
= control target key start
LH: loop header
LB: loop body
LE: loop exit
PB: predicated region body
PF: predicated region fallthrough
CT: control target
= control target key end

     0   :  { %s442_s1 = inlined_call_operand.vmem [shape: f32[128,512], index: 1, kind: input, shape index: {}]   ;;  %s443_s0 = inlined_call_operand.vmem [shape: f32[16,128], index: 0, kind: input, shape index: {}]   ;;  %s444_s2 = inlined_call_operand.vmem [shape: f32[16,512], index: 2, kind: output, shape index: {}]  }
   0x1   :  { %v75_v0 = vld [vmem:[%s442_s1 + $0x1f0] sm:$0xff]  ;;  %v76_v1 = vld [vmem:[%s442_s1 + $0x1f8] sm:$0xff]  ;;  %v73_v4 = vld [vmem:[%s442_s1 + $0x1e0] sm:$0xff] }
   0x2   :  { %v71_v2 = vld [vmem:[%s442_s1 + $0x1d0] sm:$0xff]  ;;  %123 = vmatpush.msra.mxu2 %v75_v0  ;;  %146 = vmatpush.msra.mxu3 %v76_v1  ;;  %v72_v3 = vld [vmem:[%s442_s1 + $0x1d8] sm:$0xff]  ;;  %v74_v5 = vld [vmem:[%s442_s1 + $0x1e8] sm:$0xff] }
   0x3   :  { %77 = vmatpush.msra.mxu0 %v73_v4  ;;  %100 = vmatpush.msra.mxu1 %v74_v5  ;;  %v67_v6 = vld [vmem:[%s442_s1 + $0x1b0] sm:$0xff]  ;;  %v68_v7 = vld [vmem:[%s442_s1 + $0x1b8] sm:$0xff]  ;;  %v69_v8 = vld [vmem:[%s442_s1 + $0x1c0] sm:$0xff] }
   0x4   :  { %124 = vmatpush.msra.mxu2 %v71_v2  ;;  %147 = vmatpush.msra.mxu3 %v72_v3  ;;  %v70_v9 = vld [vmem:[%s442_s1 + $0x1c8] sm:$0xff]  ;;  %v63_v10 = vld [vmem:[%s442_s1 + $0x190] sm:$0xff]  ;;  %v64_v11 = vld [vmem:[%s442_s1 + $0x198] sm:$0xff] }
   0x5   :  { %78 = vmatpush.msra.mxu0 %v69_v8  ;;  %101 = vmatpush.msra.mxu1 %v70_v9  ;;  %v65_v12 = vld [vmem:[%s442_s1 + $0x1a0] sm:$0xff]  ;;  %v66_v13 = vld [vmem:[%s442_s1 + $0x1a8] sm:$0xff]  ;;  %v59_v16 = vld [vmem:[%s442_s1 + $0x170] sm:$0xff] }
   0x6   :  { %125 = vmatpush.msra.mxu2 %v67_v6  ;;  %148 = vmatpush.msra.mxu3 %v68_v7  ;;  %v61_v14 = vld [vmem:[%s442_s1 + $0x180] sm:$0xff]  ;;  %v62_v15 = vld [vmem:[%s442_s1 + $0x188] sm:$0xff]  ;;  %v60_v17 = vld [vmem:[%s442_s1 + $0x178] sm:$0xff] }
   0x7   :  { %79 = vmatpush.msra.mxu0 %v65_v12  ;;  %102 = vmatpush.msra.mxu1 %v66_v13  ;;  %v57_v18 = vld [vmem:[%s442_s1 + $0x160] sm:$0xff]  ;;  %v58_v19 = vld [vmem:[%s442_s1 + $0x168] sm:$0xff]  ;;  %v55_v20 = vld [vmem:[%s442_s1 + $0x150] sm:$0xff] }
   0x8   :  { %126 = vmatpush.msra.mxu2 %v63_v10  ;;  %149 = vmatpush.msra.mxu3 %v64_v11  ;;  %v56_v21 = vld [vmem:[%s442_s1 + $0x158] sm:$0xff]  ;;  %v53_v22 = vld [vmem:[%s442_s1 + $0x140] sm:$0xff]  ;;  %v54_v23 = vld [vmem:[%s442_s1 + $0x148] sm:$0xff] }
   0x9   :  { %80 = vmatpush.msra.mxu0 %v61_v14  ;;  %103 = vmatpush.msra.mxu1 %v62_v15  ;;  %v51_v24 = vld [vmem:[%s442_s1 + $0x130] sm:$0xff]  ;;  %v52_v25 = vld [vmem:[%s442_s1 + $0x138] sm:$0xff]  ;;  %v49_v26 = vld [vmem:[%s442_s1 + $0x120] sm:$0xff] }
   0xa   :  { %127 = vmatpush.msra.mxu2 %v59_v16  ;;  %150 = vmatpush.msra.mxu3 %v60_v17  ;;  %v50_v27 = vld [vmem:[%s442_s1 + $0x128] sm:$0xff]  ;;  %v47_v28 = vld [vmem:[%s442_s1 + $0x110] sm:$0xff]  ;;  %v48_v29 = vld [vmem:[%s442_s1 + $0x118] sm:$0xff] }
   0xb   :  { %81 = vmatpush.msra.mxu0 %v57_v18  ;;  %104 = vmatpush.msra.mxu1 %v58_v19  ;;  %v45_v30 = vld [vmem:[%s442_s1 + $0x100] sm:$0xff]  ;;  %v46_v31 = vld [vmem:[%s442_s1 + $0x108] sm:$0xff]  ;;  %v43_v32 = vld [vmem:[%s442_s1 + $0xf0] sm:$0xff] }
   0xc   :  { %128 = vmatpush.msra.mxu2 %v55_v20  ;;  %151 = vmatpush.msra.mxu3 %v56_v21  ;;  %v44_v33 = vld [vmem:[%s442_s1 + $0xf8] sm:$0xff]  ;;  %v41_v34 = vld [vmem:[%s442_s1 + $0xe0] sm:$0xff]  ;;  %v42_v35 = vld [vmem:[%s442_s1 + $0xe8] sm:$0xff] }
   0xd   :  { %82 = vmatpush.msra.mxu0 %v53_v22  ;;  %105 = vmatpush.msra.mxu1 %v54_v23  ;;  %v39_v36 = vld [vmem:[%s442_s1 + $0xd0] sm:$0xff]  ;;  %v40_v37 = vld [vmem:[%s442_s1 + $0xd8] sm:$0xff]  ;;  %v37_v38 = vld [vmem:[%s442_s1 + $0xc0] sm:$0xff] }
   0xe   :  { %129 = vmatpush.msra.mxu2 %v51_v24  ;;  %152 = vmatpush.msra.mxu3 %v52_v25  ;;  %v38_v39 = vld [vmem:[%s442_s1 + $0xc8] sm:$0xff]  ;;  %v35_v40 = vld [vmem:[%s442_s1 + $0xb0] sm:$0xff]  ;;  %v36_v41 = vld [vmem:[%s442_s1 + $0xb8] sm:$0xff] }
   0xf   :  { %83 = vmatpush.msra.mxu0 %v49_v26  ;;  %106 = vmatpush.msra.mxu1 %v50_v27  ;;  %v33_v42 = vld [vmem:[%s442_s1 + $0xa0] sm:$0xff]  ;;  %v34_v43 = vld [vmem:[%s442_s1 + $0xa8] sm:$0xff]  ;;  %v31_v44 = vld [vmem:[%s442_s1 + $0x90] sm:$0xff] }
  0x10   :  { %130 = vmatpush.msra.mxu2 %v47_v28  ;;  %153 = vmatpush.msra.mxu3 %v48_v29  ;;  %v32_v45 = vld [vmem:[%s442_s1 + $0x98] sm:$0xff]  ;;  %v29_v46 = vld [vmem:[%s442_s1 + $0x80] sm:$0xff]  ;;  %v30_v47 = vld [vmem:[%s442_s1 + $0x88] sm:$0xff] }
  0x11   :  { %84 = vmatpush.msra.mxu0 %v45_v30  ;;  %107 = vmatpush.msra.mxu1 %v46_v31  ;;  %v27_v48 = vld [vmem:[%s442_s1 + $0x70] sm:$0xff]  ;;  %v28_v49 = vld [vmem:[%s442_s1 + $0x78] sm:$0xff]  ;;  %v25_v50 = vld [vmem:[%s442_s1 + $0x60] sm:$0xff] }
  0x12   :  { %131 = vmatpush.msra.mxu2 %v43_v32  ;;  %154 = vmatpush.msra.mxu3 %v44_v33  ;;  %v26_v51 = vld [vmem:[%s442_s1 + $0x68] sm:$0xff]  ;;  %v23_v52 = vld [vmem:[%s442_s1 + $0x50] sm:$0xff]  ;;  %v24_v53 = vld [vmem:[%s442_s1 + $0x58] sm:$0xff] }
  0x13   :  { %85 = vmatpush.msra.mxu0 %v41_v34  ;;  %108 = vmatpush.msra.mxu1 %v42_v35  ;;  %v21_v54 = vld [vmem:[%s442_s1 + $0x40] sm:$0xff]  ;;  %v22_v55 = vld [vmem:[%s442_s1 + $0x48] sm:$0xff]  ;;  %v19_v56 = vld [vmem:[%s442_s1 + $0x30] sm:$0xff] }
  0x14   :  { %132 = vmatpush.msra.mxu2 %v39_v36  ;;  %155 = vmatpush.msra.mxu3 %v40_v37  ;;  %v20_v57 = vld [vmem:[%s442_s1 + $0x38] sm:$0xff]  ;;  %v17_v58 = vld [vmem:[%s442_s1 + $0x20] sm:$0xff]  ;;  %v18_v59 = vld [vmem:[%s442_s1 + $0x28] sm:$0xff] }
  0x15   :  { %86 = vmatpush.msra.mxu0 %v37_v38  ;;  %109 = vmatpush.msra.mxu1 %v38_v39  ;;  %v15_v60 = vld [vmem:[%s442_s1 + $0x10] sm:$0xff]  ;;  %v16_v61 = vld [vmem:[%s442_s1 + $0x18] sm:$0xff]  ;;  %v11_v62 = vld [vmem:[%s443_s0] sm:$0xff] }
  0x16   :  { %133 = vmatpush.msra.mxu2 %v35_v40  ;;  %156 = vmatpush.msra.mxu3 %v36_v41  ;;  %v13_v63 = vld [vmem:[%s442_s1] sm:$0xff]  ;;  %v14_v0 = vld [vmem:[%s442_s1 + $0x8] sm:$0xff] }
  0x17   :  { %87 = vmatpush.msra.mxu0 %v33_v42  ;;  %110 = vmatpush.msra.mxu1 %v34_v43  ;;  %v12_v1 = vld [vmem:[%s443_s0 + $0x8] sm:$0xff] }
  0x18   :  { %134 = vmatpush.msra.mxu2 %v31_v44  ;;  %157 = vmatpush.msra.mxu3 %v32_v45 }
  0x19   :  { %88 = vmatpush.msra.mxu0 %v29_v46  ;;  %111 = vmatpush.msra.mxu1 %v30_v47 }
  0x1a   :  { %135 = vmatpush.msra.mxu2 %v27_v48  ;;  %158 = vmatpush.msra.mxu3 %v28_v49 }
  0x1b   :  { %89 = vmatpush.msra.mxu0 %v25_v50  ;;  %112 = vmatpush.msra.mxu1 %v26_v51 }
  0x1c   :  { %136 = vmatpush.msra.mxu2 %v23_v52  ;;  %159 = vmatpush.msra.mxu3 %v24_v53 }
  0x1d   :  { %90 = vmatpush.msra.mxu0 %v21_v54  ;;  %113 = vmatpush.msra.mxu1 %v22_v55 }
  0x1e   :  { %137 = vmatpush.msra.mxu2 %v19_v56  ;;  %160 = vmatpush.msra.mxu3 %v20_v57 }
  0x1f   :  { %91 = vmatpush.msra.mxu0 %v17_v58  ;;  %114 = vmatpush.msra.mxu1 %v18_v59 }
  0x20   :  { %138 = vmatpush.msra.mxu2 %v15_v60  ;;  %161 = vmatpush.msra.mxu3 %v16_v61 }
  0x21   :  { %139 = vmatmul.f32.vlgmr.msra.gmra.mxu2 %v11_v62  ;;  %162 = vmatmul.f32.vlgmr.msra.gmra.mxu3 %v11_v62 }
  0x22   :  { %92 = vmatpush.msra.mxu0 %v13_v63  ;;  %115 = vmatpush.msra.mxu1 %v14_v0 }
  0x23   :  { %93 = vmatmul.f32.vlgmr.msra.gmra.mxu0 %v11_v62  ;;  %116 = vmatmul.f32.vlgmr.msra.gmra.mxu1 %v11_v62 }
  0x29   :  { %142 = vmatmul.f32.gmra.mxu2 %v12_v1  ;;  %165 = vmatmul.f32.gmra.mxu3 %v12_v1 }
  0x2b   :  { %96 = vmatmul.f32.gmra.mxu0 %v12_v1  ;;  %119 = vmatmul.f32.gmra.mxu1 %v12_v1 }
  0xa0   :  { %v94_v2 = vpop.f32.mrf.mxu0  ;;  %v117_v3 = vpop.f32.mrf.mxu1 }
  0xa1   :  { %vm169_vm0 = vcmp.ge.f32.partialorder %v94_v2, 0.0  ;;  %v177_v4 = vmul.f32 0.2, %v94_v2  ;;  %vm170_vm1 = vcmp.ge.f32.partialorder %v117_v3, 0.0  ;;  %v178_v5 = vmul.f32 0.2, %v117_v3 }
  0xa3   :  { %v185_v6 = vsel %vm169_vm0, %v94_v2, %v177_v4  ;;  %v186_v7 = vsel %vm170_vm1, %v117_v3, %v178_v5 }
  0xa4   :  { %193 = vst [vmem:[%s444_s2] sm:$0xff] %v185_v6  ;;  %v140_v8 = vpop.f32.mrf.mxu2  ;;  %v163_v9 = vpop.f32.mrf.mxu3 }
  0xa5   :  { %194 = vst [vmem:[%s444_s2 + $0x8] sm:$0xff] %v186_v7  ;;  %vm171_vm2 = vcmp.ge.f32.partialorder %v140_v8, 0.0  ;;  %v179_v10 = vmul.f32 0.2, %v140_v8  ;;  %vm172_vm3 = vcmp.ge.f32.partialorder %v163_v9, 0.0 }
  0xa6   :  { %v180_v11 = vmul.f32 0.2, %v163_v9 }
  0xa7   :  { %v187_v12 = vsel %vm171_vm2, %v140_v8, %v179_v10 }
  0xa8   :  { %195 = vst [vmem:[%s444_s2 + $0x10] sm:$0xff] %v187_v12  ;;  %v188_v13 = vsel %vm172_vm3, %v163_v9, %v180_v11  ;;  %v97_v14 = vpop.f32.mrf.mxu0  ;;  %v120_v15 = vpop.f32.mrf.mxu1 }
  0xa9   :  { %196 = vst [vmem:[%s444_s2 + $0x18] sm:$0xff] %v188_v13  ;;  %vm173_vm4 = vcmp.ge.f32.partialorder %v97_v14, 0.0  ;;  %v181_v16 = vmul.f32 0.2, %v97_v14  ;;  %vm174_vm5 = vcmp.ge.f32.partialorder %v120_v15, 0.0 }
  0xaa   :  { %v182_v17 = vmul.f32 0.2, %v120_v15 }
  0xab   :  { %v189_v18 = vsel %vm173_vm4, %v97_v14, %v181_v16 }
  0xac   :  { %197 = vst [vmem:[%s444_s2 + $0x20] sm:$0xff] %v189_v18  ;;  %v190_v19 = vsel %vm174_vm5, %v120_v15, %v182_v17  ;;  %v143_v20 = vpop.f32.mrf.mxu2  ;;  %v166_v21 = vpop.f32.mrf.mxu3 }
  0xad   :  { %198 = vst [vmem:[%s444_s2 + $0x28] sm:$0xff] %v190_v19  ;;  %vm175_vm6 = vcmp.ge.f32.partialorder %v143_v20, 0.0  ;;  %v183_v22 = vmul.f32 0.2, %v143_v20  ;;  %vm176_vm7 = vcmp.ge.f32.partialorder %v166_v21, 0.0 }
  0xae   :  { %v184_v23 = vmul.f32 0.2, %v166_v21 }
  0xaf   :  { %v191_v24 = vsel %vm175_vm6, %v143_v20, %v183_v22 }
  0xb0   :  { %199 = vst [vmem:[%s444_s2 + $0x30] sm:$0xff] %v191_v24  ;;  %v192_v25 = vsel %vm176_vm7, %v166_v21, %v184_v23 }
  0xb1   :  { %200 = vst [vmem:[%s444_s2 + $0x38] sm:$0xff] %v192_v25 }

// kernel: discriminator_forward.9
= control target key start
LH: loop header
LB: loop body
LE: loop exit
PB: predicated region body
PF: predicated region fallthrough
CT: control target
= control target key end

     0   :  { %s308_s1 = inlined_call_operand.vmem [shape: f32[256,128], index: 1, kind: input, shape index: {}]   ;;  %s309_s0 = inlined_call_operand.vmem [shape: f32[32,256], index: 0, kind: input, shape index: {}]   ;;  %s310_s2 = inlined_call_operand.vmem [shape: f32[32,128], index: 2, kind: output, shape index: {}]  }
   0x1   :  { %v34_v0 = vld [vmem:[%s308_s1 + $0x78] sm:$0xff]  ;;  %v33_v2 = vld [vmem:[%s308_s1 + $0x70] sm:$0xff]  ;;  %v32_v4 = vld [vmem:[%s308_s1 + $0x68] sm:$0xff] }
   0x2   :  { %v50_v1 = vld [vmem:[%s308_s1 + $0xf8] sm:$0xff]  ;;  %129 = vmatpush.msra.mxu2 %v34_v0  ;;  %v49_v3 = vld [vmem:[%s308_s1 + $0xf0] sm:$0xff]  ;;  %51 = vmatpush.msra.mxu0 %v34_v0  ;;  %v48_v5 = vld [vmem:[%s308_s1 + $0xe8] sm:$0xff] }
   0x3   :  { %145 = vmatpush.msra.mxu3 %v50_v1  ;;  %80 = vmatpush.msra.mxu1 %v50_v1  ;;  %v31_v6 = vld [vmem:[%s308_s1 + $0x60] sm:$0xff]  ;;  %v30_v8 = vld [vmem:[%s308_s1 + $0x58] sm:$0xff]  ;;  %v29_v10 = vld [vmem:[%s308_s1 + $0x50] sm:$0xff] }
   0x4   :  { %130 = vmatpush.msra.mxu2 %v33_v2  ;;  %52 = vmatpush.msra.mxu0 %v33_v2  ;;  %v47_v7 = vld [vmem:[%s308_s1 + $0xe0] sm:$0xff]  ;;  %v46_v9 = vld [vmem:[%s308_s1 + $0xd8] sm:$0xff]  ;;  %v45_v11 = vld [vmem:[%s308_s1 + $0xd0] sm:$0xff] }
   0x5   :  { %146 = vmatpush.msra.mxu3 %v49_v3  ;;  %81 = vmatpush.msra.mxu1 %v49_v3  ;;  %v28_v12 = vld [vmem:[%s308_s1 + $0x48] sm:$0xff]  ;;  %v27_v14 = vld [vmem:[%s308_s1 + $0x40] sm:$0xff]  ;;  %v26_v16 = vld [vmem:[%s308_s1 + $0x38] sm:$0xff] }
   0x6   :  { %131 = vmatpush.msra.mxu2 %v32_v4  ;;  %53 = vmatpush.msra.mxu0 %v32_v4  ;;  %v44_v13 = vld [vmem:[%s308_s1 + $0xc8] sm:$0xff]  ;;  %v43_v15 = vld [vmem:[%s308_s1 + $0xc0] sm:$0xff]  ;;  %v42_v17 = vld [vmem:[%s308_s1 + $0xb8] sm:$0xff] }
   0x7   :  { %147 = vmatpush.msra.mxu3 %v48_v5  ;;  %82 = vmatpush.msra.mxu1 %v48_v5  ;;  %v25_v18 = vld [vmem:[%s308_s1 + $0x30] sm:$0xff]  ;;  %v24_v20 = vld [vmem:[%s308_s1 + $0x28] sm:$0xff]  ;;  %v23_v22 = vld [vmem:[%s308_s1 + $0x20] sm:$0xff] }
   0x8   :  { %132 = vmatpush.msra.mxu2 %v31_v6  ;;  %54 = vmatpush.msra.mxu0 %v31_v6  ;;  %v41_v19 = vld [vmem:[%s308_s1 + $0xb0] sm:$0xff]  ;;  %v40_v21 = vld [vmem:[%s308_s1 + $0xa8] sm:$0xff]  ;;  %v39_v23 = vld [vmem:[%s308_s1 + $0xa0] sm:$0xff] }
   0x9   :  { %148 = vmatpush.msra.mxu3 %v47_v7  ;;  %83 = vmatpush.msra.mxu1 %v47_v7  ;;  %v22_v24 = vld [vmem:[%s308_s1 + $0x18] sm:$0xff]  ;;  %v21_v26 = vld [vmem:[%s308_s1 + $0x10] sm:$0xff]  ;;  %v20_v28 = vld [vmem:[%s308_s1 + $0x8] sm:$0xff] }
   0xa   :  { %133 = vmatpush.msra.mxu2 %v30_v8  ;;  %55 = vmatpush.msra.mxu0 %v30_v8  ;;  %v38_v25 = vld [vmem:[%s308_s1 + $0x98] sm:$0xff]  ;;  %v37_v27 = vld [vmem:[%s308_s1 + $0x90] sm:$0xff]  ;;  %v36_v29 = vld [vmem:[%s308_s1 + $0x88] sm:$0xff] }
   0xb   :  { %149 = vmatpush.msra.mxu3 %v46_v9  ;;  %84 = vmatpush.msra.mxu1 %v46_v9  ;;  %v19_v30 = vld [vmem:[%s308_s1] sm:$0xff]  ;;  %v16_v33 = vld [vmem:[%s309_s0 + $0x28] sm:$0xff]  ;;  %v17_v36 = vld [vmem:[%s309_s0 + $0x30] sm:$0xff] }
   0xc   :  { %134 = vmatpush.msra.mxu2 %v29_v10  ;;  %56 = vmatpush.msra.mxu0 %v29_v10  ;;  %v35_v31 = vld [vmem:[%s308_s1 + $0x80] sm:$0xff]  ;;  %v12_v35 = vld [vmem:[%s309_s0 + $0x8] sm:$0xff]  ;;  %v18_v37 = vld [vmem:[%s309_s0 + $0x38] sm:$0xff] }
   0xd   :  { %150 = vmatpush.msra.mxu3 %v45_v11  ;;  %85 = vmatpush.msra.mxu1 %v45_v11  ;;  %v15_v32 = vld [vmem:[%s309_s0 + $0x20] sm:$0xff]  ;;  %v13_v38 = vld [vmem:[%s309_s0 + $0x10] sm:$0xff]  ;;  %v14_v39 = vld [vmem:[%s309_s0 + $0x18] sm:$0xff] }
   0xe   :  { %135 = vmatpush.msra.mxu2 %v28_v12  ;;  %57 = vmatpush.msra.mxu0 %v28_v12  ;;  %v11_v34 = vld [vmem:[%s309_s0] sm:$0xff] }
   0xf   :  { %151 = vmatpush.msra.mxu3 %v44_v13  ;;  %86 = vmatpush.msra.mxu1 %v44_v13 }
  0x10   :  { %136 = vmatpush.msra.mxu2 %v27_v14  ;;  %58 = vmatpush.msra.mxu0 %v27_v14 }
  0x11   :  { %152 = vmatpush.msra.mxu3 %v43_v15  ;;  %87 = vmatpush.msra.mxu1 %v43_v15 }
  0x12   :  { %137 = vmatpush.msra.mxu2 %v26_v16  ;;  %59 = vmatpush.msra.mxu0 %v26_v16 }
  0x13   :  { %153 = vmatpush.msra.mxu3 %v42_v17  ;;  %88 = vmatpush.msra.mxu1 %v42_v17 }
  0x14   :  { %138 = vmatpush.msra.mxu2 %v25_v18  ;;  %60 = vmatpush.msra.mxu0 %v25_v18 }
  0x15   :  { %154 = vmatpush.msra.mxu3 %v41_v19  ;;  %89 = vmatpush.msra.mxu1 %v41_v19 }
  0x16   :  { %139 = vmatpush.msra.mxu2 %v24_v20  ;;  %61 = vmatpush.msra.mxu0 %v24_v20 }
  0x17   :  { %155 = vmatpush.msra.mxu3 %v40_v21  ;;  %90 = vmatpush.msra.mxu1 %v40_v21 }
  0x18   :  { %140 = vmatpush.msra.mxu2 %v23_v22  ;;  %62 = vmatpush.msra.mxu0 %v23_v22 }
  0x19   :  { %156 = vmatpush.msra.mxu3 %v39_v23  ;;  %91 = vmatpush.msra.mxu1 %v39_v23 }
  0x1a   :  { %141 = vmatpush.msra.mxu2 %v22_v24  ;;  %63 = vmatpush.msra.mxu0 %v22_v24 }
  0x1b   :  { %157 = vmatpush.msra.mxu3 %v38_v25  ;;  %92 = vmatpush.msra.mxu1 %v38_v25 }
  0x1c   :  { %142 = vmatpush.msra.mxu2 %v21_v26  ;;  %64 = vmatpush.msra.mxu0 %v21_v26 }
  0x1d   :  { %158 = vmatpush.msra.mxu3 %v37_v27  ;;  %93 = vmatpush.msra.mxu1 %v37_v27 }
  0x1e   :  { %143 = vmatpush.msra.mxu2 %v20_v28  ;;  %65 = vmatpush.msra.mxu0 %v20_v28 }
  0x1f   :  { %159 = vmatpush.msra.mxu3 %v36_v29  ;;  %94 = vmatpush.msra.mxu1 %v36_v29 }
  0x20   :  { %144 = vmatpush.msra.mxu2 %v19_v30  ;;  %66 = vmatpush.msra.mxu0 %v19_v30 }
  0x21   :  { %160 = vmatpush.msra.mxu3 %v35_v31  ;;  %73 = vmatmul.f32.vlgmr.msra.gmra.mxu2 %v15_v32 }
  0x22   :  { %102 = vmatmul.f32.vlgmr.msra.gmra.mxu3 %v16_v33  ;;  %95 = vmatpush.msra.mxu1 %v35_v31 }
  0x23   :  { %67 = vmatmul.f32.vlgmr.msra.gmra.mxu0 %v11_v34  ;;  %96 = vmatmul.f32.vlgmr.msra.gmra.mxu1 %v12_v35 }
  0x29   :  { %76 = vmatmul.f32.gmra.mxu2 %v17_v36 }
  0x2a   :  { %105 = vmatmul.f32.gmra.mxu3 %v18_v37 }
  0x2b   :  { %70 = vmatmul.f32.gmra.mxu0 %v13_v38  ;;  %99 = vmatmul.f32.gmra.mxu1 %v14_v39 }
  0xa0   :  { %v68_v40 = vpop.f32.mrf.mxu0  ;;  %v97_v41 = vpop.f32.mrf.mxu1 }
  0xa1   :  { %v98_v42 = vadd.f32 %v97_v41, %v68_v40 }
  0xa3   :  { %vm109_vm0 = vcmp.ge.f32.partialorder %v98_v42, 0.0  ;;  %v113_v43 = vmul.f32 0.2, %v98_v42 }
  0xa4   :  { %v74_v44 = vpop.f32.mrf.mxu2 }
  0xa5   :  { %v103_v45 = vpop.f32.mrf.mxu3  ;;  %v117_v46 = vsel %vm109_vm0, %v98_v42, %v113_v43 }
  0xa6   :  { %v104_v47 = vadd.f32 %v103_v45, %v74_v44  ;;  %121 = vst [vmem:[%s310_s2] sm:$0xff] %v117_v46 }
  0xa8   :  { %vm111_vm1 = vcmp.ge.f32.partialorder %v104_v47, 0.0  ;;  %v115_v48 = vmul.f32 0.2, %v104_v47  ;;  %v71_v49 = vpop.f32.mrf.mxu0  ;;  %v100_v50 = vpop.f32.mrf.mxu1 }
  0xa9   :  { %v101_v52 = vadd.f32 %v100_v50, %v71_v49 }
  0xaa   :  { %v119_v51 = vsel %vm111_vm1, %v104_v47, %v115_v48 }
  0xab   :  { %123 = vst [vmem:[%s310_s2 + $0x10] sm:$0xff] %v119_v51  ;;  %vm110_vm2 = vcmp.ge.f32.partialorder %v101_v52, 0.0  ;;  %v114_v53 = vmul.f32 0.2, %v101_v52 }
  0xac   :  { %v77_v54 = vpop.f32.mrf.mxu2 }
  0xad   :  { %v106_v55 = vpop.f32.mrf.mxu3  ;;  %v118_v56 = vsel %vm110_vm2, %v101_v52, %v114_v53 }
  0xae   :  { %v107_v57 = vadd.f32 %v106_v55, %v77_v54  ;;  %122 = vst [vmem:[%s310_s2 + $0x8] sm:$0xff] %v118_v56 }
  0xb0   :  { %vm112_vm3 = vcmp.ge.f32.partialorder %v107_v57, 0.0  ;;  %v116_v58 = vmul.f32 0.2, %v107_v57 }
  0xb2   :  { %v120_v59 = vsel %vm112_vm3, %v107_v57, %v116_v58 }
  0xb3   :  { %124 = vst [vmem:[%s310_s2 + $0x18] sm:$0xff] %v120_v59 }

// kernel: discriminator_forward.10
= control target key start
LH: loop header
LB: loop body
LE: loop exit
PB: predicated region body
PF: predicated region fallthrough
CT: control target
= control target key end

     0   :  { %vm295_vm1 = vcmask 261120   ;;  %s643_s1 = inlined_call_operand.vmem [shape: f32[512,32], index: 1, kind: input, shape index: {}]   ;;  %s644_s0 = inlined_call_operand.vmem [shape: f32[64,512], index: 0, kind: input, shape index: {}]   ;;  %s645_s2 = inlined_call_operand.vmem [shape: f32[64,32], index: 2, kind: output, shape index: {}]  }
   0x1   :  { %v90_v0 = vld [vmem:[%s643_s1 + $0x178] sm:$0xff]  ;;  %v89_v1 = vld [vmem:[%s643_s1 + $0x170] sm:$0xff]  ;;  %v88_v5 = vld [vmem:[%s643_s1 + $0x168] sm:$0xff] }
   0x2   :  { %v106_v2 = vld [vmem:[%s643_s1 + $0x1f8] sm:$0xff]  ;;  %189 = vmatpush.msra.mxu2 %v90_v0  ;;  %v105_v6 = vld [vmem:[%s643_s1 + $0x1f0] sm:$0xff]  ;;  %v104_v9 = vld [vmem:[%s643_s1 + $0x1e8] sm:$0xff] }
   0x3   :  { %230 = vmatpush.msra.mxu3 %v106_v2  ;;  %v58_v3 = vld [vmem:[%s643_s1 + $0x78] sm:$0xff]  ;;  %v57_v7 = vld [vmem:[%s643_s1 + $0x70] sm:$0xff]  ;;  %v56_v10 = vld [vmem:[%s643_s1 + $0x68] sm:$0xff] }
   0x4   :  { %v74_v4 = vld [vmem:[%s643_s1 + $0xf8] sm:$0xff]  ;;  %107 = vmatpush.msra.mxu0 %v58_v3  ;;  %v73_v8 = vld [vmem:[%s643_s1 + $0xf0] sm:$0xff]  ;;  %190 = vmatpush.msra.mxu2 %v89_v1  ;;  %v87_v11 = vld [vmem:[%s643_s1 + $0x160] sm:$0xff] }
   0x5   :  { %148 = vmatpush.msra.mxu1 %v74_v4  ;;  %231 = vmatpush.msra.mxu3 %v105_v6  ;;  %v72_v12 = vld [vmem:[%s643_s1 + $0xe8] sm:$0xff]  ;;  %v103_v13 = vld [vmem:[%s643_s1 + $0x1e0] sm:$0xff]  ;;  %v86_v16 = vld [vmem:[%s643_s1 + $0x158] sm:$0xff] }
   0x6   :  { %108 = vmatpush.msra.mxu0 %v57_v7  ;;  %191 = vmatpush.msra.mxu2 %v88_v5  ;;  %v55_v14 = vld [vmem:[%s643_s1 + $0x60] sm:$0xff]  ;;  %v102_v17 = vld [vmem:[%s643_s1 + $0x1d8] sm:$0xff]  ;;  %v85_v20 = vld [vmem:[%s643_s1 + $0x150] sm:$0xff] }
   0x7   :  { %149 = vmatpush.msra.mxu1 %v73_v8  ;;  %232 = vmatpush.msra.mxu3 %v104_v9  ;;  %v71_v15 = vld [vmem:[%s643_s1 + $0xe0] sm:$0xff]  ;;  %v54_v18 = vld [vmem:[%s643_s1 + $0x58] sm:$0xff]  ;;  %v101_v21 = vld [vmem:[%s643_s1 + $0x1d0] sm:$0xff] }
   0x8   :  { %109 = vmatpush.msra.mxu0 %v56_v10  ;;  %192 = vmatpush.msra.mxu2 %v87_v11  ;;  %v70_v19 = vld [vmem:[%s643_s1 + $0xd8] sm:$0xff]  ;;  %v53_v22 = vld [vmem:[%s643_s1 + $0x50] sm:$0xff]  ;;  %v84_v24 = vld [vmem:[%s643_s1 + $0x148] sm:$0xff] }
   0x9   :  { %150 = vmatpush.msra.mxu1 %v72_v12  ;;  %233 = vmatpush.msra.mxu3 %v103_v13  ;;  %v69_v23 = vld [vmem:[%s643_s1 + $0xd0] sm:$0xff]  ;;  %v100_v25 = vld [vmem:[%s643_s1 + $0x1c8] sm:$0xff]  ;;  %v83_v28 = vld [vmem:[%s643_s1 + $0x140] sm:$0xff] }
   0xa   :  { %110 = vmatpush.msra.mxu0 %v55_v14  ;;  %193 = vmatpush.msra.mxu2 %v86_v16  ;;  %v52_v26 = vld [vmem:[%s643_s1 + $0x48] sm:$0xff]  ;;  %v99_v29 = vld [vmem:[%s643_s1 + $0x1c0] sm:$0xff]  ;;  %v82_v32 = vld [vmem:[%s643_s1 + $0x138] sm:$0xff] }
   0xb   :  { %151 = vmatpush.msra.mxu1 %v71_v15  ;;  %234 = vmatpush.msra.mxu3 %v102_v17  ;;  %v68_v27 = vld [vmem:[%s643_s1 + $0xc8] sm:$0xff]  ;;  %v51_v30 = vld [vmem:[%s643_s1 + $0x40] sm:$0xff]  ;;  %v98_v33 = vld [vmem:[%s643_s1 + $0x1b8] sm:$0xff] }
   0xc   :  { %111 = vmatpush.msra.mxu0 %v54_v18  ;;  %194 = vmatpush.msra.mxu2 %v85_v20  ;;  %v67_v31 = vld [vmem:[%s643_s1 + $0xc0] sm:$0xff]  ;;  %v50_v34 = vld [vmem:[%s643_s1 + $0x38] sm:$0xff]  ;;  %v81_v36 = vld [vmem:[%s643_s1 + $0x130] sm:$0xff] }
   0xd   :  { %152 = vmatpush.msra.mxu1 %v70_v19  ;;  %235 = vmatpush.msra.mxu3 %v101_v21  ;;  %v66_v35 = vld [vmem:[%s643_s1 + $0xb8] sm:$0xff]  ;;  %v97_v37 = vld [vmem:[%s643_s1 + $0x1b0] sm:$0xff]  ;;  %v80_v40 = vld [vmem:[%s643_s1 + $0x128] sm:$0xff] }
   0xe   :  { %112 = vmatpush.msra.mxu0 %v53_v22  ;;  %195 = vmatpush.msra.mxu2 %v84_v24  ;;  %v49_v38 = vld [vmem:[%s643_s1 + $0x30] sm:$0xff]  ;;  %v96_v41 = vld [vmem:[%s643_s1 + $0x1a8] sm:$0xff]  ;;  %v79_v44 = vld [vmem:[%s643_s1 + $0x120] sm:$0xff] }
   0xf   :  { %153 = vmatpush.msra.mxu1 %v69_v23  ;;  %236 = vmatpush.msra.mxu3 %v100_v25  ;;  %v65_v39 = vld [vmem:[%s643_s1 + $0xb0] sm:$0xff]  ;;  %v48_v42 = vld [vmem:[%s643_s1 + $0x28] sm:$0xff]  ;;  %v95_v45 = vld [vmem:[%s643_s1 + $0x1a0] sm:$0xff] }
  0x10   :  { %113 = vmatpush.msra.mxu0 %v52_v26  ;;  %196 = vmatpush.msra.mxu2 %v83_v28  ;;  %v64_v43 = vld [vmem:[%s643_s1 + $0xa8] sm:$0xff]  ;;  %v47_v46 = vld [vmem:[%s643_s1 + $0x20] sm:$0xff]  ;;  %v78_v48 = vld [vmem:[%s643_s1 + $0x118] sm:$0xff] }
  0x11   :  { %154 = vmatpush.msra.mxu1 %v68_v27  ;;  %237 = vmatpush.msra.mxu3 %v99_v29  ;;  %v63_v47 = vld [vmem:[%s643_s1 + $0xa0] sm:$0xff]  ;;  %v94_v49 = vld [vmem:[%s643_s1 + $0x198] sm:$0xff]  ;;  %v77_v52 = vld [vmem:[%s643_s1 + $0x110] sm:$0xff] }
  0x12   :  { %114 = vmatpush.msra.mxu0 %v51_v30  ;;  %197 = vmatpush.msra.mxu2 %v82_v32  ;;  %v46_v50 = vld [vmem:[%s643_s1 + $0x18] sm:$0xff]  ;;  %v93_v53 = vld [vmem:[%s643_s1 + $0x190] sm:$0xff]  ;;  %v76_v56 = vld [vmem:[%s643_s1 + $0x108] sm:$0xff] }
  0x13   :  { %155 = vmatpush.msra.mxu1 %v67_v31  ;;  %238 = vmatpush.msra.mxu3 %v98_v33  ;;  %v62_v51 = vld [vmem:[%s643_s1 + $0x98] sm:$0xff]  ;;  %v45_v54 = vld [vmem:[%s643_s1 + $0x10] sm:$0xff]  ;;  %v92_v57 = vld [vmem:[%s643_s1 + $0x188] sm:$0xff] }
  0x14   :  { %115 = vmatpush.msra.mxu0 %v50_v34  ;;  %198 = vmatpush.msra.mxu2 %v81_v36  ;;  %v61_v55 = vld [vmem:[%s643_s1 + $0x90] sm:$0xff]  ;;  %v44_v58 = vld [vmem:[%s643_s1 + $0x8] sm:$0xff]  ;;  %v75_v60 = vld [vmem:[%s643_s1 + $0x100] sm:$0xff] }
  0x15   :  { %156 = vmatpush.msra.mxu1 %v66_v35  ;;  %239 = vmatpush.msra.mxu3 %v97_v37  ;;  %v60_v59 = vld [vmem:[%s643_s1 + $0x88] sm:$0xff]  ;;  %v91_v61 = vld [vmem:[%s643_s1 + $0x180] sm:$0xff]  ;;  %v13_v62 = vld [vmem:[%s644_s0 + $0x10] sm:$0xff] }
  0x16   :  { %116 = vmatpush.msra.mxu0 %v49_v38  ;;  %199 = vmatpush.msra.mxu2 %v80_v40  ;;  %v14_v63 = vld [vmem:[%s644_s0 + $0x18] sm:$0xff]  ;;  %v43_v0 = vld [vmem:[%s643_s1] sm:$0xff]  ;;  %v12_v3 = vld [vmem:[%s644_s0 + $0x8] sm:$0xff] }
  0x17   :  { %157 = vmatpush.msra.mxu1 %v65_v39  ;;  %240 = vmatpush.msra.mxu3 %v96_v41  ;;  %v59_v1 = vld [vmem:[%s643_s1 + $0x80] sm:$0xff]  ;;  %v17_v4 = vld [vmem:[%s644_s0 + $0x30] sm:$0xff]  ;;  %v18_v5 = vld [vmem:[%s644_s0 + $0x38] sm:$0xff] }
  0x18   :  { %117 = vmatpush.msra.mxu0 %v48_v42  ;;  %200 = vmatpush.msra.mxu2 %v79_v44  ;;  %v11_v2 = vld [vmem:[%s644_s0] sm:$0xff]  ;;  %v16_v7 = vld [vmem:[%s644_s0 + $0x28] sm:$0xff]  ;;  %v21_v8 = vld [vmem:[%s644_s0 + $0x50] sm:$0xff] }
  0x19   :  { %158 = vmatpush.msra.mxu1 %v64_v43  ;;  %241 = vmatpush.msra.mxu3 %v95_v45  ;;  %v15_v6 = vld [vmem:[%s644_s0 + $0x20] sm:$0xff]  ;;  %v22_v9 = vld [vmem:[%s644_s0 + $0x58] sm:$0xff]  ;;  %v20_v11 = vld [vmem:[%s644_s0 + $0x48] sm:$0xff] }
  0x1a   :  { %118 = vmatpush.msra.mxu0 %v47_v46  ;;  %201 = vmatpush.msra.mxu2 %v78_v48  ;;  %v19_v10 = vld [vmem:[%s644_s0 + $0x40] sm:$0xff]  ;;  %v25_v12 = vld [vmem:[%s644_s0 + $0x70] sm:$0xff]  ;;  %v26_v13 = vld [vmem:[%s644_s0 + $0x78] sm:$0xff] }
  0x1b   :  { %159 = vmatpush.msra.mxu1 %v63_v47  ;;  %242 = vmatpush.msra.mxu3 %v94_v49  ;;  %v23_v14 = vld [vmem:[%s644_s0 + $0x60] sm:$0xff]  ;;  %v24_v15 = vld [vmem:[%s644_s0 + $0x68] sm:$0xff]  ;;  %v29_v16 = vld [vmem:[%s644_s0 + $0x90] sm:$0xff] }
  0x1c   :  { %119 = vmatpush.msra.mxu0 %v46_v50  ;;  %202 = vmatpush.msra.mxu2 %v77_v52  ;;  %v30_v17 = vld [vmem:[%s644_s0 + $0x98] sm:$0xff]  ;;  %v27_v18 = vld [vmem:[%s644_s0 + $0x80] sm:$0xff]  ;;  %v28_v19 = vld [vmem:[%s644_s0 + $0x88] sm:$0xff] }
  0x1d   :  { %160 = vmatpush.msra.mxu1 %v62_v51  ;;  %243 = vmatpush.msra.mxu3 %v93_v53  ;;  %v33_v20 = vld [vmem:[%s644_s0 + $0xb0] sm:$0xff]  ;;  %v34_v21 = vld [vmem:[%s644_s0 + $0xb8] sm:$0xff]  ;;  %v31_v22 = vld [vmem:[%s644_s0 + $0xa0] sm:$0xff] }
  0x1e   :  { %120 = vmatpush.msra.mxu0 %v45_v54  ;;  %203 = vmatpush.msra.mxu2 %v76_v56  ;;  %v32_v23 = vld [vmem:[%s644_s0 + $0xa8] sm:$0xff]  ;;  %v37_v24 = vld [vmem:[%s644_s0 + $0xd0] sm:$0xff]  ;;  %v38_v25 = vld [vmem:[%s644_s0 + $0xd8] sm:$0xff] }
  0x1f   :  { %161 = vmatpush.msra.mxu1 %v61_v55  ;;  %244 = vmatpush.msra.mxu3 %v92_v57  ;;  %v35_v26 = vld [vmem:[%s644_s0 + $0xc0] sm:$0xff]  ;;  %v36_v27 = vld [vmem:[%s644_s0 + $0xc8] sm:$0xff]  ;;  %v41_v28 = vld [vmem:[%s644_s0 + $0xf0] sm:$0xff] }
  0x20   :  { %121 = vmatpush.msra.mxu0 %v44_v58  ;;  %204 = vmatpush.msra.mxu2 %v75_v60  ;;  %v42_v29 = vld [vmem:[%s644_s0 + $0xf8] sm:$0xff]  ;;  %v39_v30 = vld [vmem:[%s644_s0 + $0xe0] sm:$0xff]  ;;  %v40_v31 = vld [vmem:[%s644_s0 + $0xe8] sm:$0xff] }
  0x21   :  { %162 = vmatpush.msra.mxu1 %v60_v59  ;;  %245 = vmatpush.msra.mxu3 %v91_v61 }
  0x22   :  { %205 = vmatmul.f32.vlgmr.msra.gmra.mxu2 %v13_v62  ;;  %246 = vmatmul.f32.vlgmr.msra.gmra.mxu3 %v14_v63 }
  0x23   :  { %122 = vmatpush.msra.mxu0 %v43_v0  ;;  %163 = vmatpush.msra.mxu1 %v59_v1 }
  0x24   :  { %123 = vmatmul.f32.vlgmr.msra.gmra.mxu0 %v11_v2  ;;  %164 = vmatmul.f32.vlgmr.msra.gmra.mxu1 %v12_v3 }
  0x2a   :  { %208 = vmatmul.f32.gmra.mxu2 %v17_v4  ;;  %249 = vmatmul.f32.gmra.mxu3 %v18_v5 }
  0x2c   :  { %126 = vmatmul.f32.gmra.mxu0 %v15_v6  ;;  %167 = vmatmul.f32.gmra.mxu1 %v16_v7 }
  0x32   :  { %211 = vmatmul.f32.gmra.mxu2 %v21_v8  ;;  %252 = vmatmul.f32.gmra.mxu3 %v22_v9 }
  0x34   :  { %129 = vmatmul.f32.gmra.mxu0 %v19_v10  ;;  %170 = vmatmul.f32.gmra.mxu1 %v20_v11 }
  0x3a   :  { %214 = vmatmul.f32.gmra.mxu2 %v25_v12  ;;  %255 = vmatmul.f32.gmra.mxu3 %v26_v13 }
  0x3c   :  { %132 = vmatmul.f32.gmra.mxu0 %v23_v14  ;;  %173 = vmatmul.f32.gmra.mxu1 %v24_v15 }
  0x42   :  { %217 = vmatmul.f32.gmra.mxu2 %v29_v16  ;;  %258 = vmatmul.f32.gmra.mxu3 %v30_v17 }
  0x44   :  { %135 = vmatmul.f32.gmra.mxu0 %v27_v18  ;;  %176 = vmatmul.f32.gmra.mxu1 %v28_v19 }
  0x4a   :  { %220 = vmatmul.f32.gmra.mxu2 %v33_v20  ;;  %261 = vmatmul.f32.gmra.mxu3 %v34_v21 }
  0x4c   :  { %138 = vmatmul.f32.gmra.mxu0 %v31_v22  ;;  %179 = vmatmul.f32.gmra.mxu1 %v32_v23 }
  0x52   :  { %223 = vmatmul.f32.gmra.mxu2 %v37_v24  ;;  %264 = vmatmul.f32.gmra.mxu3 %v38_v25 }
  0x54   :  { %141 = vmatmul.f32.gmra.mxu0 %v35_v26  ;;  %182 = vmatmul.f32.gmra.mxu1 %v36_v27 }
  0x5a   :  { %226 = vmatmul.f32.gmra.mxu2 %v41_v28  ;;  %267 = vmatmul.f32.gmra.mxu3 %v42_v29 }
  0x5c   :  { %144 = vmatmul.f32.gmra.mxu0 %v39_v30  ;;  %185 = vmatmul.f32.gmra.mxu1 %v40_v31 }
  0xa1   :  { %v124_v32 = vpop.f32.mrf.mxu0  ;;  %v165_v33 = vpop.f32.mrf.mxu1 }
  0xa2   :  { %v166_v34 = vadd.f32 %v165_v33, %v124_v32 }
  0xa5   :  { %v206_v35 = vpop.f32.mrf.mxu2  ;;  %v247_v36 = vpop.f32.mrf.mxu3 }
  0xa6   :  { %v207_v37 = vadd.f32 %v206_v35, %v166_v34 }
  0xa8   :  { %v248_v38 = vadd.f32 %v247_v36, %v207_v37 }
  0xa9   :  { %v127_v39 = vpop.f32.mrf.mxu0  ;;  %v168_v40 = vpop.f32.mrf.mxu1 }
  0xaa   :  { %vm271_vm0 = vcmp.ge.f32.partialorder %v248_v38, 0.0  ;;  %v279_v41 = vmul.f32 0.2, %v248_v38  ;;  %v169_v42 = vadd.f32 %v168_v40, %v127_v39 }
  0xac   :  { %v287_v43 = vsel %vm271_vm0, %v248_v38, %v279_v41 }
  0xad   :  { %296 = vst.msk [vmem:[%s645_s2] sm:$0xff] %vm295_vm1, %v287_v43  ;;  %v209_v44 = vpop.f32.mrf.mxu2  ;;  %v250_v45 = vpop.f32.mrf.mxu3 }
  0xae   :  { %v210_v46 = vadd.f32 %v209_v44, %v169_v42 }
  0xb0   :  { %v251_v47 = vadd.f32 %v250_v45, %v210_v46 }
  0xb1   :  { %v130_v48 = vpop.f32.mrf.mxu0  ;;  %v171_v49 = vpop.f32.mrf.mxu1 }
  0xb2   :  { %vm272_vm2 = vcmp.ge.f32.partialorder %v251_v47, 0.0  ;;  %v280_v50 = vmul.f32 0.2, %v251_v47  ;;  %v172_v51 = vadd.f32 %v171_v49, %v130_v48 }
  0xb4   :  { %v288_v52 = vsel %vm272_vm2, %v251_v47, %v280_v50 }
  0xb5   :  { %297 = vst.msk [vmem:[%s645_s2 + $0x8] sm:$0xff] %vm295_vm1, %v288_v52  ;;  %v212_v53 = vpop.f32.mrf.mxu2  ;;  %v253_v54 = vpop.f32.mrf.mxu3 }
  0xb6   :  { %v213_v55 = vadd.f32 %v212_v53, %v172_v51 }
  0xb8   :  { %v254_v56 = vadd.f32 %v253_v54, %v213_v55 }
  0xb9   :  { %v133_v57 = vpop.f32.mrf.mxu0  ;;  %v174_v58 = vpop.f32.mrf.mxu1 }
  0xba   :  { %vm273_vm3 = vcmp.ge.f32.partialorder %v254_v56, 0.0  ;;  %v281_v59 = vmul.f32 0.2, %v254_v56  ;;  %v175_v60 = vadd.f32 %v174_v58, %v133_v57 }
  0xbc   :  { %v289_v61 = vsel %vm273_vm3, %v254_v56, %v281_v59 }
  0xbd   :  { %298 = vst.msk [vmem:[%s645_s2 + $0x10] sm:$0xff] %vm295_vm1, %v289_v61  ;;  %v215_v62 = vpop.f32.mrf.mxu2  ;;  %v256_v63 = vpop.f32.mrf.mxu3 }
  0xbe   :  { %v216_v0 = vadd.f32 %v215_v62, %v175_v60 }
  0xc0   :  { %v257_v1 = vadd.f32 %v256_v63, %v216_v0 }
  0xc1   :  { %v136_v2 = vpop.f32.mrf.mxu0  ;;  %v177_v3 = vpop.f32.mrf.mxu1 }
  0xc2   :  { %vm274_vm4 = vcmp.ge.f32.partialorder %v257_v1, 0.0  ;;  %v282_v4 = vmul.f32 0.2, %v257_v1  ;;  %v178_v5 = vadd.f32 %v177_v3, %v136_v2 }
  0xc4   :  { %v290_v6 = vsel %vm274_vm4, %v257_v1, %v282_v4 }
  0xc5   :  { %299 = vst.msk [vmem:[%s645_s2 + $0x18] sm:$0xff] %vm295_vm1, %v290_v6  ;;  %v218_v7 = vpop.f32.mrf.mxu2  ;;  %v259_v8 = vpop.f32.mrf.mxu3 }
  0xc6   :  { %v219_v9 = vadd.f32 %v218_v7, %v178_v5 }
  0xc8   :  { %v260_v10 = vadd.f32 %v259_v8, %v219_v9 }
  0xc9   :  { %v139_v11 = vpop.f32.mrf.mxu0  ;;  %v180_v12 = vpop.f32.mrf.mxu1 }
  0xca   :  { %vm275_vm5 = vcmp.ge.f32.partialorder %v260_v10, 0.0  ;;  %v283_v13 = vmul.f32 0.2, %v260_v10  ;;  %v181_v14 = vadd.f32 %v180_v12, %v139_v11 }
  0xcc   :  { %v291_v15 = vsel %vm275_vm5, %v260_v10, %v283_v13 }
  0xcd   :  { %300 = vst.msk [vmem:[%s645_s2 + $0x20] sm:$0xff] %vm295_vm1, %v291_v15  ;;  %v221_v16 = vpop.f32.mrf.mxu2  ;;  %v262_v17 = vpop.f32.mrf.mxu3 }
  0xce   :  { %v222_v18 = vadd.f32 %v221_v16, %v181_v14 }
  0xd0   :  { %v263_v19 = vadd.f32 %v262_v17, %v222_v18 }
  0xd1   :  { %v142_v20 = vpop.f32.mrf.mxu0  ;;  %v183_v21 = vpop.f32.mrf.mxu1 }
  0xd2   :  { %vm276_vm6 = vcmp.ge.f32.partialorder %v263_v19, 0.0  ;;  %v284_v22 = vmul.f32 0.2, %v263_v19  ;;  %v184_v23 = vadd.f32 %v183_v21, %v142_v20 }
  0xd4   :  { %v292_v24 = vsel %vm276_vm6, %v263_v19, %v284_v22 }
  0xd5   :  { %301 = vst.msk [vmem:[%s645_s2 + $0x28] sm:$0xff] %vm295_vm1, %v292_v24  ;;  %v224_v25 = vpop.f32.mrf.mxu2  ;;  %v265_v26 = vpop.f32.mrf.mxu3 }
  0xd6   :  { %v225_v27 = vadd.f32 %v224_v25, %v184_v23 }
  0xd8   :  { %v266_v28 = vadd.f32 %v265_v26, %v225_v27 }
  0xd9   :  { %v145_v29 = vpop.f32.mrf.mxu0  ;;  %v186_v30 = vpop.f32.mrf.mxu1 }
  0xda   :  { %vm277_vm7 = vcmp.ge.f32.partialorder %v266_v28, 0.0  ;;  %v285_v31 = vmul.f32 0.2, %v266_v28  ;;  %v187_v32 = vadd.f32 %v186_v30, %v145_v29 }
  0xdc   :  { %v293_v33 = vsel %vm277_vm7, %v266_v28, %v285_v31 }
  0xdd   :  { %302 = vst.msk [vmem:[%s645_s2 + $0x30] sm:$0xff] %vm295_vm1, %v293_v33  ;;  %v227_v34 = vpop.f32.mrf.mxu2  ;;  %v268_v35 = vpop.f32.mrf.mxu3 }
  0xde   :  { %v228_v36 = vadd.f32 %v227_v34, %v187_v32 }
  0xe0   :  { %v269_v37 = vadd.f32 %v268_v35, %v228_v36 }
  0xe2   :  { %vm278_vm8 = vcmp.ge.f32.partialorder %v269_v37, 0.0  ;;  %v286_v38 = vmul.f32 0.2, %v269_v37 }
  0xe4   :  { %v294_v39 = vsel %vm278_vm8, %v269_v37, %v286_v38 }
  0xe5   :  { %303 = vst.msk [vmem:[%s645_s2 + $0x38] sm:$0xff] %vm295_vm1, %v294_v39 }

// kernel: discriminator_forward.11
= control target key start
LH: loop header
LB: loop body
LE: loop exit
PB: predicated region body
PF: predicated region fallthrough
CT: control target
= control target key end

     0   :  { %s779_s0 = inlined_call_operand.vmem [shape: f32[1,1024], index: 0, kind: input, shape index: {}]   ;;  %s780_s1 = inlined_call_operand.vmem [shape: f32[1024,2], index: 1, kind: input, shape index: {}]   ;;  %s781_s2 = inlined_call_operand.hbm [shape: f32[1,2], index: 2, kind: output, shape index: {}]  }
   0x1   :  { %v28_v0 = vld [vmem:[%s780_s1 + $0x78] sm:$0xff]  ;;  %v27_v2 = vld [vmem:[%s780_s1 + $0x70] sm:$0xff]  ;;  %v26_v6 = vld [vmem:[%s780_s1 + $0x68] sm:$0xff] }
   0x2   :  { %v60_v1 = vld [vmem:[%s780_s1 + $0x178] sm:$0xff]  ;;  %158 = vmatpush.msra.mxu0 %v28_v0  ;;  %v59_v4 = vld [vmem:[%s780_s1 + $0x170] sm:$0xff]  ;;  %v58_v8 = vld [vmem:[%s780_s1 + $0x168] sm:$0xff] }
   0x3   :  { %198 = vmatpush.msra.mxu2 %v60_v1  ;;  %v44_v3 = vld [vmem:[%s780_s1 + $0xf8] sm:$0xff]  ;;  %v43_v7 = vld [vmem:[%s780_s1 + $0xf0] sm:$0xff]  ;;  %v42_v10 = vld [vmem:[%s780_s1 + $0xe8] sm:$0xff] }
   0x4   :  { %v76_v5 = vld [vmem:[%s780_s1 + $0x1f8] sm:$0xff]  ;;  %178 = vmatpush.msra.mxu1 %v44_v3  ;;  %159 = vmatpush.msra.mxu0 %v27_v2  ;;  %v75_v9 = vld [vmem:[%s780_s1 + $0x1f0] sm:$0xff]  ;;  %v25_v11 = vld [vmem:[%s780_s1 + $0x60] sm:$0xff] }
   0x5   :  { %218 = vmatpush.msra.mxu3 %v76_v5  ;;  %199 = vmatpush.msra.mxu2 %v59_v4  ;;  %v57_v12 = vld [vmem:[%s780_s1 + $0x160] sm:$0xff]  ;;  %v74_v13 = vld [vmem:[%s780_s1 + $0x1e8] sm:$0xff]  ;;  %v24_v16 = vld [vmem:[%s780_s1 + $0x58] sm:$0xff] }
   0x6   :  { %179 = vmatpush.msra.mxu1 %v43_v7  ;;  %160 = vmatpush.msra.mxu0 %v26_v6  ;;  %v41_v14 = vld [vmem:[%s780_s1 + $0xe0] sm:$0xff]  ;;  %v56_v17 = vld [vmem:[%s780_s1 + $0x158] sm:$0xff]  ;;  %v23_v20 = vld [vmem:[%s780_s1 + $0x50] sm:$0xff] }
   0x7   :  { %219 = vmatpush.msra.mxu3 %v75_v9  ;;  %200 = vmatpush.msra.mxu2 %v58_v8  ;;  %v73_v15 = vld [vmem:[%s780_s1 + $0x1e0] sm:$0xff]  ;;  %v40_v18 = vld [vmem:[%s780_s1 + $0xd8] sm:$0xff]  ;;  %v55_v21 = vld [vmem:[%s780_s1 + $0x150] sm:$0xff] }
   0x8   :  { %180 = vmatpush.msra.mxu1 %v42_v10  ;;  %161 = vmatpush.msra.mxu0 %v25_v11  ;;  %v72_v19 = vld [vmem:[%s780_s1 + $0x1d8] sm:$0xff]  ;;  %v39_v22 = vld [vmem:[%s780_s1 + $0xd0] sm:$0xff]  ;;  %v22_v24 = vld [vmem:[%s780_s1 + $0x48] sm:$0xff] }
   0x9   :  { %220 = vmatpush.msra.mxu3 %v74_v13  ;;  %201 = vmatpush.msra.mxu2 %v57_v12  ;;  %v71_v23 = vld [vmem:[%s780_s1 + $0x1d0] sm:$0xff]  ;;  %v54_v25 = vld [vmem:[%s780_s1 + $0x148] sm:$0xff]  ;;  %v21_v28 = vld [vmem:[%s780_s1 + $0x40] sm:$0xff] }
   0xa   :  { %181 = vmatpush.msra.mxu1 %v41_v14  ;;  %162 = vmatpush.msra.mxu0 %v24_v16  ;;  %v38_v26 = vld [vmem:[%s780_s1 + $0xc8] sm:$0xff]  ;;  %v53_v29 = vld [vmem:[%s780_s1 + $0x140] sm:$0xff]  ;;  %v20_v32 = vld [vmem:[%s780_s1 + $0x38] sm:$0xff] }
   0xb   :  { %221 = vmatpush.msra.mxu3 %v73_v15  ;;  %202 = vmatpush.msra.mxu2 %v56_v17  ;;  %v70_v27 = vld [vmem:[%s780_s1 + $0x1c8] sm:$0xff]  ;;  %v37_v30 = vld [vmem:[%s780_s1 + $0xc0] sm:$0xff]  ;;  %v52_v33 = vld [vmem:[%s780_s1 + $0x138] sm:$0xff] }
   0xc   :  { %182 = vmatpush.msra.mxu1 %v40_v18  ;;  %163 = vmatpush.msra.mxu0 %v23_v20  ;;  %v69_v31 = vld [vmem:[%s780_s1 + $0x1c0] sm:$0xff]  ;;  %v36_v34 = vld [vmem:[%s780_s1 + $0xb8] sm:$0xff]  ;;  %v19_v36 = vld [vmem:[%s780_s1 + $0x30] sm:$0xff] }
   0xd   :  { %222 = vmatpush.msra.mxu3 %v72_v19  ;;  %203 = vmatpush.msra.mxu2 %v55_v21  ;;  %v68_v35 = vld [vmem:[%s780_s1 + $0x1b8] sm:$0xff]  ;;  %v51_v37 = vld [vmem:[%s780_s1 + $0x130] sm:$0xff]  ;;  %v18_v40 = vld [vmem:[%s780_s1 + $0x28] sm:$0xff] }
   0xe   :  { %183 = vmatpush.msra.mxu1 %v39_v22  ;;  %164 = vmatpush.msra.mxu0 %v22_v24  ;;  %v35_v38 = vld [vmem:[%s780_s1 + $0xb0] sm:$0xff]  ;;  %v50_v41 = vld [vmem:[%s780_s1 + $0x128] sm:$0xff]  ;;  %v17_v44 = vld [vmem:[%s780_s1 + $0x20] sm:$0xff] }
   0xf   :  { %223 = vmatpush.msra.mxu3 %v71_v23  ;;  %204 = vmatpush.msra.mxu2 %v54_v25  ;;  %v67_v39 = vld [vmem:[%s780_s1 + $0x1b0] sm:$0xff]  ;;  %v34_v42 = vld [vmem:[%s780_s1 + $0xa8] sm:$0xff]  ;;  %v49_v45 = vld [vmem:[%s780_s1 + $0x120] sm:$0xff] }
  0x10   :  { %184 = vmatpush.msra.mxu1 %v38_v26  ;;  %165 = vmatpush.msra.mxu0 %v21_v28  ;;  %v66_v43 = vld [vmem:[%s780_s1 + $0x1a8] sm:$0xff]  ;;  %v33_v46 = vld [vmem:[%s780_s1 + $0xa0] sm:$0xff]  ;;  %v16_v48 = vld [vmem:[%s780_s1 + $0x18] sm:$0xff] }
  0x11   :  { %224 = vmatpush.msra.mxu3 %v70_v27  ;;  %205 = vmatpush.msra.mxu2 %v53_v29  ;;  %v65_v47 = vld [vmem:[%s780_s1 + $0x1a0] sm:$0xff]  ;;  %v48_v49 = vld [vmem:[%s780_s1 + $0x118] sm:$0xff]  ;;  %v15_v52 = vld [vmem:[%s780_s1 + $0x10] sm:$0xff] }
  0x12   :  { %185 = vmatpush.msra.mxu1 %v37_v30  ;;  %166 = vmatpush.msra.mxu0 %v20_v32  ;;  %v32_v50 = vld [vmem:[%s780_s1 + $0x98] sm:$0xff]  ;;  %v47_v53 = vld [vmem:[%s780_s1 + $0x110] sm:$0xff]  ;;  %v14_v56 = vld [vmem:[%s780_s1 + $0x8] sm:$0xff] }
  0x13   :  { %225 = vmatpush.msra.mxu3 %v69_v31  ;;  %206 = vmatpush.msra.mxu2 %v52_v33  ;;  %v64_v51 = vld [vmem:[%s780_s1 + $0x198] sm:$0xff]  ;;  %v31_v54 = vld [vmem:[%s780_s1 + $0x90] sm:$0xff]  ;;  %v46_v57 = vld [vmem:[%s780_s1 + $0x108] sm:$0xff] }
  0x14   :  { %186 = vmatpush.msra.mxu1 %v36_v34  ;;  %167 = vmatpush.msra.mxu0 %v19_v36  ;;  %v63_v55 = vld [vmem:[%s780_s1 + $0x190] sm:$0xff]  ;;  %v30_v58 = vld [vmem:[%s780_s1 + $0x88] sm:$0xff]  ;;  %v13_v60 = vld [vmem:[%s780_s1] sm:$0xff] }
  0x15   :  { %226 = vmatpush.msra.mxu3 %v68_v35  ;;  %207 = vmatpush.msra.mxu2 %v51_v37  ;;  %v62_v59 = vld [vmem:[%s780_s1 + $0x188] sm:$0xff]  ;;  %v45_v61 = vld [vmem:[%s780_s1 + $0x100] sm:$0xff]  ;;  %v92_v62 = vld [vmem:[%s780_s1 + $0x278] sm:$0xff] }
  0x16   :  { %187 = vmatpush.msra.mxu1 %v35_v38  ;;  %168 = vmatpush.msra.mxu0 %v18_v40  ;;  %v124_v63 = vld [vmem:[%s780_s1 + $0x378] sm:$0xff]  ;;  %v29_v0 = vld [vmem:[%s780_s1 + $0x80] sm:$0xff]  ;;  %v91_v2 = vld [vmem:[%s780_s1 + $0x270] sm:$0xff] }
  0x17   :  { %227 = vmatpush.msra.mxu3 %v67_v39  ;;  %208 = vmatpush.msra.mxu2 %v50_v41  ;;  %v61_v1 = vld [vmem:[%s780_s1 + $0x180] sm:$0xff]  ;;  %v108_v3 = vld [vmem:[%s780_s1 + $0x2f8] sm:$0xff]  ;;  %v123_v4 = vld [vmem:[%s780_s1 + $0x370] sm:$0xff] }
  0x18   :  { %188 = vmatpush.msra.mxu1 %v34_v42  ;;  %169 = vmatpush.msra.mxu0 %v17_v44  ;;  %v140_v5 = vld [vmem:[%s780_s1 + $0x3f8] sm:$0xff]  ;;  %v90_v6 = vld [vmem:[%s780_s1 + $0x268] sm:$0xff]  ;;  %v107_v7 = vld [vmem:[%s780_s1 + $0x2f0] sm:$0xff] }
  0x19   :  { %228 = vmatpush.msra.mxu3 %v66_v43  ;;  %209 = vmatpush.msra.mxu2 %v49_v45  ;;  %v122_v8 = vld [vmem:[%s780_s1 + $0x368] sm:$0xff]  ;;  %v139_v9 = vld [vmem:[%s780_s1 + $0x3f0] sm:$0xff]  ;;  %v89_v10 = vld [vmem:[%s780_s1 + $0x260] sm:$0xff] }
  0x1a   :  { %189 = vmatpush.msra.mxu1 %v33_v46  ;;  %170 = vmatpush.msra.mxu0 %v16_v48  ;;  %v106_v11 = vld [vmem:[%s780_s1 + $0x2e8] sm:$0xff]  ;;  %v121_v12 = vld [vmem:[%s780_s1 + $0x360] sm:$0xff]  ;;  %v88_v14 = vld [vmem:[%s780_s1 + $0x258] sm:$0xff] }
  0x1b   :  { %229 = vmatpush.msra.mxu3 %v65_v47  ;;  %210 = vmatpush.msra.mxu2 %v48_v49  ;;  %v138_v13 = vld [vmem:[%s780_s1 + $0x3e8] sm:$0xff]  ;;  %v105_v15 = vld [vmem:[%s780_s1 + $0x2e0] sm:$0xff]  ;;  %v120_v16 = vld [vmem:[%s780_s1 + $0x358] sm:$0xff] }
  0x1c   :  { %190 = vmatpush.msra.mxu1 %v32_v50  ;;  %171 = vmatpush.msra.mxu0 %v15_v52  ;;  %v137_v17 = vld [vmem:[%s780_s1 + $0x3e0] sm:$0xff]  ;;  %v87_v18 = vld [vmem:[%s780_s1 + $0x250] sm:$0xff]  ;;  %v104_v19 = vld [vmem:[%s780_s1 + $0x2d8] sm:$0xff] }
  0x1d   :  { %230 = vmatpush.msra.mxu3 %v64_v51  ;;  %211 = vmatpush.msra.mxu2 %v47_v53  ;;  %v119_v20 = vld [vmem:[%s780_s1 + $0x350] sm:$0xff]  ;;  %v136_v21 = vld [vmem:[%s780_s1 + $0x3d8] sm:$0xff]  ;;  %v86_v22 = vld [vmem:[%s780_s1 + $0x248] sm:$0xff] }
  0x1e   :  { %191 = vmatpush.msra.mxu1 %v31_v54  ;;  %172 = vmatpush.msra.mxu0 %v14_v56  ;;  %v103_v23 = vld [vmem:[%s780_s1 + $0x2d0] sm:$0xff]  ;;  %v118_v24 = vld [vmem:[%s780_s1 + $0x348] sm:$0xff]  ;;  %v85_v26 = vld [vmem:[%s780_s1 + $0x240] sm:$0xff] }
  0x1f   :  { %231 = vmatpush.msra.mxu3 %v63_v55  ;;  %212 = vmatpush.msra.mxu2 %v46_v57  ;;  %v135_v25 = vld [vmem:[%s780_s1 + $0x3d0] sm:$0xff]  ;;  %v102_v27 = vld [vmem:[%s780_s1 + $0x2c8] sm:$0xff] }
  0x20   :  { %192 = vmatpush.msra.mxu1 %v30_v58  ;;  %173 = vmatpush.msra.mxu0 %v13_v60 }
  0x21   :  { %232 = vmatpush.msra.mxu3 %v62_v59  ;;  %213 = vmatpush.msra.mxu2 %v45_v61 }
  0x22   :  { %238 = vmatpush.msrb.mxu0 %v92_v62  ;;  %193 = vmatpush.msra.mxu1 %v29_v0 }
  0x23   :  { %278 = vmatpush.msrb.mxu2 %v124_v63  ;;  %233 = vmatpush.msra.mxu3 %v61_v1 }
  0x24   :  { %239 = vmatpush.msrb.mxu0 %v91_v2  ;;  %258 = vmatpush.msrb.mxu1 %v108_v3 }
  0x25   :  { %279 = vmatpush.msrb.mxu2 %v123_v4  ;;  %298 = vmatpush.msrb.mxu3 %v140_v5 }
  0x26   :  { %240 = vmatpush.msrb.mxu0 %v90_v6  ;;  %259 = vmatpush.msrb.mxu1 %v107_v7 }
  0x27   :  { %280 = vmatpush.msrb.mxu2 %v122_v8  ;;  %299 = vmatpush.msrb.mxu3 %v139_v9 }
  0x28   :  { %241 = vmatpush.msrb.mxu0 %v89_v10  ;;  %260 = vmatpush.msrb.mxu1 %v106_v11 }
  0x29   :  { %281 = vmatpush.msrb.mxu2 %v121_v12  ;;  %300 = vmatpush.msrb.mxu3 %v138_v13 }
  0x2a   :  { %242 = vmatpush.msrb.mxu0 %v88_v14  ;;  %261 = vmatpush.msrb.mxu1 %v105_v15 }
  0x2b   :  { %282 = vmatpush.msrb.mxu2 %v120_v16  ;;  %301 = vmatpush.msrb.mxu3 %v137_v17 }
  0x2c   :  { %243 = vmatpush.msrb.mxu0 %v87_v18  ;;  %262 = vmatpush.msrb.mxu1 %v104_v19 }
  0x2d   :  { %283 = vmatpush.msrb.mxu2 %v119_v20  ;;  %302 = vmatpush.msrb.mxu3 %v136_v21 }
  0x2e   :  { %7 = vsyncpa [#allocation3], 0  ;;  %244 = vmatpush.msrb.mxu0 %v86_v22  ;;  %263 = vmatpush.msrb.mxu1 %v103_v23  ;;  %v117_v28 = vld [vmem:[%s780_s1 + $0x340] sm:$0xff]  ;;  %v134_v29 = vld [vmem:[%s780_s1 + $0x3c8] sm:$0xff]  ;;  %s327_s16 = sshll.u32 %s781_s2, 4  ;;  %vm318_vm0 = vcmask 8192   ;;  %s328_s16 = int_to_ptr.hbm [resolvable:$true] %s327_s16 }
  0x2f   :  { %284 = vmatpush.msrb.mxu2 %v118_v24  ;;  %303 = vmatpush.msrb.mxu3 %v135_v25  ;;  %v84_v30 = vld [vmem:[%s780_s1 + $0x238] sm:$0xff]  ;;  %v101_v31 = vld [vmem:[%s780_s1 + $0x2c0] sm:$0xff]  ;;  %v83_v34 = vld [vmem:[%s780_s1 + $0x230] sm:$0xff] }
  0x30   :  { %245 = vmatpush.msrb.mxu0 %v85_v26  ;;  %264 = vmatpush.msrb.mxu1 %v102_v27  ;;  %v116_v32 = vld [vmem:[%s780_s1 + $0x338] sm:$0xff]  ;;  %v133_v33 = vld [vmem:[%s780_s1 + $0x3c0] sm:$0xff]  ;;  %v115_v37 = vld [vmem:[%s780_s1 + $0x330] sm:$0xff] }
  0x31   :  { %285 = vmatpush.msrb.mxu2 %v117_v28  ;;  %304 = vmatpush.msrb.mxu3 %v134_v29  ;;  %v100_v35 = vld [vmem:[%s780_s1 + $0x2b8] sm:$0xff]  ;;  %v682_v36 = vld [vmem:[%s779_s0] sm:$0xff]  ;;  %v82_v39 = vld [vmem:[%s780_s1 + $0x228] sm:$0xff] }
  0x32   :  { %246 = vmatpush.msrb.mxu0 %v84_v30  ;;  %265 = vmatpush.msrb.mxu1 %v101_v31  ;;  %v132_v38 = vld [vmem:[%s780_s1 + $0x3b8] sm:$0xff]  ;;  %v99_v40 = vld [vmem:[%s780_s1 + $0x2b0] sm:$0xff]  ;;  %v114_v41 = vld [vmem:[%s780_s1 + $0x328] sm:$0xff]  ;;  %v144_v43 = vperm.slane %v682_v36, 2  ;;  %v142_v47 = vperm.slane %v682_v36, 0  ;;  %v145_v49 = vperm.slane %v682_v36, 3 }
  0x33   :  { %286 = vmatpush.msrb.mxu2 %v116_v32  ;;  %305 = vmatpush.msrb.mxu3 %v133_v33  ;;  %v131_v42 = vld [vmem:[%s780_s1 + $0x3b0] sm:$0xff]  ;;  %v81_v44 = vld [vmem:[%s780_s1 + $0x220] sm:$0xff]  ;;  %v98_v45 = vld [vmem:[%s780_s1 + $0x2a8] sm:$0xff]  ;;  %v143_v53 = vperm.slane %v682_v36, 1  ;;  %v146_v3 = vperm.slane %v682_v36, 4  ;;  %v148_v4 = vperm.slane %v682_v36, 6 }
  0x34   :  { %247 = vmatpush.msrb.mxu0 %v83_v34  ;;  %266 = vmatpush.msrb.mxu1 %v100_v35  ;;  %v113_v46 = vld [vmem:[%s780_s1 + $0x320] sm:$0xff]  ;;  %v130_v48 = vld [vmem:[%s780_s1 + $0x3a8] sm:$0xff]  ;;  %v80_v50 = vld [vmem:[%s780_s1 + $0x218] sm:$0xff]  ;;  %v147_v7 = vperm.slane %v682_v36, 5  ;;  %v149_v8 = vperm.slane %v682_v36, 7 }
  0x35   :  { %287 = vmatpush.msrb.mxu2 %v115_v37  ;;  %306 = vmatpush.msrb.mxu3 %v132_v38  ;;  %v97_v51 = vld [vmem:[%s780_s1 + $0x2a0] sm:$0xff]  ;;  %v112_v52 = vld [vmem:[%s780_s1 + $0x318] sm:$0xff]  ;;  %v79_v55 = vld [vmem:[%s780_s1 + $0x210] sm:$0xff] }
  0x36   :  { %248 = vmatpush.msrb.mxu0 %v82_v39  ;;  %267 = vmatpush.msrb.mxu1 %v99_v40  ;;  %v129_v54 = vld [vmem:[%s780_s1 + $0x3a0] sm:$0xff]  ;;  %v96_v56 = vld [vmem:[%s780_s1 + $0x298] sm:$0xff]  ;;  %v111_v57 = vld [vmem:[%s780_s1 + $0x310] sm:$0xff] }
  0x37   :  { %288 = vmatpush.msrb.mxu2 %v114_v41  ;;  %307 = vmatpush.msrb.mxu3 %v131_v42  ;;  %v128_v58 = vld [vmem:[%s780_s1 + $0x398] sm:$0xff]  ;;  %v78_v59 = vld [vmem:[%s780_s1 + $0x208] sm:$0xff]  ;;  %v95_v60 = vld [vmem:[%s780_s1 + $0x290] sm:$0xff] }
  0x38   :  { %214 = vmatmul.f32.vlgmr.msra.gmra.mxu2 %v144_v43  ;;  %249 = vmatpush.msrb.mxu0 %v81_v44  ;;  %v110_v61 = vld [vmem:[%s780_s1 + $0x308] sm:$0xff]  ;;  %v127_v62 = vld [vmem:[%s780_s1 + $0x390] sm:$0xff]  ;;  %v77_v63 = vld [vmem:[%s780_s1 + $0x200] sm:$0xff] }
  0x39   :  { %268 = vmatpush.msrb.mxu1 %v98_v45  ;;  %289 = vmatpush.msrb.mxu2 %v113_v46  ;;  %v94_v0 = vld [vmem:[%s780_s1 + $0x288] sm:$0xff]  ;;  %v109_v1 = vld [vmem:[%s780_s1 + $0x300] sm:$0xff] }
  0x3a   :  { %308 = vmatpush.msrb.mxu3 %v130_v48  ;;  %174 = vmatmul.f32.vlgmr.msra.gmra.mxu0 %v142_v47  ;;  %v126_v2 = vld [vmem:[%s780_s1 + $0x388] sm:$0xff]  ;;  %v93_v5 = vld [vmem:[%s780_s1 + $0x280] sm:$0xff] }
  0x3b   :  { %234 = vmatmul.f32.vlgmr.msra.gmra.mxu3 %v145_v49  ;;  %250 = vmatpush.msrb.mxu0 %v80_v50  ;;  %v125_v6 = vld [vmem:[%s780_s1 + $0x380] sm:$0xff]  ;;  %s363_s1 = smov [#allocation2]  }
  0x3c   :  { %269 = vmatpush.msrb.mxu1 %v97_v51  ;;  %290 = vmatpush.msrb.mxu2 %v112_v52  ;;  %s325_s13 = sshll.u32 %s363_s1, 4  ;;  %s326_s13 = int_to_ptr.vmem [resolvable:$true] %s325_s13 }
  0x3d   :  { %309 = vmatpush.msrb.mxu3 %v129_v54  ;;  %194 = vmatmul.f32.vlgmr.msra.gmra.mxu1 %v143_v53 }
  0x3e   :  { %251 = vmatpush.msrb.mxu0 %v79_v55  ;;  %270 = vmatpush.msrb.mxu1 %v96_v56 }
  0x3f   :  { %291 = vmatpush.msrb.mxu2 %v111_v57  ;;  %310 = vmatpush.msrb.mxu3 %v128_v58 }
  0x40   :  { %252 = vmatpush.msrb.mxu0 %v78_v59  ;;  %271 = vmatpush.msrb.mxu1 %v95_v60 }
  0x41   :  { %292 = vmatpush.msrb.mxu2 %v110_v61  ;;  %311 = vmatpush.msrb.mxu3 %v127_v62 }
  0x42   :  { %253 = vmatpush.msrb.mxu0 %v77_v63  ;;  %272 = vmatpush.msrb.mxu1 %v94_v0 }
  0x43   :  { %293 = vmatpush.msrb.mxu2 %v109_v1  ;;  %312 = vmatpush.msrb.mxu3 %v126_v2 }
  0x44   :  { %254 = vmatmul.f32.vlgmr.msrb.gmra.mxu0 %v146_v3  ;;  %294 = vmatmul.f32.vlgmr.msrb.gmra.mxu2 %v148_v4 }
  0x45   :  { %273 = vmatpush.msrb.mxu1 %v93_v5  ;;  %313 = vmatpush.msrb.mxu3 %v125_v6 }
  0x46   :  { %274 = vmatmul.f32.vlgmr.msrb.gmra.mxu1 %v147_v7  ;;  %314 = vmatmul.f32.vlgmr.msrb.gmra.mxu3 %v149_v8 }
  0xb7   :  { %v175_v9 = vpop.f32.mrf.mxu0 }
  0xba   :  { %v195_v10 = vpop.f32.mrf.mxu1 }
  0xbb   :  { %v196_v11 = vadd.f32 %v195_v10, %v175_v9  ;;  %v215_v12 = vpop.f32.mrf.mxu2 }
  0xbd   :  { %v216_v13 = vadd.f32 %v215_v12, %v196_v11 }
  0xbe   :  { %v235_v14 = vpop.f32.mrf.mxu3 }
  0xbf   :  { %v236_v15 = vadd.f32 %v235_v14, %v216_v13 }
  0xc1   :  { %v255_v16 = vpop.f32.mrf.mxu0 }
  0xc2   :  { %v256_v17 = vadd.f32 %v255_v16, %v236_v15 }
  0xc3   :  { %v275_v18 = vpop.f32.mrf.mxu1 }
  0xc4   :  { %v276_v19 = vadd.f32 %v275_v18, %v256_v17 }
  0xc7   :  { %v295_v20 = vpop.f32.mrf.mxu2 }
  0xc8   :  { %v296_v21 = vadd.f32 %v295_v20, %v276_v19 }
  0xc9   :  { %v315_v22 = vpop.f32.mrf.mxu3 }
  0xca   :  { %v316_v23 = vadd.f32 %v315_v22, %v296_v21 }
  0xcc   :  { %319 = vst.msk [vmem:[#allocation2] sm:$0x1] %vm318_vm0, %v316_v23 }
  0xcd   :  { %330 = dma.vmem_to_hbm [thread:$0]  %s326_s13, 16, %s328_s16, [#allocation3]  }
  0xce   :  { %361 = dma.done.wait [#allocation3], 16  }
  0xcf   :  { %362 = vsyncadd [#allocation3], 4294967280 }
  0xd0   :  { %335 = vsyncpa [#allocation3], 1 }

</bundles_post_ra>
